<compile_context>
chip_gen: v7x
topology: tpu7x:2x2x1
jax: 0.10.0
libtpu: 0.0.40
codegen_flags: <defaults>
</compile_context>

<pallas_src>
import functools

import jax
import jax.numpy as jnp
from jax import lax
from jax.experimental import pallas as pl
from jax.experimental.pallas import tpu as pltpu


EXPANSION = 4
LANE = 128
_RESIDENT_W_BYTES = 4 * 1024 * 1024     # weight stays VMEM-resident below this


def _round_up(x, m):
    return (x + m - 1) // m * m


@functools.lru_cache(maxsize=1)
def _vmem_limit():
    """Generation-aware scoped-VMEM limit (~3/4 of physical, capped)."""
    try:
        cap = pltpu.get_tpu_info().vmem_capacity_bytes
    except Exception:
        cap = 64 * 1024 * 1024
    return int(min(cap * 3 // 4, 100 * 1024 * 1024))


def _fits_resident(K, Coutp):
    return K * Coutp * 2 <= _RESIDENT_W_BYTES and K <= 2048


def _choose_row_tile(rows, max_tm=512):
    """Row tile: floor 16 (bf16 sublanes), up to 512, >=2 tiles when possible."""
    rows_p = _round_up(rows, 16)
    if rows_p >= 2 * max_tm:
        tm = max_tm
    elif rows_p >= 32:
        tm = _round_up((rows_p + 1) // 2, 16)
    else:
        tm = rows_p
    return tm, _round_up(rows_p, tm)


def _pick_tk(K):
    """Divisor-aware K tile (avoid padding K up to the next multiple of 512)."""
    if K <= 512:
        return K, K
    for tk in (512, 384, 256, 128):
        if K % tk == 0:
            return tk, K
    Kp = _round_up(K, 256)
    return 256, Kp


# ----------------------------------------------------------------------------
# Resident-weight 1x1 kernel:
#   out = relu?( sum_t x_t @ w_t + shift [+ residual_f32] )
# grid = (row_tiles,);  every w_t is DMA'd once and stays in VMEM.
# ----------------------------------------------------------------------------
def _make_pointwise_kernel(n_in, apply_relu, has_residual):
    def kernel(*refs):
        xs = refs[:n_in]
        ws = refs[n_in:2 * n_in]
        shift_ref = refs[2 * n_in]
        res_ref = refs[2 * n_in + 1] if has_residual else None
        o_ref = refs[-1]

        acc = jnp.dot(xs[0][...], ws[0][...], preferred_element_type=jnp.float32)
        for t in range(1, n_in):
            acc = acc + jnp.dot(xs[t][...], ws[t][...],
                                preferred_element_type=jnp.float32)
        acc = acc + shift_ref[...]
        if has_residual:
            acc = acc + res_ref[...].astype(jnp.float32)
        if apply_relu:
            acc = jnp.maximum(acc, 0.0)
        o_ref[...] = acc.astype(o_ref.dtype)
    return kernel


def fused_pointwise(xs, ws, shift, residual=None, relu=True,
                    out_dtype=jnp.bfloat16):
    """xs: list of (rows, K_t) bf16; ws: list of (K_t, Coutp) bf16 resident;
    shift: (1, Coutp) f32; residual: (rows, Coutp) (kept in its own dtype)."""
    rows = xs[0].shape[0]
    Coutp = ws[0].shape[1]
    tm, rows_pad = _choose_row_tile(rows)
    if rows_pad != rows:
        xs = [jnp.pad(x, ((0, rows_pad - rows), (0, 0))) for x in xs]
        if residual is not None:
            residual = jnp.pad(residual, ((0, rows_pad - rows), (0, 0)))

    in_specs = [pl.BlockSpec((tm, int(x.shape[1])), lambda i: (i, 0)) for x in xs]
    in_specs += [pl.BlockSpec(tuple(int(d) for d in w.shape), lambda i: (0, 0))
                 for w in ws]
    in_specs += [pl.BlockSpec((1, Coutp), lambda i: (0, 0))]
    args = list(xs) + list(ws) + [shift]
    if residual is not None:
        in_specs.append(pl.BlockSpec((tm, Coutp), lambda i: (i, 0)))
        args.append(residual)

    out = pl.pallas_call(
        _make_pointwise_kernel(len(xs), relu, residual is not None),
        out_shape=jax.ShapeDtypeStruct((rows_pad, Coutp), out_dtype),
        grid=(rows_pad // tm,),
        in_specs=in_specs,
        out_specs=pl.BlockSpec((tm, Coutp), lambda i: (i, 0)),
        compiler_params=pltpu.CompilerParams(
            dimension_semantics=("parallel",),
            vmem_limit_bytes=_vmem_limit()),
    )(*args)
    return out[:rows] if rows_pad != rows else out


# ----------------------------------------------------------------------------
# Tiled fallback (weights too large to keep resident):
#   grid = (row_tiles, cout_tiles, k_tiles), f32 VMEM accumulator (P3).
# ----------------------------------------------------------------------------
def _make_tiled_kernel(apply_relu, has_residual):
    if has_residual:
        def kernel(x_ref, w_ref, shift_ref, res_ref, o_ref, acc_ref):
            @pl.when(pl.program_id(2) == 0)
            def _():
                acc_ref[...] = jnp.zeros_like(acc_ref)

            acc_ref[...] += jnp.dot(x_ref[...], w_ref[...],
                                    preferred_element_type=jnp.float32)

            @pl.when(pl.program_id(2) == pl.num_programs(2) - 1)
            def _():
                out = acc_ref[...] + shift_ref[...]
                out = out + res_ref[...].astype(jnp.float32)
                if apply_relu:
                    out = jnp.maximum(out, 0.0)
                o_ref[...] = out.astype(o_ref.dtype)
    else:
        def kernel(x_ref, w_ref, shift_ref, o_ref, acc_ref):
            @pl.when(pl.program_id(2) == 0)
            def _():
                acc_ref[...] = jnp.zeros_like(acc_ref)

            acc_ref[...] += jnp.dot(x_ref[...], w_ref[...],
                                    preferred_element_type=jnp.float32)

            @pl.when(pl.program_id(2) == pl.num_programs(2) - 1)
            def _():
                out = acc_ref[...] + shift_ref[...]
                if apply_relu:
                    out = jnp.maximum(out, 0.0)
                o_ref[...] = out.astype(o_ref.dtype)
    return kernel


def _fused_tiled(x, w, shift, residual, relu, out_dtype):
    rows, K = x.shape
    Coutp = w.shape[1]
    tk, Kp = _pick_tk(K)
    if Kp != K:
        x = jnp.pad(x, ((0, 0), (0, Kp - K)))
        w = jnp.pad(w, ((0, Kp - K), (0, 0)))
        K = Kp
    tn = 256 if Coutp % 256 == 0 else 128
    tm, rows_pad = _choose_row_tile(rows)
    if rows_pad != rows:
        x = jnp.pad(x, ((0, rows_pad - rows), (0, 0)))
        if residual is not None:
            residual = jnp.pad(residual, ((0, rows_pad - rows), (0, 0)))

    grid = (rows_pad // tm, Coutp // tn, K // tk)
    in_specs = [
        pl.BlockSpec((tm, tk), lambda i, j, k: (i, k)),
        pl.BlockSpec((tk, tn), lambda i, j, k: (k, j)),
        pl.BlockSpec((1, tn), lambda i, j, k: (0, j)),
    ]
    args = [x, w, shift]
    if residual is not None:
        in_specs.append(pl.BlockSpec((tm, tn), lambda i, j, k: (i, j)))
        args.append(residual)

    out = pl.pallas_call(
        _make_tiled_kernel(relu, residual is not None),
        out_shape=jax.ShapeDtypeStruct((rows_pad, Coutp), out_dtype),
        grid=grid,
        in_specs=in_specs,
        out_specs=pl.BlockSpec((tm, tn), lambda i, j, k: (i, j)),
        scratch_shapes=[pltpu.VMEM((tm, tn), jnp.float32)],
        compiler_params=pltpu.CompilerParams(
            dimension_semantics=("parallel", "parallel", "arbitrary"),
            vmem_limit_bytes=_vmem_limit()),
    )(*args)
    return out[:rows] if rows_pad != rows else out


def fused_matmul(x, w, shift, residual=None, relu=True, out_dtype=jnp.bfloat16):
    K, Coutp = w.shape
    if _fits_resident(K, Coutp):
        return fused_pointwise([x], [w], shift, residual=residual,
                               relu=relu, out_dtype=out_dtype)
    return _fused_tiled(x, w, shift, residual, relu, out_dtype)


# ----------------------------------------------------------------------------
# 3x3 conv (stride 1 or 2, pad=1) + BN shift + ReLU, halo conv in VMEM.
# Input is phase-decomposed: (N, s, s, Hh, Wh, C), so every tap is a
# contiguous slice.  An im2col scratch is built once per (n, row-block) at
# j == 0 and reused across Cout tiles; each output tile is one MXU dot.
# ----------------------------------------------------------------------------
def _choose_rb(Ho, Wo, C):
    """Divisor of Ho with col-scratch <= ~2 MiB, sublane-aligned rows,
    preferring >=2 row blocks (v7x dual TensorCore)."""
    budget_rows = max(1, (2 * 1024 * 1024) // (9 * C * 2 * max(Wo, 1)))
    best = Ho
    for rb in range(min(Ho, budget_rows), 0, -1):
        if Ho % rb == 0 and (rb == Ho or (rb * Wo) % 8 == 0):
            best = rb
            break
    if best == Ho and Ho > 1:
        for rb in range(Ho // 2, 0, -1):
            if Ho % rb == 0 and (rb * Wo) % 8 == 0:
                best = rb
                break
    return best


def _make_conv3x3_kernel(rb, Wo, stride):
    def kernel(xp_ref, w_ref, shift_ref, o_ref, col_ref):
        C = xp_ref.shape[-1]
        r = pl.program_id(1)

        @pl.when(pl.program_id(2) == 0)
        def _():
            h0 = r * rb
            for kh in range(3):
                ph, dh = kh % stride, kh // stride
                for kw in range(3):
                    pw, dw = kw % stride, kw // stride
                    tap = xp_ref[0, ph, pw, pl.ds(h0 + dh, rb), dw:dw + Wo, :]
                    t = kh * 3 + kw
                    col_ref[:, t * C:(t + 1) * C] = tap.reshape(rb * Wo, C)

        acc = jnp.dot(col_ref[...], w_ref[...],
                      preferred_element_type=jnp.float32)
        out = jnp.maximum(acc + shift_ref[...], 0.0)
        o_ref[...] = out.reshape(o_ref.shape).astype(o_ref.dtype)
    return kernel


def _phase_decompose(xp, stride, Ho, Wo):
    """(N, H+2, W+2, C) padded NHWC -> (N, s, s, Hh, Wh, C) so that tap
    (kh, kw) of output (ho, wo) lives at phase (kh%s, kw%s), index
    (ho + kh//s, wo + kw//s).  Identity (free reshape) for stride 1."""
    N, Hp, Wp, C = xp.shape
    s = stride
    Hh = Ho + 2 // s
    Wh = Wo + 2 // s
    if s == 1:
        return xp.reshape(N, 1, 1, Hp, Wp, C)
    xp = jnp.pad(xp, ((0, 0), (0, s * Hh - Hp), (0, s * Wh - Wp), (0, 0)))
    xp = xp.reshape(N, Hh, s, Wh, s, C)
    return jnp.transpose(xp, (0, 2, 4, 1, 3, 5))


def conv3x3_bn_relu(xp_phase, w9, shift, Ho, Wo, stride):
    """xp_phase: (N, s, s, Hh, Wh, C) bf16; w9: (9*C, Coutp) bf16;
    shift: (1, Coutp) f32.  Returns (N, Ho*Wo, Coutp) bf16."""
    N, s, _, Hh, Wh, C = xp_phase.shape
    Coutp = w9.shape[1]
    rb = _choose_rb(Ho, Wo, C)
    n_rb = Ho // rb
    if 9 * C * Coutp * 2 <= _RESIDENT_W_BYTES:
        tn = Coutp
    else:
        tn = 256 if Coutp % 256 == 0 else 128

    return pl.pallas_call(
        _make_conv3x3_kernel(rb, Wo, stride),
        out_shape=jax.ShapeDtypeStruct((N, Ho * Wo, Coutp), jnp.bfloat16),
        grid=(N, n_rb, Coutp // tn),
        in_specs=[
            pl.BlockSpec((1, s, s, Hh, Wh, C),
                         lambda n, r, j: (n, 0, 0, 0, 0, 0)),
            pl.BlockSpec((9 * C, tn), lambda n, r, j: (0, j)),
            pl.BlockSpec((1, tn), lambda n, r, j: (0, j)),
        ],
        out_specs=pl.BlockSpec((1, rb * Wo, tn), lambda n, r, j: (n, r, j)),
        scratch_shapes=[pltpu.VMEM((rb * Wo, 9 * C), jnp.bfloat16)],
        compiler_params=pltpu.CompilerParams(
            dimension_semantics=("parallel", "parallel", "arbitrary"),
            vmem_limit_bytes=_vmem_limit()),
    )(xp_phase, w9, shift)


# ----------------------------------------------------------------------------
# Glue: BN folding and padding helpers.
# ----------------------------------------------------------------------------
def bn_fold(gamma, beta, mean, var, conv_bias, eps=1e-5):
    """Fold eval-mode BatchNorm (and conv bias) into per-channel scale/shift."""
    scale = gamma / jnp.sqrt(var + eps)
    shift = (conv_bias - mean) * scale + beta
    return scale, shift


def _pad_weight(w, kp, cp):
    K, C = w.shape
    return jnp.pad(w, ((0, kp - K), (0, cp - C))).astype(jnp.bfloat16)


def _pad_shift(s, cp):
    return jnp.pad(s, (0, cp - s.shape[0])).reshape(1, cp).astype(jnp.float32)


def _pad_cols(x, cp):
    return jnp.pad(x, ((0, 0), (0, cp - x.shape[1])))


# ----------------------------------------------------------------------------
# Bottleneck forward (Pallas version)
# ----------------------------------------------------------------------------
def bottleneck_forward(p, x_nchw, stride):
    x = jnp.transpose(x_nchw, (0, 2, 3, 1))               # NHWC f32
    N, H, W, Cin = x.shape
    planes = p["w1"].shape[0]
    Cout = EXPANSION * planes

    Cin_p = _round_up(Cin, LANE)
    P_p = _round_up(planes, LANE)
    Cout_p = _round_up(Cout, LANE)

    # ---- conv1 (1x1) + bn1 + relu  ->  bf16 (a1) ----------------------------
    s1, sh1 = bn_fold(p["bn1_g"], p["bn1_b"], p["bn1_m"], p["bn1_v"], p["b1"])
    w1 = jnp.transpose(p["w1"][:, :, 0, 0], (1, 0)) * s1[None, :]   # (Cin, planes)
    x2d = _pad_cols(x.reshape(N * H * W, Cin), Cin_p).astype(jnp.bfloat16)
    a1 = fused_matmul(x2d, _pad_weight(w1, Cin_p, P_p), _pad_shift(sh1, P_p),
                      relu=True, out_dtype=jnp.bfloat16)
    a1 = a1.reshape(N, H, W, P_p)

    # ---- conv2 (3x3, stride, pad=1) + bn2 + relu ------------------------------
    s2, sh2 = bn_fold(p["bn2_g"], p["bn2_b"], p["bn2_m"], p["bn2_v"], p["b2"])
    w2 = jnp.transpose(p["w2"] * s2[:, None, None, None], (2, 3, 1, 0))
    w2p = jnp.pad(w2, ((0, 0), (0, 0), (0, P_p - planes), (0, P_p - planes)))
    w2p = w2p.reshape(9 * P_p, P_p).astype(jnp.bfloat16)
    sh2p = _pad_shift(sh2, P_p)
    Ho = (H - 1) // stride + 1
    Wo = (W - 1) // stride + 1
    xp = jnp.pad(a1, ((0, 0), (1, 1), (1, 1), (0, 0)))
    xph = _phase_decompose(xp, stride, Ho, Wo)
    a2 = conv3x3_bn_relu(xph, w2p, sh2p, Ho, Wo, stride)    # (N, Ho*Wo, P_p) bf16
    rows = N * Ho * Wo
    a2_2d = a2.reshape(rows, P_p)

    # ---- conv3 (1x1) + bn3 + shortcut + relu ----------------------------------
    s3, sh3 = bn_fold(p["bn3_g"], p["bn3_b"], p["bn3_m"], p["bn3_v"], p["b3"])
    w3 = jnp.transpose(p["w3"][:, :, 0, 0], (1, 0)) * s3[None, :]   # (planes, Cout)
    w3p = _pad_weight(w3, P_p, Cout_p)
    has_proj = (stride != 1) or (Cin != Cout)

    if has_proj:
        ss, shs = bn_fold(p["bns_g"], p["bns_b"], p["bns_m"], p["bns_v"], p["bs"])
        ws = jnp.transpose(p["ws"][:, :, 0, 0], (1, 0)) * ss[None, :]  # (Cin, Cout)
        wsp = _pad_weight(ws, Cin_p, Cout_p)
        xs2d = _pad_cols(x[:, ::stride, ::stride, :].reshape(rows, Cin),
                         Cin_p).astype(jnp.bfloat16)
        if _fits_resident(P_p, Cout_p) and _fits_resident(Cin_p, Cout_p):
            # conv3 and projection shortcut fused: two dots into one accumulator.
            out = fused_pointwise([a2_2d, xs2d], [w3p, wsp],
                                  _pad_shift(sh3 + shs, Cout_p),
                                  relu=True, out_dtype=jnp.float32)
        else:
            sc = fused_matmul(xs2d, wsp, _pad_shift(shs, Cout_p),
                              relu=False, out_dtype=jnp.float32)
            out = fused_matmul(a2_2d, w3p, _pad_shift(sh3, Cout_p),
                               residual=sc, relu=True, out_dtype=jnp.float32)
    else:
        # Identity shortcut: residual stays f32 all the way to the epilogue.
        res = _pad_cols(x.reshape(rows, Cout), Cout_p)
        out = fused_matmul(a2_2d, w3p, _pad_shift(sh3, Cout_p),
                           residual=res, relu=True, out_dtype=jnp.float32)

    out = out[:, :Cout].reshape(N, Ho, Wo, Cout)
    # TODO(synk): for multi-block networks keep activations bf16/NHWC between
    # blocks; NCHW f32 is materialized here only to match the nn.Module API.
    return jnp.transpose(out, (0, 3, 1, 2))


# ----------------------------------------------------------------------------
# Pure-JAX f32 reference (correctness check)
# ----------------------------------------------------------------------------
def _conv2d_ref(x, w, b, stride=1, padding=0):
    y = lax.conv_general_dilated(
        x, w, (stride, stride), [(padding, padding)] * 2,
        dimension_numbers=("NCHW", "OIHW", "NCHW"))
    return y + b.reshape(1, -1, 1, 1)


def _bn_ref(x, g, beta, m, v, eps=1e-5):
    g, beta, m, v = (a.reshape(1, -1, 1, 1) for a in (g, beta, m, v))
    return (x - m) / jnp.sqrt(v + eps) * g + beta


def bottleneck_ref(p, x, stride):
    Cin = x.shape[1]
    planes = p["w1"].shape[0]
    Cout = EXPANSION * planes
    out = jax.nn.relu(_bn_ref(_conv2d_ref(x, p["w1"], p["b1"]),
                              p["bn1_g"], p["bn1_b"], p["bn1_m"], p["bn1_v"]))
    out = jax.nn.relu(_bn_ref(_conv2d_ref(out, p["w2"], p["b2"], stride, 1),
                              p["bn2_g"], p["bn2_b"], p["bn2_m"], p["bn2_v"]))
    out = _bn_ref(_conv2d_ref(out, p["w3"], p["b3"]),
                  p["bn3_g"], p["bn3_b"], p["bn3_m"], p["bn3_v"])
    if stride != 1 or Cin != Cout:
        sc = _bn_ref(_conv2d_ref(x, p["ws"], p["bs"], stride),
                     p["bns_g"], p["bns_b"], p["bns_m"], p["bns_v"])
    else:
        sc = x
    return jax.nn.relu(out + sc)


# ----------------------------------------------------------------------------
# Deterministic parameter init (matches nn.Module __init__ shapes)
# TODO(synk): BatchNorm is eval-mode (running stats folded); training-mode
# batch statistics are not reproduced.
# ----------------------------------------------------------------------------
def init_params(key, in_planes, planes, stride):
    Cout = EXPANSION * planes
    ks = jax.random.split(key, 16)

    def nrm(k, shape, s=0.1):
        return (s * jax.random.normal(k, shape)).astype(jnp.float32)

    p = {
        "w1": nrm(ks[0], (planes, in_planes, 1, 1)),
        "b1": nrm(ks[1], (planes,)),
        "bn1_g": 1.0 + nrm(ks[2], (planes,)),
        "bn1_b": nrm(ks[2], (planes,)),
        "bn1_m": nrm(ks[3], (planes,)),
        "bn1_v": 1.0 + 0.1 * jax.random.uniform(ks[3], (planes,)),

        "w2": nrm(ks[4], (planes, planes, 3, 3)),
        "b2": nrm(ks[5], (planes,)),
        "bn2_g": 1.0 + nrm(ks[6], (planes,)),
        "bn2_b": nrm(ks[6], (planes,)),
        "bn2_m": nrm(ks[7], (planes,)),
        "bn2_v": 1.0 + 0.1 * jax.random.uniform(ks[7], (planes,)),

        "w3": nrm(ks[8], (Cout, planes, 1, 1)),
        "b3": nrm(ks[9], (Cout,)),
        "bn3_g": 1.0 + nrm(ks[10], (Cout,)),
        "bn3_b": nrm(ks[10], (Cout,)),
        "bn3_m": nrm(ks[11], (Cout,)),
        "bn3_v": 1.0 + 0.1 * jax.random.uniform(ks[11], (Cout,)),
    }
    if stride != 1 or in_planes != Cout:
        p.update({
            "ws": nrm(ks[12], (Cout, in_planes, 1, 1)),
            "bs": nrm(ks[13], (Cout,)),
            "bns_g": 1.0 + nrm(ks[14], (Cout,)),
            "bns_b": nrm(ks[14], (Cout,)),
            "bns_m": nrm(ks[15], (Cout,)),
            "bns_v": 1.0 + 0.1 * jax.random.uniform(ks[15], (Cout,)),
        })
    return p


if __name__ == "__main__":
    key = jax.random.PRNGKey(0)
    N, H, W = 2, 16, 16

    # (in_planes, planes, stride): projection+stride1, identity, projection+stride2
    configs = [(8, 4, 1), (16, 4, 1), (16, 4, 2)]

    for idx, (in_planes, planes, stride) in enumerate(configs):
        k_param, k_x = jax.random.split(jax.random.fold_in(key, idx))
        params = init_params(k_param, in_planes, planes, stride)
        x = jax.random.normal(k_x, (N, in_planes, H, W), dtype=jnp.float32)

        fwd = jax.jit(functools.partial(bottleneck_forward, stride=stride))
        y = jax.block_until_ready(fwd(params, x))
        y_ref = bottleneck_ref(params, x, stride)

        Ho = (H - 1) // stride + 1
        assert y.shape == (N, EXPANSION * planes, Ho, Ho), y.shape
        # Tolerance loosened vs. pure f32: matmuls run in bf16 on the MXU.
        err = jnp.max(jnp.abs(y - y_ref))
        assert jnp.allclose(y, y_ref, atol=5e-2, rtol=5e-2), \
            f"config {idx} max err {err}"

    print("KERNEL_OK")
</pallas_src>

<mosaic_0001>
module attributes {stable_mosaic.version = 11 : i64} {
  func.func @kernel(%arg0: i32, %arg1: memref<256x128xbf16, #tpu.memory_space<vmem>>, %arg2: memref<128x128xbf16, #tpu.memory_space<vmem>>, %arg3: memref<1x128xf32, #tpu.memory_space<vmem>>, %arg4: memref<256x128xbf16, #tpu.memory_space<vmem>>) attributes {dimension_semantics = [#tpu.dimension_semantics<parallel>], iteration_bounds = array<i64: 2>, scalar_prefetch = 0 : i64, scratch_operands = 0 : i64, tpu.core_type = #tpu.core_type<tc>, window_params = [{transform_indices = @transform_0, window_bounds = array<i64: 256, 128>}, {pipeline_mode = #tpu.pipeline_mode<synchronous>, transform_indices = @transform_1, window_bounds = array<i64: 128, 128>}, {pipeline_mode = #tpu.pipeline_mode<synchronous>, transform_indices = @transform_2, window_bounds = array<i64: 1, 128>}, {transform_indices = @transform_3, window_bounds = array<i64: 256, 128>}]} {
    %c0 = arith.constant 0 : index
    %c0_0 = arith.constant 0 : index
    %0 = vector.load %arg1[%c0, %c0_0] : memref<256x128xbf16, #tpu.memory_space<vmem>>, vector<256x128xbf16>
    %c0_1 = arith.constant 0 : index
    %c0_2 = arith.constant 0 : index
    %1 = vector.load %arg2[%c0_1, %c0_2] : memref<128x128xbf16, #tpu.memory_space<vmem>>, vector<128x128xbf16>
    %cst = arith.constant dense<0.000000e+00> : vector<256x128xf32>
    %2 = tpu.matmul %0, %1, %cst {dimension_numbers = #tpu.dot_dimension_numbers<[1], [0], [0], [1], [0, 0, 1, 1], [], []>} : vector<256x128xbf16>, vector<128x128xbf16>, vector<256x128xf32> -> vector<256x128xf32>
    %c0_3 = arith.constant 0 : index
    %c0_4 = arith.constant 0 : index
    %3 = vector.load %arg3[%c0_3, %c0_4] : memref<1x128xf32, #tpu.memory_space<vmem>>, vector<1x128xf32>
    %4 = vector.broadcast %3 : vector<1x128xf32> to vector<256x128xf32>
    %5 = arith.addf %2, %4 : vector<256x128xf32>
    %cst_5 = arith.constant 0.000000e+00 : f32
    %6 = vector.broadcast %cst_5 : f32 to vector<256x128xf32>
    %7 = arith.maximumf %5, %6 : vector<256x128xf32>
    %8 = arith.truncf %7 : vector<256x128xf32> to vector<256x128xbf16>
    %c0_6 = arith.constant 0 : index
    %c0_7 = arith.constant 0 : index
    %9 = vector.load %arg4[%c0_6, %c0_7] : memref<256x128xbf16, #tpu.memory_space<vmem>>, vector<256x128xbf16>
    tpu.vector_store %arg4[%c0_6, %c0_7], %8 {strides = array<i32>} : memref<256x128xbf16, #tpu.memory_space<vmem>>, vector<256x128xbf16>,
    return
  }
  func.func @transform_0(%arg0: i32) -> (i32, i32) {
    %c0_i32 = arith.constant 0 : i32
    %c0_i32_0 = arith.constant 0 : i32
    return %arg0, %c0_i32 : i32, i32
  }
  func.func @transform_1(%arg0: i32) -> (i32, i32) {
    %c0_i32 = arith.constant 0 : i32
    %c0_i32_0 = arith.constant 0 : i32
    %c0_i32_1 = arith.constant 0 : i32
    return %c0_i32, %c0_i32_0 : i32, i32
  }
  func.func @transform_2(%arg0: i32) -> (i32, i32) {
    %c0_i32 = arith.constant 0 : i32
    %c0_i32_0 = arith.constant 0 : i32
    %c0_i32_1 = arith.constant 0 : i32
    return %c0_i32, %c0_i32_0 : i32, i32
  }
  func.func @transform_3(%arg0: i32) -> (i32, i32) {
    %c0_i32 = arith.constant 0 : i32
    %c0_i32_0 = arith.constant 0 : i32
    return %arg0, %c0_i32 : i32, i32
  }
}

module attributes {stable_mosaic.version = 11 : i64} {
  func.func @kernel(%arg0: i32, %arg1: i32, %arg2: i32, %arg3: memref<1x1x1x18x18x128xbf16, #tpu.memory_space<vmem>>, %arg4: memref<1152x128xbf16, #tpu.memory_space<vmem>>, %arg5: memref<1x128xf32, #tpu.memory_space<vmem>>, %arg6: memref<1x128x128xbf16, #tpu.memory_space<vmem>>, %arg7: memref<128x1152xbf16, #tpu.memory_space<vmem>>) attributes {dimension_semantics = [#tpu.dimension_semantics<parallel>, #tpu.dimension_semantics<parallel>, #tpu.dimension_semantics<arbitrary>], iteration_bounds = array<i64: 2, 2, 1>, scalar_prefetch = 0 : i64, scratch_operands = 1 : i64, tpu.core_type = #tpu.core_type<tc>, window_params = [{transform_indices = @transform_0, window_bounds = array<i64: 1, 1, 1, 18, 18, 128>}, {transform_indices = @transform_1, window_bounds = array<i64: 1152, 128>}, {transform_indices = @transform_2, window_bounds = array<i64: 1, 128>}, {transform_indices = @transform_3, window_bounds = array<i64: 1, 128, 128>}]} {
    %c0_i32 = arith.constant 0 : i32
    %0 = arith.cmpi eq, %arg2, %c0_i32 : i32
    %1 = arith.extui %0 : i1 to i32
    %c0_i32_0 = arith.constant 0 : i32
    %2 = arith.cmpi ne, %1, %c0_i32_0 : i32
    scf.if %2 {
      %c8_i32 = arith.constant 8 : i32
      %14 = arith.muli %arg1, %c8_i32 : i32
      %c0_i32_10 = arith.constant 0 : i32
      %15 = arith.addi %14, %c0_i32_10 : i32
      %c0_11 = arith.constant 0 : index
      %c0_12 = arith.constant 0 : index
      %c0_13 = arith.constant 0 : index
      %16 = arith.index_cast %15 : i32 to index
      %c0_14 = arith.constant 0 : index
      %c0_15 = arith.constant 0 : index
      %17 = vector.load %arg3[%c0_11, %c0_12, %c0_13, %16, %c0_14, %c0_15] : memref<1x1x1x18x18x128xbf16, #tpu.memory_space<vmem>>, vector<1x1x1x8x16x128xbf16>
      %18 = vector.shape_cast %17 : vector<1x1x1x8x16x128xbf16> to vector<8x16x128xbf16>
      %19 = vector.shape_cast %18 : vector<8x16x128xbf16> to vector<128x128xbf16>
      %c0_16 = arith.constant 0 : index
      %c0_17 = arith.constant 0 : index
      %20 = vector.load %arg7[%c0_16, %c0_17] : memref<128x1152xbf16, #tpu.memory_space<vmem>>, vector<128x128xbf16>
      tpu.vector_store %arg7[%c0_16, %c0_17], %19 {strides = array<i32>} : memref<128x1152xbf16, #tpu.memory_space<vmem>>, vector<128x128xbf16>,
      %c0_i32_18 = arith.constant 0 : i32
      %21 = arith.addi %14, %c0_i32_18 : i32
      %c0_19 = arith.constant 0 : index
      %c0_20 = arith.constant 0 : index
      %c0_21 = arith.constant 0 : index
      %22 = arith.index_cast %21 : i32 to index
      %c1 = arith.constant 1 : index
      %c0_22 = arith.constant 0 : index
      %23 = vector.load %arg3[%c0_19, %c0_20, %c0_21, %22, %c1, %c0_22] : memref<1x1x1x18x18x128xbf16, #tpu.memory_space<vmem>>, vector<1x1x1x8x16x128xbf16>
      %24 = vector.shape_cast %23 : vector<1x1x1x8x16x128xbf16> to vector<8x16x128xbf16>
      %25 = vector.shape_cast %24 : vector<8x16x128xbf16> to vector<128x128xbf16>
      %c0_23 = arith.constant 0 : index
      %c128 = arith.constant 128 : index
      %26 = vector.load %arg7[%c0_23, %c128] : memref<128x1152xbf16, #tpu.memory_space<vmem>>, vector<128x128xbf16>
      tpu.vector_store %arg7[%c0_23, %c128], %25 {strides = array<i32>} : memref<128x1152xbf16, #tpu.memory_space<vmem>>, vector<128x128xbf16>,
      %c0_i32_24 = arith.constant 0 : i32
      %27 = arith.addi %14, %c0_i32_24 : i32
      %c0_25 = arith.constant 0 : index
      %c0_26 = arith.constant 0 : index
      %c0_27 = arith.constant 0 : index
      %28 = arith.index_cast %27 : i32 to index
      %c2 = arith.constant 2 : index
      %c0_28 = arith.constant 0 : index
      %29 = vector.load %arg3[%c0_25, %c0_26, %c0_27, %28, %c2, %c0_28] : memref<1x1x1x18x18x128xbf16, #tpu.memory_space<vmem>>, vector<1x1x1x8x16x128xbf16>
      %30 = vector.shape_cast %29 : vector<1x1x1x8x16x128xbf16> to vector<8x16x128xbf16>
      %31 = vector.shape_cast %30 : vector<8x16x128xbf16> to vector<128x128xbf16>
      %c0_29 = arith.constant 0 : index
      %c256 = arith.constant 256 : index
      %32 = vector.load %arg7[%c0_29, %c256] : memref<128x1152xbf16, #tpu.memory_space<vmem>>, vector<128x128xbf16>
      tpu.vector_store %arg7[%c0_29, %c256], %31 {strides = array<i32>} : memref<128x1152xbf16, #tpu.memory_space<vmem>>, vector<128x128xbf16>,
      %c1_i32 = arith.constant 1 : i32
      %33 = arith.addi %14, %c1_i32 : i32
      %c0_30 = arith.constant 0 : index
      %c0_31 = arith.constant 0 : index
      %c0_32 = arith.constant 0 : index
      %34 = arith.index_cast %33 : i32 to index
      %c0_33 = arith.constant 0 : index
      %c0_34 = arith.constant 0 : index
      %35 = vector.load %arg3[%c0_30, %c0_31, %c0_32, %34, %c0_33, %c0_34] : memref<1x1x1x18x18x128xbf16, #tpu.memory_space<vmem>>, vector<1x1x1x8x16x128xbf16>
      %36 = vector.shape_cast %35 : vector<1x1x1x8x16x128xbf16> to vector<8x16x128xbf16>
      %37 = vector.shape_cast %36 : vector<8x16x128xbf16> to vector<128x128xbf16>
      %c0_35 = arith.constant 0 : index
      %c384 = arith.constant 384 : index
      %38 = vector.load %arg7[%c0_35, %c384] : memref<128x1152xbf16, #tpu.memory_space<vmem>>, vector<128x128xbf16>
      tpu.vector_store %arg7[%c0_35, %c384], %37 {strides = array<i32>} : memref<128x1152xbf16, #tpu.memory_space<vmem>>, vector<128x128xbf16>,
      %c1_i32_36 = arith.constant 1 : i32
      %39 = arith.addi %14, %c1_i32_36 : i32
      %c0_37 = arith.constant 0 : index
      %c0_38 = arith.constant 0 : index
      %c0_39 = arith.constant 0 : index
      %40 = arith.index_cast %39 : i32 to index
      %c1_40 = arith.constant 1 : index
      %c0_41 = arith.constant 0 : index
      %41 = vector.load %arg3[%c0_37, %c0_38, %c0_39, %40, %c1_40, %c0_41] : memref<1x1x1x18x18x128xbf16, #tpu.memory_space<vmem>>, vector<1x1x1x8x16x128xbf16>
      %42 = vector.shape_cast %41 : vector<1x1x1x8x16x128xbf16> to vector<8x16x128xbf16>
      %43 = vector.shape_cast %42 : vector<8x16x128xbf16> to vector<128x128xbf16>
      %c0_42 = arith.constant 0 : index
      %c512 = arith.constant 512 : index
      %44 = vector.load %arg7[%c0_42, %c512] : memref<128x1152xbf16, #tpu.memory_space<vmem>>, vector<128x128xbf16>
      tpu.vector_store %arg7[%c0_42, %c512], %43 {strides = array<i32>} : memref<128x1152xbf16, #tpu.memory_space<vmem>>, vector<128x128xbf16>,
      %c1_i32_43 = arith.constant 1 : i32
      %45 = arith.addi %14, %c1_i32_43 : i32
      %c0_44 = arith.constant 0 : index
      %c0_45 = arith.constant 0 : index
      %c0_46 = arith.constant 0 : index
      %46 = arith.index_cast %45 : i32 to index
      %c2_47 = arith.constant 2 : index
      %c0_48 = arith.constant 0 : index
      %47 = vector.load %arg3[%c0_44, %c0_45, %c0_46, %46, %c2_47, %c0_48] : memref<1x1x1x18x18x128xbf16, #tpu.memory_space<vmem>>, vector<1x1x1x8x16x128xbf16>
      %48 = vector.shape_cast %47 : vector<1x1x1x8x16x128xbf16> to vector<8x16x128xbf16>
      %49 = vector.shape_cast %48 : vector<8x16x128xbf16> to vector<128x128xbf16>
      %c0_49 = arith.constant 0 : index
      %c640 = arith.constant 640 : index
      %50 = vector.load %arg7[%c0_49, %c640] : memref<128x1152xbf16, #tpu.memory_space<vmem>>, vector<128x128xbf16>
      tpu.vector_store %arg7[%c0_49, %c640], %49 {strides = array<i32>} : memref<128x1152xbf16, #tpu.memory_space<vmem>>, vector<128x128xbf16>,
      %c2_i32 = arith.constant 2 : i32
      %51 = arith.addi %14, %c2_i32 : i32
      %c0_50 = arith.constant 0 : index
      %c0_51 = arith.constant 0 : index
      %c0_52 = arith.constant 0 : index
      %52 = arith.index_cast %51 : i32 to index
      %c0_53 = arith.constant 0 : index
      %c0_54 = arith.constant 0 : index
      %53 = vector.load %arg3[%c0_50, %c0_51, %c0_52, %52, %c0_53, %c0_54] : memref<1x1x1x18x18x128xbf16, #tpu.memory_space<vmem>>, vector<1x1x1x8x16x128xbf16>
      %54 = vector.shape_cast %53 : vector<1x1x1x8x16x128xbf16> to vector<8x16x128xbf16>
      %55 = vector.shape_cast %54 : vector<8x16x128xbf16> to vector<128x128xbf16>
      %c0_55 = arith.constant 0 : index
      %c768 = arith.constant 768 : index
      %56 = vector.load %arg7[%c0_55, %c768] : memref<128x1152xbf16, #tpu.memory_space<vmem>>, vector<128x128xbf16>
      tpu.vector_store %arg7[%c0_55, %c768], %55 {strides = array<i32>} : memref<128x1152xbf16, #tpu.memory_space<vmem>>, vector<128x128xbf16>,
      %c2_i32_56 = arith.constant 2 : i32
      %57 = arith.addi %14, %c2_i32_56 : i32
      %c0_57 = arith.constant 0 : index
      %c0_58 = arith.constant 0 : index
      %c0_59 = arith.constant 0 : index
      %58 = arith.index_cast %57 : i32 to index
      %c1_60 = arith.constant 1 : index
      %c0_61 = arith.constant 0 : index
      %59 = vector.load %arg3[%c0_57, %c0_58, %c0_59, %58, %c1_60, %c0_61] : memref<1x1x1x18x18x128xbf16, #tpu.memory_space<vmem>>, vector<1x1x1x8x16x128xbf16>
      %60 = vector.shape_cast %59 : vector<1x1x1x8x16x128xbf16> to vector<8x16x128xbf16>
      %61 = vector.shape_cast %60 : vector<8x16x128xbf16> to vector<128x128xbf16>
      %c0_62 = arith.constant 0 : index
      %c896 = arith.constant 896 : index
      %62 = vector.load %arg7[%c0_62, %c896] : memref<128x1152xbf16, #tpu.memory_space<vmem>>, vector<128x128xbf16>
      tpu.vector_store %arg7[%c0_62, %c896], %61 {strides = array<i32>} : memref<128x1152xbf16, #tpu.memory_space<vmem>>, vector<128x128xbf16>,
      %c2_i32_63 = arith.constant 2 : i32
      %63 = arith.addi %14, %c2_i32_63 : i32
      %c0_64 = arith.constant 0 : index
      %c0_65 = arith.constant 0 : index
      %c0_66 = arith.constant 0 : index
      %64 = arith.index_cast %63 : i32 to index
      %c2_67 = arith.constant 2 : index
      %c0_68 = arith.constant 0 : index
      %65 = vector.load %arg3[%c0_64, %c0_65, %c0_66, %64, %c2_67, %c0_68] : memref<1x1x1x18x18x128xbf16, #tpu.memory_space<vmem>>, vector<1x1x1x8x16x128xbf16>
      %66 = vector.shape_cast %65 : vector<1x1x1x8x16x128xbf16> to vector<8x16x128xbf16>
      %67 = vector.shape_cast %66 : vector<8x16x128xbf16> to vector<128x128xbf16>
      %c0_69 = arith.constant 0 : index
      %c1024 = arith.constant 1024 : index
      %68 = vector.load %arg7[%c0_69, %c1024] : memref<128x1152xbf16, #tpu.memory_space<vmem>>, vector<128x128xbf16>
      tpu.vector_store %arg7[%c0_69, %c1024], %67 {strides = array<i32>} : memref<128x1152xbf16, #tpu.memory_space<vmem>>, vector<128x128xbf16>,
    } else {
    }
    %c0 = arith.constant 0 : index
    %c0_1 = arith.constant 0 : index
    %3 = vector.load %arg7[%c0, %c0_1] : memref<128x1152xbf16, #tpu.memory_space<vmem>>, vector<128x1152xbf16>
    %c0_2 = arith.constant 0 : index
    %c0_3 = arith.constant 0 : index
    %4 = vector.load %arg4[%c0_2, %c0_3] : memref<1152x128xbf16, #tpu.memory_space<vmem>>, vector<1152x128xbf16>
    %cst = arith.constant dense<0.000000e+00> : vector<128x128xf32>
    %5 = tpu.matmul %3, %4, %cst {dimension_numbers = #tpu.dot_dimension_numbers<[1], [0], [0], [1], [0, 0, 1, 1], [], []>} : vector<128x1152xbf16>, vector<1152x128xbf16>, vector<128x128xf32> -> vector<128x128xf32>
    %c0_4 = arith.constant 0 : index
    %c0_5 = arith.constant 0 : index
    %6 = vector.load %arg5[%c0_4, %c0_5] : memref<1x128xf32, #tpu.memory_space<vmem>>, vector<1x128xf32>
    %7 = vector.broadcast %6 : vector<1x128xf32> to vector<128x128xf32>
    %8 = arith.addf %5, %7 : vector<128x128xf32>
    %cst_6 = arith.constant 0.000000e+00 : f32
    %9 = vector.broadcast %cst_6 : f32 to vector<128x128xf32>
    %10 = arith.maximumf %8, %9 : vector<128x128xf32>
    %11 = vector.shape_cast %10 : vector<128x128xf32> to vector<1x128x128xf32>
    %12 = arith.truncf %11 : vector<1x128x128xf32> to vector<1x128x128xbf16>
    %c0_7 = arith.constant 0 : index
    %c0_8 = arith.constant 0 : index
    %c0_9 = arith.constant 0 : index
    %13 = vector.load %arg6[%c0_7, %c0_8, %c0_9] : memref<1x128x128xbf16, #tpu.memory_space<vmem>>, vector<1x128x128xbf16>
    tpu.vector_store %arg6[%c0_7, %c0_8, %c0_9], %12 {strides = array<i32>} : memref<1x128x128xbf16, #tpu.memory_space<vmem>>, vector<1x128x128xbf16>,
    return
  }
  func.func @transform_0(%arg0: i32, %arg1: i32, %arg2: i32) -> (i32, i32, i32, i32, i32, i32) {
    %c0_i32 = arith.constant 0 : i32
    %c0_i32_0 = arith.constant 0 : i32
    %c0_i32_1 = arith.constant 0 : i32
    %c0_i32_2 = arith.constant 0 : i32
    %c0_i32_3 = arith.constant 0 : i32
    %c0_i32_4 = arith.constant 0 : i32
    return %arg0, %c0_i32, %c0_i32_0, %c0_i32_1, %c0_i32_2, %c0_i32_3 : i32, i32, i32, i32, i32, i32
  }
  func.func @transform_1(%arg0: i32, %arg1: i32, %arg2: i32) -> (i32, i32) {
    %c0_i32 = arith.constant 0 : i32
    %c0_i32_0 = arith.constant 0 : i32
    return %c0_i32, %arg2 : i32, i32
  }
  func.func @transform_2(%arg0: i32, %arg1: i32, %arg2: i32) -> (i32, i32) {
    %c0_i32 = arith.constant 0 : i32
    %c0_i32_0 = arith.constant 0 : i32
    return %c0_i32, %arg2 : i32, i32
  }
  func.func @transform_3(%arg0: i32, %arg1: i32, %arg2: i32) -> (i32, i32, i32) {
    %c0_i32 = arith.constant 0 : i32
    return %arg0, %arg1, %arg2 : i32, i32, i32
  }
}

module attributes {stable_mosaic.version = 11 : i64} {
  func.func @kernel(%arg0: i32, %arg1: memref<256x128xbf16, #tpu.memory_space<vmem>>, %arg2: memref<256x128xbf16, #tpu.memory_space<vmem>>, %arg3: memref<128x128xbf16, #tpu.memory_space<vmem>>, %arg4: memref<128x128xbf16, #tpu.memory_space<vmem>>, %arg5: memref<1x128xf32, #tpu.memory_space<vmem>>, %arg6: memref<256x128xf32, #tpu.memory_space<vmem>>) attributes {dimension_semantics = [#tpu.dimension_semantics<parallel>], iteration_bounds = array<i64: 2>, scalar_prefetch = 0 : i64, scratch_operands = 0 : i64, tpu.core_type = #tpu.core_type<tc>, window_params = [{transform_indices = @transform_0, window_bounds = array<i64: 256, 128>}, {transform_indices = @transform_1, window_bounds = array<i64: 256, 128>}, {pipeline_mode = #tpu.pipeline_mode<synchronous>, transform_indices = @transform_2, window_bounds = array<i64: 128, 128>}, {pipeline_mode = #tpu.pipeline_mode<synchronous>, transform_indices = @transform_3, window_bounds = array<i64: 128, 128>}, {pipeline_mode = #tpu.pipeline_mode<synchronous>, transform_indices = @transform_4, window_bounds = array<i64: 1, 128>}, {transform_indices = @transform_5, window_bounds = array<i64: 256, 128>}]} {
    %c0 = arith.constant 0 : index
    %c0_0 = arith.constant 0 : index
    %0 = vector.load %arg1[%c0, %c0_0] : memref<256x128xbf16, #tpu.memory_space<vmem>>, vector<256x128xbf16>
    %c0_1 = arith.constant 0 : index
    %c0_2 = arith.constant 0 : index
    %1 = vector.load %arg3[%c0_1, %c0_2] : memref<128x128xbf16, #tpu.memory_space<vmem>>, vector<128x128xbf16>
    %cst = arith.constant dense<0.000000e+00> : vector<256x128xf32>
    %2 = tpu.matmul %0, %1, %cst {dimension_numbers = #tpu.dot_dimension_numbers<[1], [0], [0], [1], [0, 0, 1, 1], [], []>} : vector<256x128xbf16>, vector<128x128xbf16>, vector<256x128xf32> -> vector<256x128xf32>
    %c0_3 = arith.constant 0 : index
    %c0_4 = arith.constant 0 : index
    %3 = vector.load %arg2[%c0_3, %c0_4] : memref<256x128xbf16, #tpu.memory_space<vmem>>, vector<256x128xbf16>
    %c0_5 = arith.constant 0 : index
    %c0_6 = arith.constant 0 : index
    %4 = vector.load %arg4[%c0_5, %c0_6] : memref<128x128xbf16, #tpu.memory_space<vmem>>, vector<128x128xbf16>
    %cst_7 = arith.constant dense<0.000000e+00> : vector<256x128xf32>
    %5 = tpu.matmul %3, %4, %cst_7 {dimension_numbers = #tpu.dot_dimension_numbers<[1], [0], [0], [1], [0, 0, 1, 1], [], []>} : vector<256x128xbf16>, vector<128x128xbf16>, vector<256x128xf32> -> vector<256x128xf32>
    %6 = arith.addf %2, %5 : vector<256x128xf32>
    %c0_8 = arith.constant 0 : index
    %c0_9 = arith.constant 0 : index
    %7 = vector.load %arg5[%c0_8, %c0_9] : memref<1x128xf32, #tpu.memory_space<vmem>>, vector<1x128xf32>
    %8 = vector.broadcast %7 : vector<1x128xf32> to vector<256x128xf32>
    %9 = arith.addf %6, %8 : vector<256x128xf32>
    %cst_10 = arith.constant 0.000000e+00 : f32
    %10 = vector.broadcast %cst_10 : f32 to vector<256x128xf32>
    %11 = arith.maximumf %9, %10 : vector<256x128xf32>
    %c0_11 = arith.constant 0 : index
    %c0_12 = arith.constant 0 : index
    %12 = vector.load %arg6[%c0_11, %c0_12] : memref<256x128xf32, #tpu.memory_space<vmem>>, vector<256x128xf32>
    tpu.vector_store %arg6[%c0_11, %c0_12], %11 {strides = array<i32>} : memref<256x128xf32, #tpu.memory_space<vmem>>, vector<256x128xf32>,
    return
  }
  func.func @transform_0(%arg0: i32) -> (i32, i32) {
    %c0_i32 = arith.constant 0 : i32
    %c0_i32_0 = arith.constant 0 : i32
    return %arg0, %c0_i32 : i32, i32
  }
  func.func @transform_1(%arg0: i32) -> (i32, i32) {
    %c0_i32 = arith.constant 0 : i32
    %c0_i32_0 = arith.constant 0 : i32
    return %arg0, %c0_i32 : i32, i32
  }
  func.func @transform_2(%arg0: i32) -> (i32, i32) {
    %c0_i32 = arith.constant 0 : i32
    %c0_i32_0 = arith.constant 0 : i32
    %c0_i32_1 = arith.constant 0 : i32
    return %c0_i32, %c0_i32_0 : i32, i32
  }
  func.func @transform_3(%arg0: i32) -> (i32, i32) {
    %c0_i32 = arith.constant 0 : i32
    %c0_i32_0 = arith.constant 0 : i32
    %c0_i32_1 = arith.constant 0 : i32
    return %c0_i32, %c0_i32_0 : i32, i32
  }
  func.func @transform_4(%arg0: i32) -> (i32, i32) {
    %c0_i32 = arith.constant 0 : i32
    %c0_i32_0 = arith.constant 0 : i32
    %c0_i32_1 = arith.constant 0 : i32
    return %c0_i32, %c0_i32_0 : i32, i32
  }
  func.func @transform_5(%arg0: i32) -> (i32, i32) {
    %c0_i32 = arith.constant 0 : i32
    %c0_i32_0 = arith.constant 0 : i32
    return %arg0, %c0_i32 : i32, i32
  }
}

</mosaic_0001>

<bundles_post_ra>
// kernel: bottleneck_forward.3
= control target key start
LH: loop header
LB: loop body
LE: loop exit
PB: predicated region body
PF: predicated region fallthrough
CT: control target
= control target key end

     0   :  { %s1126_s12 = smov 0   ;;  %s1247_s0 = inlined_call_operand.vmem [shape: bf16[512,128], index: 0, kind: input, shape index: {}]   ;;  %s1248_s1 = inlined_call_operand.vmem [shape: bf16[128,128], index: 1, kind: input, shape index: {}]   ;;  %s1249_s2 = inlined_call_operand.vmem [shape: f32[1,128], index: 2, kind: input, shape index: {}]   ;;  %s1250_s3 = inlined_call_operand.vmem [shape: bf16[512,128], index: 3, kind: output, shape index: {}]  }
   0x1 LB: > { %s783_s13 = sadd.s32 4294967295, %s1104_s12   ;;  %p787_p0 = scmp.ge.s32.totalorder %s1104_s12, 1  ;;  %s1104_s12 = sphi %s1126_s12, %s13_s12  }
   0x2   : > { %p138_p1 = scmp.lt.s32.totalorder %s1104_s12, 3 }
   0x4   : > { %p139_p2 = pnand %p787_p0, %p138_p1 }
   0x5   : > { %v1074_v0 = vld [vmem:[%s1248_s1] sm:$0xff] (!%p139_p2)   ;;  %s788_s16 = sshll.u32 (!%p139_p2), %s783_s13, 5  ;;  %v1075_v1 = vld [vmem:[%s1248_s1 + $0x8] sm:$0xff] (!%p139_p2)   ;;  %v1076_v2 = vld [vmem:[%s1248_s1 + $0x10] sm:$0xff] (!%p139_p2)  }
   0x6   : > { %142 = sbr.rel (%p139_p2) target bundleno = 284 (0x11c), region = 32  ;;  %p163_p3 = scmp.lt.s32.totalorder (!%p139_p2), %s788_s16, 63  ;;  %1002 = vmatprep.subr.bf16.mxu0 (!%p139_p2), %v1074_v0  ;;  %1050 = vmatprep.subr.bf16.mxu1 (!%p139_p2), %v1074_v0  ;;  %v1077_v3 = vld [vmem:[%s1248_s1 + $0x18] sm:$0xff] (!%p139_p2)   ;;  %v1078_v6 = vld [vmem:[%s1248_s1 + $0x20] sm:$0xff] (!%p139_p2)   ;;  %v1079_v7 = vld [vmem:[%s1248_s1 + $0x28] sm:$0xff] (!%p139_p2)  }
   0x7   : > { %1003 = vmatpush3.bf16.msra.mxu0 (!%p139_p2), %v1074_v0  ;;  %1058 = vmatpush3.bf16.msra.mxu1 (!%p139_p2), %v1074_v0  ;;  %v1080_v8 = vld [vmem:[%s1248_s1 + $0x30] sm:$0xff] (!%p139_p2)   ;;  %v1081_v9 = vld [vmem:[%s1248_s1 + $0x38] sm:$0xff] (!%p139_p2)   ;;  %v1187_v24 = vld [vmem:[%s1249_s2] ss:$0 sm:$0xff] (!%p139_p2) }
   0x8   : > { %1004 = vmatprep.subr.bf16.mxu0 (!%p139_p2), %v1075_v1  ;;  %1051 = vmatprep.subr.bf16.mxu1 (!%p139_p2), %v1075_v1 }
   0xb   : > { %1005 = vmatpush3.bf16.msra.mxu0 (!%p139_p2), %v1075_v1  ;;  %1059 = vmatpush3.bf16.msra.mxu1 (!%p139_p2), %v1075_v1 }
   0xc   : > { %1006 = vmatprep.subr.bf16.mxu0 (!%p139_p2), %v1076_v2  ;;  %1052 = vmatprep.subr.bf16.mxu1 (!%p139_p2), %v1076_v2 }
   0xd   : > { %s1252_s16 = smov (!%p163_p3, %s788_s16), 63 }
   0xe   : > { %s789_s21 = sshll.u32 %s1252_s16, 2 }
   0xf   : > { %s1151_s24 = scalar_lea.vmem %s1247_s0, %s789_s21  ;;  %1007 = vmatpush3.bf16.msra.mxu0 %v1076_v2  ;;  %1060 = vmatpush3.bf16.msra.mxu1 %v1076_v2  ;;  %s1202_s13 = scalar_lea.vmem %s1250_s3, %s789_s21 }
  0x10   : > { %v1082_v4 = vld [vmem:[%s1151_s24] sm:$0xff]   ;;  %1008 = vmatprep.subr.bf16.mxu0 %v1077_v3  ;;  %1053 = vmatprep.subr.bf16.mxu1 %v1077_v3  ;;  %v1084_v10 = vld [vmem:[%s1151_s24 + $0x8] sm:$0xff]   ;;  %v1086_v12 = vld [vmem:[%s1151_s24 + $0x10] sm:$0xff]  }
  0x11   : > { %v1083_v5 = vld [vmem:[%s1151_s24 + $0x40] sm:$0xff]   ;;  %1018 = vmatprep.mubr.bf16.mxu0 %v1082_v4  ;;  %v1085_v11 = vld [vmem:[%s1151_s24 + $0x48] sm:$0xff]   ;;  %v1087_v13 = vld [vmem:[%s1151_s24 + $0x50] sm:$0xff]  }
  0x12   : > { %1034 = vmatprep.mubr.bf16.mxu1 %v1083_v5  ;;  %v1088_v14 = vld [vmem:[%s1151_s24 + $0x18] sm:$0xff]   ;;  %v1090_v16 = vld [vmem:[%s1151_s24 + $0x20] sm:$0xff]   ;;  %v1092_v18 = vld [vmem:[%s1151_s24 + $0x28] sm:$0xff]  }
  0x13   : > { %1009 = vmatpush3.bf16.msra.mxu0 %v1077_v3  ;;  %1061 = vmatpush3.bf16.msra.mxu1 %v1077_v3  ;;  %v1089_v15 = vld [vmem:[%s1151_s24 + $0x58] sm:$0xff]   ;;  %v1091_v17 = vld [vmem:[%s1151_s24 + $0x60] sm:$0xff]   ;;  %v1093_v19 = vld [vmem:[%s1151_s24 + $0x68] sm:$0xff]  }
  0x14   : > { %1010 = vmatprep.subr.bf16.mxu0 %v1078_v6  ;;  %1054 = vmatprep.subr.bf16.mxu1 %v1078_v6  ;;  %v1094_v20 = vld [vmem:[%s1151_s24 + $0x30] sm:$0xff]   ;;  %v1096_v22 = vld [vmem:[%s1151_s24 + $0x38] sm:$0xff]  }
  0x15   : > { %v1095_v21 = vld [vmem:[%s1151_s24 + $0x70] sm:$0xff]   ;;  %v1097_v23 = vld [vmem:[%s1151_s24 + $0x78] sm:$0xff]  }
  0x17   : > { %1011 = vmatpush3.bf16.msra.mxu0 %v1078_v6  ;;  %1062 = vmatpush3.bf16.msra.mxu1 %v1078_v6 }
  0x18   : > { %1012 = vmatprep.subr.bf16.mxu0 %v1079_v7  ;;  %1055 = vmatprep.subr.bf16.mxu1 %v1079_v7 }
  0x1b   : > { %1013 = vmatpush3.bf16.msra.mxu0 %v1079_v7  ;;  %1063 = vmatpush3.bf16.msra.mxu1 %v1079_v7 }
  0x1c   : > { %1014 = vmatprep.subr.bf16.mxu0 %v1080_v8  ;;  %1056 = vmatprep.subr.bf16.mxu1 %v1080_v8 }
  0x1f   : > { %1015 = vmatpush3.bf16.msra.mxu0 %v1080_v8  ;;  %1064 = vmatpush3.bf16.msra.mxu1 %v1080_v8 }
  0x20   : > { %1016 = vmatprep.subr.bf16.mxu0 %v1081_v9  ;;  %1057 = vmatprep.subr.bf16.mxu1 %v1081_v9 }
  0x23   : > { %1017 = vmatpush3.bf16.msra.mxu0 %v1081_v9  ;;  %1065 = vmatpush3.bf16.msra.mxu1 %v1081_v9 }
  0x26   : > { %1019 = vmatmul.mubr.bf16.vlgmr.msra.gmra.mrb[0].mxu0 %v1084_v10  ;;  %1035 = vmatmul.mubr.bf16.vlgmr.msra.gmra.mrb[0].mxu1 %v1085_v11 }
  0x27   : > { %1022 = vmatprep.mubr.bf16.mxu0 %v1086_v12  ;;  %1038 = vmatprep.mubr.bf16.mxu1 %v1087_v13 }
  0x2e   : > { %1023 = vmatmul.mubr.bf16.gmra.mrb[4].mxu0 %v1088_v14  ;;  %1039 = vmatmul.mubr.bf16.gmra.mrb[4].mxu1 %v1089_v15 }
  0x2f   : > { %1026 = vmatprep.mubr.bf16.mxu0 %v1090_v16  ;;  %1042 = vmatprep.mubr.bf16.mxu1 %v1091_v17 }
  0x36   : > { %1027 = vmatmul.mubr.bf16.gmra.mrb[8].mxu0 %v1092_v18  ;;  %1043 = vmatmul.mubr.bf16.gmra.mrb[8].mxu1 %v1093_v19 }
  0x37   : > { %1030 = vmatprep.mubr.bf16.mxu0 %v1094_v20  ;;  %1046 = vmatprep.mubr.bf16.mxu1 %v1095_v21 }
  0x3e   : > { %1031 = vmatmul.mubr.bf16.gmra.mrb[12].mxu0 %v1096_v22  ;;  %1047 = vmatmul.mubr.bf16.gmra.mrb[12].mxu1 %v1097_v23 }
  0xf9   : > { %v1020_v25 = vpop.f32.mrb[0].mxu0  ;;  %v1036_v26 = vpop.f32.mrb[0].mxu1 }
  0xfa   : > { %v417_v27 = vadd.f32 %v1020_v25, %v1187_v24  ;;  %v481_v28 = vadd.f32 %v1036_v26, %v1187_v24  ;;  %v408_v29 = vpop.f32.mrb[1].mxu0  ;;  %v472_v30 = vpop.f32.mrb[1].mxu1 }
  0xfb   : > { %v409_v31 = vadd.f32 %v1187_v24, %v408_v29  ;;  %v473_v32 = vadd.f32 %v1187_v24, %v472_v30  ;;  %v1021_v33 = vpop.f32.mrb[2].mxu0  ;;  %v1037_v34 = vpop.f32.mrb[2].mxu1 }
  0xfc   : > { %v420_v35 = vadd.f32 %v1021_v33, %v1187_v24  ;;  %v484_v36 = vadd.f32 %v1037_v34, %v1187_v24  ;;  %v411_v37 = vpop.f32.mrb[3].mxu0  ;;  %v475_v38 = vpop.f32.mrb[3].mxu1  ;;  %v537_v41 = vmax.f32 %v417_v27, 0.0  ;;  %v553_v42 = vmax.f32 %v481_v28, 0.0 }
  0xfd   : > { %v412_v39 = vadd.f32 %v1187_v24, %v411_v37  ;;  %v476_v40 = vadd.f32 %v1187_v24, %v475_v38  ;;  %v535_v45 = vmax.f32 %v409_v31, 0.0  ;;  %v551_v46 = vmax.f32 %v473_v32, 0.0 }
  0xfe   : > { %v538_v43 = vmax.f32 %v420_v35, 0.0  ;;  %v554_v44 = vmax.f32 %v484_v36, 0.0 }
  0xff   : > { %v536_v47 = vmax.f32 %v412_v39, 0.0  ;;  %v552_v48 = vmax.f32 %v476_v40, 0.0 }
 0x100   : > { %v891_v49 = vpack.c.bf16 %v538_v43, %v537_v41  ;;  %v931_v50 = vpack.c.bf16 %v554_v44, %v553_v42 }
 0x101   : > { %v886_v51 = vpack.c.bf16 %v536_v47, %v535_v45  ;;  %v926_v52 = vpack.c.bf16 %v552_v48, %v551_v46  ;;  %v1024_v53 = vpop.f32.mrb[4].mxu0  ;;  %v1040_v54 = vpop.f32.mrb[4].mxu1 }
 0x102   : > { %963 = vst [vmem:[%s1202_s13 + $0x8] sm:$0xff] %v891_v49   ;;  %971 = vst [vmem:[%s1202_s13 + $0x48] sm:$0xff] %v931_v50   ;;  %v433_v55 = vadd.f32 %v1024_v53, %v1187_v24  ;;  %v497_v56 = vadd.f32 %v1040_v54, %v1187_v24  ;;  %v424_v57 = vpop.f32.mrb[5].mxu0  ;;  %v488_v58 = vpop.f32.mrb[5].mxu1 }
 0x103   : > { %887 = vst [vmem:[%s1202_s13] sm:$0xff] %v886_v51   ;;  %970 = vst [vmem:[%s1202_s13 + $0x40] sm:$0xff] %v926_v52   ;;  %v425_v59 = vadd.f32 %v1187_v24, %v424_v57  ;;  %v489_v60 = vadd.f32 %v1187_v24, %v488_v58  ;;  %v1025_v61 = vpop.f32.mrb[6].mxu0  ;;  %v1041_v62 = vpop.f32.mrb[6].mxu1 }
 0x104   : > { %v436_v63 = vadd.f32 %v1025_v61, %v1187_v24  ;;  %v500_v0 = vadd.f32 %v1041_v62, %v1187_v24  ;;  %v427_v1 = vpop.f32.mrb[7].mxu0  ;;  %v491_v2 = vpop.f32.mrb[7].mxu1  ;;  %v541_v5 = vmax.f32 %v433_v55, 0.0  ;;  %v557_v6 = vmax.f32 %v497_v56, 0.0 }
 0x105   : > { %v428_v3 = vadd.f32 %v1187_v24, %v427_v1  ;;  %v492_v4 = vadd.f32 %v1187_v24, %v491_v2  ;;  %v539_v9 = vmax.f32 %v425_v59, 0.0  ;;  %v555_v10 = vmax.f32 %v489_v60, 0.0 }
 0x106   : > { %v542_v7 = vmax.f32 %v436_v63, 0.0  ;;  %v558_v8 = vmax.f32 %v500_v0, 0.0 }
 0x107   : > { %v540_v11 = vmax.f32 %v428_v3, 0.0  ;;  %v556_v12 = vmax.f32 %v492_v4, 0.0 }
 0x108   : > { %v901_v13 = vpack.c.bf16 %v542_v7, %v541_v5  ;;  %v941_v14 = vpack.c.bf16 %v558_v8, %v557_v6 }
 0x109   : > { %v896_v15 = vpack.c.bf16 %v540_v11, %v539_v9  ;;  %v936_v16 = vpack.c.bf16 %v556_v12, %v555_v10  ;;  %v1028_v17 = vpop.f32.mrb[8].mxu0  ;;  %v1044_v18 = vpop.f32.mrb[8].mxu1 }
 0x10a   : > { %965 = vst [vmem:[%s1202_s13 + $0x18] sm:$0xff] %v901_v13   ;;  %973 = vst [vmem:[%s1202_s13 + $0x58] sm:$0xff] %v941_v14   ;;  %v449_v19 = vadd.f32 %v1028_v17, %v1187_v24  ;;  %v513_v20 = vadd.f32 %v1044_v18, %v1187_v24  ;;  %v440_v21 = vpop.f32.mrb[9].mxu0  ;;  %v504_v22 = vpop.f32.mrb[9].mxu1 }
 0x10b   : > { %964 = vst [vmem:[%s1202_s13 + $0x10] sm:$0xff] %v896_v15   ;;  %972 = vst [vmem:[%s1202_s13 + $0x50] sm:$0xff] %v936_v16   ;;  %v441_v23 = vadd.f32 %v1187_v24, %v440_v21  ;;  %v505_v25 = vadd.f32 %v1187_v24, %v504_v22  ;;  %v1029_v26 = vpop.f32.mrb[10].mxu0  ;;  %v1045_v27 = vpop.f32.mrb[10].mxu1 }
 0x10c   : > { %v452_v28 = vadd.f32 %v1029_v26, %v1187_v24  ;;  %v516_v29 = vadd.f32 %v1045_v27, %v1187_v24  ;;  %v443_v30 = vpop.f32.mrb[11].mxu0  ;;  %v507_v31 = vpop.f32.mrb[11].mxu1  ;;  %v545_v34 = vmax.f32 %v449_v19, 0.0  ;;  %v561_v35 = vmax.f32 %v513_v20, 0.0 }
 0x10d   : > { %v444_v32 = vadd.f32 %v1187_v24, %v443_v30  ;;  %v508_v33 = vadd.f32 %v1187_v24, %v507_v31  ;;  %v543_v38 = vmax.f32 %v441_v23, 0.0  ;;  %v559_v39 = vmax.f32 %v505_v25, 0.0 }
 0x10e   : > { %v546_v36 = vmax.f32 %v452_v28, 0.0  ;;  %v562_v37 = vmax.f32 %v516_v29, 0.0 }
 0x10f   : > { %v544_v40 = vmax.f32 %v444_v32, 0.0  ;;  %v560_v41 = vmax.f32 %v508_v33, 0.0 }
 0x110   : > { %v911_v42 = vpack.c.bf16 %v546_v36, %v545_v34  ;;  %v951_v43 = vpack.c.bf16 %v562_v37, %v561_v35 }
 0x111   : > { %v906_v44 = vpack.c.bf16 %v544_v40, %v543_v38  ;;  %v946_v45 = vpack.c.bf16 %v560_v41, %v559_v39  ;;  %v1032_v46 = vpop.f32.mrb[12].mxu0  ;;  %v1048_v47 = vpop.f32.mrb[12].mxu1 }
 0x112   : > { %967 = vst [vmem:[%s1202_s13 + $0x28] sm:$0xff] %v911_v42   ;;  %975 = vst [vmem:[%s1202_s13 + $0x68] sm:$0xff] %v951_v43   ;;  %v465_v48 = vadd.f32 %v1032_v46, %v1187_v24  ;;  %v529_v49 = vadd.f32 %v1048_v47, %v1187_v24  ;;  %v456_v50 = vpop.f32.mrb[13].mxu0  ;;  %v520_v51 = vpop.f32.mrb[13].mxu1 }
 0x113   : > { %966 = vst [vmem:[%s1202_s13 + $0x20] sm:$0xff] %v906_v44   ;;  %974 = vst [vmem:[%s1202_s13 + $0x60] sm:$0xff] %v946_v45   ;;  %v457_v52 = vadd.f32 %v1187_v24, %v456_v50  ;;  %v521_v53 = vadd.f32 %v1187_v24, %v520_v51  ;;  %v1033_v54 = vpop.f32.mrb[14].mxu0  ;;  %v1049_v55 = vpop.f32.mrb[14].mxu1 }
 0x114   : > { %v468_v56 = vadd.f32 %v1033_v54, %v1187_v24  ;;  %v532_v57 = vadd.f32 %v1049_v55, %v1187_v24  ;;  %v459_v58 = vpop.f32.mrb[15].mxu0  ;;  %v523_v59 = vpop.f32.mrb[15].mxu1  ;;  %v549_v62 = vmax.f32 %v465_v48, 0.0  ;;  %v565_v63 = vmax.f32 %v529_v49, 0.0 }
 0x115   : > { %v460_v60 = vadd.f32 %v1187_v24, %v459_v58  ;;  %v524_v61 = vadd.f32 %v1187_v24, %v523_v59  ;;  %v547_v2 = vmax.f32 %v457_v52, 0.0  ;;  %v563_v3 = vmax.f32 %v521_v53, 0.0 }
 0x116   : > { %v550_v0 = vmax.f32 %v468_v56, 0.0  ;;  %v566_v1 = vmax.f32 %v532_v57, 0.0 }
 0x117   : > { %v548_v4 = vmax.f32 %v460_v60, 0.0  ;;  %v564_v5 = vmax.f32 %v524_v61, 0.0 }
 0x118   : > { %v921_v6 = vpack.c.bf16 %v550_v0, %v549_v62  ;;  %v961_v7 = vpack.c.bf16 %v566_v1, %v565_v63 }
 0x119   : > { %v916_v8 = vpack.c.bf16 %v548_v4, %v547_v2  ;;  %v956_v9 = vpack.c.bf16 %v564_v5, %v563_v3 }
 0x11a   : > { %969 = vst [vmem:[%s1202_s13 + $0x38] sm:$0xff] %v921_v6   ;;  %977 = vst [vmem:[%s1202_s13 + $0x78] sm:$0xff] %v961_v7  }
 0x11b   : > { %968 = vst [vmem:[%s1202_s13 + $0x30] sm:$0xff] %v916_v8   ;;  %976 = vst [vmem:[%s1202_s13 + $0x70] sm:$0xff] %v956_v9  }
 0x11c PF: > { %s13_s12 = sadd.s32 1, %s1104_s12  }
 0x11d   : > { %p10_p4 = scmp.ge.s32.totalorder %s13_s12, 4  }
 0x11f   :  { %12 = sbr.rel (!%p10_p4) target bundleno = 1 (0x1), region = 62 }

// kernel: bottleneck_forward.5
= control target key start
LH: loop header
LB: loop body
LE: loop exit
PB: predicated region body
PF: predicated region fallthrough
CT: control target
= control target key end

     0   :  { %s1460_s18 = smov 0   ;;  %s1639_s0 = inlined_call_operand.vmem [shape: bf16[512,128], index: 0, kind: input, shape index: {}]   ;;  %s1640_s1 = inlined_call_operand.vmem [shape: bf16[512,128], index: 1, kind: input, shape index: {}]   ;;  %s1641_s2 = inlined_call_operand.vmem [shape: bf16[128,128], index: 2, kind: input, shape index: {}]   ;;  %s1642_s3 = inlined_call_operand.vmem [shape: bf16[128,128], index: 3, kind: input, shape index: {}]   ;;  %s1643_s4 = inlined_call_operand.vmem [shape: f32[1,128], index: 4, kind: input, shape index: {}]   ;;  %s1644_s5 = inlined_call_operand.vmem [shape: f32[512,128], index: 5, kind: output, shape index: {}]  }
   0x1 LB: > { %s1128_s19 = sadd.s32 4294967295, %s1428_s18   ;;  %p1132_p0 = scmp.ge.s32.totalorder %s1428_s18, 1  ;;  %s1428_s18 = sphi %s1460_s18, %s15_s18  }
   0x2   : > { %p199_p1 = scmp.lt.s32.totalorder %s1428_s18, 3 }
   0x4   : > { %p200_p2 = pnand %p1132_p0, %p199_p1 }
   0x5   : > { %v1374_v0 = vld [vmem:[%s1642_s3] sm:$0xff] (!%p200_p2)   ;;  %s1133_s22 = sshll.u32 (!%p200_p2), %s1128_s19, 5  ;;  %v1376_v2 = vld [vmem:[%s1642_s3 + $0x8] sm:$0xff] (!%p200_p2)   ;;  %v1378_v4 = vld [vmem:[%s1642_s3 + $0x10] sm:$0xff] (!%p200_p2)  }
   0x6   : > { %203 = sbr.rel (%p200_p2) target bundleno = 317 (0x13d), region = 40  ;;  %v1375_v1 = vld [vmem:[%s1641_s2] sm:$0xff] (!%p200_p2)   ;;  %1238 = vmatprep.subr.bf16.mxu1 (!%p200_p2), %v1374_v0  ;;  %p233_p3 = scmp.lt.s32.totalorder (!%p200_p2), %s1133_s22, 63  ;;  %v1377_v3 = vld [vmem:[%s1641_s2 + $0x8] sm:$0xff] (!%p200_p2)   ;;  %v1379_v5 = vld [vmem:[%s1641_s2 + $0x10] sm:$0xff] (!%p200_p2)  }
   0x7   : > { %1286 = vmatprep.subr.bf16.mxu0 (!%p200_p2), %v1375_v1  ;;  %1239 = vmatpush3.bf16.msra.mxu1 (!%p200_p2), %v1374_v0  ;;  %v1380_v6 = vld [vmem:[%s1642_s3 + $0x18] sm:$0xff] (!%p200_p2)   ;;  %v1382_v8 = vld [vmem:[%s1642_s3 + $0x20] sm:$0xff] (!%p200_p2)   ;;  %v1384_v10 = vld [vmem:[%s1642_s3 + $0x28] sm:$0xff] (!%p200_p2)  }
   0x8   : > { %1287 = vmatpush3.bf16.msra.mxu0 (!%p200_p2), %v1375_v1  ;;  %1240 = vmatprep.subr.bf16.mxu1 (!%p200_p2), %v1376_v2  ;;  %v1381_v7 = vld [vmem:[%s1641_s2 + $0x18] sm:$0xff] (!%p200_p2)   ;;  %v1383_v9 = vld [vmem:[%s1641_s2 + $0x20] sm:$0xff] (!%p200_p2)   ;;  %v1385_v11 = vld [vmem:[%s1641_s2 + $0x28] sm:$0xff] (!%p200_p2)  }
   0x9   : > { %1288 = vmatprep.subr.bf16.mxu0 (!%p200_p2), %v1377_v3  ;;  %v1386_v14 = vld [vmem:[%s1642_s3 + $0x30] sm:$0xff] (!%p200_p2)   ;;  %v1388_v16 = vld [vmem:[%s1642_s3 + $0x38] sm:$0xff] (!%p200_p2)   ;;  %v1564_v50 = vld [vmem:[%s1643_s4] ss:$0 sm:$0xff] (!%p200_p2) }
   0xa   : > { %v1387_v15 = vld [vmem:[%s1641_s2 + $0x30] sm:$0xff] (!%p200_p2)   ;;  %v1389_v17 = vld [vmem:[%s1641_s2 + $0x38] sm:$0xff] (!%p200_p2)  }
   0xb   : > { %1241 = vmatpush3.bf16.msra.mxu1 (!%p200_p2), %v1376_v2 }
   0xc   : > { %1289 = vmatpush3.bf16.msra.mxu0 (!%p200_p2), %v1377_v3  ;;  %1242 = vmatprep.subr.bf16.mxu1 (!%p200_p2), %v1378_v4 }
   0xd   : > { %s1646_s22 = smov (!%p233_p3, %s1133_s22), 63  ;;  %1290 = vmatprep.subr.bf16.mxu0 %v1379_v5 }
   0xe   : > { %s1134_s12 = sshll.u32 %s1646_s22, 2  ;;  %s1138_s14 = sshll.u32 %s1646_s22, 3 }
   0xf   : > { %1243 = vmatpush3.bf16.msra.mxu1 %v1378_v4  ;;  %s1504_s20 = scalar_lea.vmem %s1640_s1, %s1134_s12  ;;  %s1512_s26 = scalar_lea.vmem %s1639_s0, %s1134_s12 }
  0x10   : > { %1291 = vmatpush3.bf16.msra.mxu0 %v1379_v5  ;;  %1244 = vmatprep.subr.bf16.mxu1 %v1380_v6  ;;  %v1390_v12 = vld [vmem:[%s1504_s20] sm:$0xff]   ;;  %v1392_v18 = vld [vmem:[%s1504_s20 + $0x8] sm:$0xff]   ;;  %v1394_v20 = vld [vmem:[%s1504_s20 + $0x10] sm:$0xff]   ;;  %s1571_s17 = scalar_lea.vmem %s1644_s5, %s1138_s14 }
  0x11   : > { %1292 = vmatprep.subr.bf16.mxu0 %v1381_v7  ;;  %v1391_v13 = vld [vmem:[%s1512_s26] sm:$0xff]   ;;  %1254 = vmatprep.mubr.bf16.mxu1 %v1390_v12  ;;  %v1393_v19 = vld [vmem:[%s1512_s26 + $0x8] sm:$0xff]   ;;  %v1395_v21 = vld [vmem:[%s1512_s26 + $0x10] sm:$0xff]  }
  0x12   : > { %1302 = vmatprep.mubr.bf16.mxu0 %v1391_v13  ;;  %v1396_v22 = vld [vmem:[%s1504_s20 + $0x18] sm:$0xff]   ;;  %v1398_v24 = vld [vmem:[%s1504_s20 + $0x20] sm:$0xff]   ;;  %v1400_v26 = vld [vmem:[%s1504_s20 + $0x28] sm:$0xff]  }
  0x13   : > { %1245 = vmatpush3.bf16.msra.mxu1 %v1380_v6  ;;  %v1397_v23 = vld [vmem:[%s1512_s26 + $0x18] sm:$0xff]   ;;  %v1399_v25 = vld [vmem:[%s1512_s26 + $0x20] sm:$0xff]   ;;  %v1401_v27 = vld [vmem:[%s1512_s26 + $0x28] sm:$0xff]  }
  0x14   : > { %1293 = vmatpush3.bf16.msra.mxu0 %v1381_v7  ;;  %1246 = vmatprep.subr.bf16.mxu1 %v1382_v8  ;;  %v1402_v28 = vld [vmem:[%s1504_s20 + $0x30] sm:$0xff]   ;;  %v1404_v30 = vld [vmem:[%s1504_s20 + $0x38] sm:$0xff]   ;;  %v1406_v32 = vld [vmem:[%s1504_s20 + $0x40] sm:$0xff]  }
  0x15   : > { %1294 = vmatprep.subr.bf16.mxu0 %v1383_v9  ;;  %v1403_v29 = vld [vmem:[%s1512_s26 + $0x30] sm:$0xff]   ;;  %v1405_v31 = vld [vmem:[%s1512_s26 + $0x38] sm:$0xff]   ;;  %v1407_v33 = vld [vmem:[%s1512_s26 + $0x40] sm:$0xff]  }
  0x16   : > { %v1408_v34 = vld [vmem:[%s1504_s20 + $0x48] sm:$0xff]   ;;  %v1410_v36 = vld [vmem:[%s1504_s20 + $0x50] sm:$0xff]   ;;  %v1412_v38 = vld [vmem:[%s1504_s20 + $0x58] sm:$0xff]  }
  0x17   : > { %1247 = vmatpush3.bf16.msra.mxu1 %v1382_v8  ;;  %v1409_v35 = vld [vmem:[%s1512_s26 + $0x48] sm:$0xff]   ;;  %v1411_v37 = vld [vmem:[%s1512_s26 + $0x50] sm:$0xff]   ;;  %v1413_v39 = vld [vmem:[%s1512_s26 + $0x58] sm:$0xff]  }
  0x18   : > { %1295 = vmatpush3.bf16.msra.mxu0 %v1383_v9  ;;  %1248 = vmatprep.subr.bf16.mxu1 %v1384_v10  ;;  %v1414_v40 = vld [vmem:[%s1504_s20 + $0x60] sm:$0xff]   ;;  %v1416_v42 = vld [vmem:[%s1504_s20 + $0x68] sm:$0xff]   ;;  %v1418_v44 = vld [vmem:[%s1504_s20 + $0x70] sm:$0xff]  }
  0x19   : > { %1296 = vmatprep.subr.bf16.mxu0 %v1385_v11  ;;  %v1415_v41 = vld [vmem:[%s1512_s26 + $0x60] sm:$0xff]   ;;  %v1417_v43 = vld [vmem:[%s1512_s26 + $0x68] sm:$0xff]   ;;  %v1419_v45 = vld [vmem:[%s1512_s26 + $0x70] sm:$0xff]  }
  0x1a   : > { %v1420_v46 = vld [vmem:[%s1504_s20 + $0x78] sm:$0xff]  }
  0x1b   : > { %1249 = vmatpush3.bf16.msra.mxu1 %v1384_v10  ;;  %v1421_v47 = vld [vmem:[%s1512_s26 + $0x78] sm:$0xff]  }
  0x1c   : > { %1297 = vmatpush3.bf16.msra.mxu0 %v1385_v11  ;;  %1250 = vmatprep.subr.bf16.mxu1 %v1386_v14 }
  0x1d   : > { %1298 = vmatprep.subr.bf16.mxu0 %v1387_v15 }
  0x1f   : > { %1251 = vmatpush3.bf16.msra.mxu1 %v1386_v14 }
  0x20   : > { %1299 = vmatpush3.bf16.msra.mxu0 %v1387_v15  ;;  %1252 = vmatprep.subr.bf16.mxu1 %v1388_v16 }
  0x21   : > { %1300 = vmatprep.subr.bf16.mxu0 %v1389_v17 }
  0x23   : > { %1253 = vmatpush3.bf16.msra.mxu1 %v1388_v16 }
  0x24   : > { %1301 = vmatpush3.bf16.msra.mxu0 %v1389_v17 }
  0x26   : > { %1255 = vmatmul.mubr.bf16.vlgmr.msra.gmra.mrb[0].mxu1 %v1392_v18 }
  0x27   : > { %1303 = vmatmul.mubr.bf16.vlgmr.msra.gmra.mrb[0].mxu0 %v1393_v19  ;;  %1258 = vmatprep.mubr.bf16.mxu1 %v1394_v20 }
  0x28   : > { %1306 = vmatprep.mubr.bf16.mxu0 %v1395_v21 }
  0x2e   : > { %1259 = vmatmul.mubr.bf16.gmra.mrb[4].mxu1 %v1396_v22 }
  0x2f   : > { %1307 = vmatmul.mubr.bf16.gmra.mrb[4].mxu0 %v1397_v23  ;;  %1262 = vmatprep.mubr.bf16.mxu1 %v1398_v24 }
  0x30   : > { %1310 = vmatprep.mubr.bf16.mxu0 %v1399_v25 }
  0x36   : > { %1263 = vmatmul.mubr.bf16.gmra.mrb[8].mxu1 %v1400_v26 }
  0x37   : > { %1311 = vmatmul.mubr.bf16.gmra.mrb[8].mxu0 %v1401_v27  ;;  %1266 = vmatprep.mubr.bf16.mxu1 %v1402_v28 }
  0x38   : > { %1314 = vmatprep.mubr.bf16.mxu0 %v1403_v29 }
  0x3e   : > { %1267 = vmatmul.mubr.bf16.gmra.mrb[12].mxu1 %v1404_v30 }
  0x3f   : > { %1315 = vmatmul.mubr.bf16.gmra.mrb[12].mxu0 %v1405_v31  ;;  %1270 = vmatprep.mubr.bf16.mxu1 %v1406_v32 }
  0x40   : > { %1318 = vmatprep.mubr.bf16.mxu0 %v1407_v33 }
  0x46   : > { %1271 = vmatmul.mubr.bf16.gmra.mrb[16].mxu1 %v1408_v34 }
  0x47   : > { %1319 = vmatmul.mubr.bf16.gmra.mrb[16].mxu0 %v1409_v35  ;;  %1274 = vmatprep.mubr.bf16.mxu1 %v1410_v36 }
  0x48   : > { %1322 = vmatprep.mubr.bf16.mxu0 %v1411_v37 }
  0x4e   : > { %1275 = vmatmul.mubr.bf16.gmra.mrb[20].mxu1 %v1412_v38 }
  0x4f   : > { %1323 = vmatmul.mubr.bf16.gmra.mrb[20].mxu0 %v1413_v39  ;;  %1278 = vmatprep.mubr.bf16.mxu1 %v1414_v40 }
  0x50   : > { %1326 = vmatprep.mubr.bf16.mxu0 %v1415_v41 }
  0x56   : > { %1279 = vmatmul.mubr.bf16.gmra.mrb[24].mxu1 %v1416_v42 }
  0x57   : > { %1327 = vmatmul.mubr.bf16.gmra.mrb[24].mxu0 %v1417_v43  ;;  %1282 = vmatprep.mubr.bf16.mxu1 %v1418_v44 }
  0x58   : > { %1330 = vmatprep.mubr.bf16.mxu0 %v1419_v45 }
  0x5e   : > { %1283 = vmatmul.mubr.bf16.gmra.mrb[28].mxu1 %v1420_v46 }
  0x5f   : > { %1331 = vmatmul.mubr.bf16.gmra.mrb[28].mxu0 %v1421_v47 }
  0xf9   : > { %v1256_v48 = vpop.f32.mrb[0].mxu1 }
  0xfa   : > { %v1304_v49 = vpop.f32.mrb[0].mxu0  ;;  %v525_v51 = vpop.f32.mrb[1].mxu1 }
  0xfb   : > { %v839_v52 = vadd.f32 %v1304_v49, %v1256_v48  ;;  %v830_v53 = vpop.f32.mrb[1].mxu0  ;;  %v1257_v54 = vpop.f32.mrb[2].mxu1 }
  0xfc   : > { %v831_v55 = vadd.f32 %v830_v53, %v525_v51  ;;  %v1305_v56 = vpop.f32.mrb[2].mxu0  ;;  %v528_v57 = vpop.f32.mrb[3].mxu1 }
  0xfd   : > { %v966_v58 = vadd.f32 %v1564_v50, %v839_v52  ;;  %v842_v59 = vadd.f32 %v1305_v56, %v1257_v54  ;;  %v833_v60 = vpop.f32.mrb[3].mxu0 }
  0xfe   : > { %v964_v61 = vadd.f32 %v1564_v50, %v831_v55  ;;  %v834_v62 = vadd.f32 %v833_v60, %v528_v57 }
  0xff   : > { %v998_v63 = vmax.f32 %v966_v58, 0.0  ;;  %v967_v0 = vadd.f32 %v1564_v50, %v842_v59 }
 0x100   : > { %v996_v1 = vmax.f32 %v964_v61, 0.0  ;;  %v965_v2 = vadd.f32 %v1564_v50, %v834_v62 }
 0x101   : > { %1030 = vst [vmem:[%s1571_s17 + $0x10] sm:$0xff] %v998_v63  ;;  %v999_v3 = vmax.f32 %v967_v0, 0.0  ;;  %v1260_v4 = vpop.f32.mrb[4].mxu1 }
 0x102   : > { %1028 = vst [vmem:[%s1571_s17] sm:$0xff] %v996_v1  ;;  %v997_v5 = vmax.f32 %v965_v2, 0.0  ;;  %v1308_v6 = vpop.f32.mrb[4].mxu0  ;;  %v541_v7 = vpop.f32.mrb[5].mxu1 }
 0x103   : > { %1031 = vst [vmem:[%s1571_s17 + $0x18] sm:$0xff] %v999_v3  ;;  %v855_v8 = vadd.f32 %v1308_v6, %v1260_v4  ;;  %v846_v9 = vpop.f32.mrb[5].mxu0  ;;  %v1261_v10 = vpop.f32.mrb[6].mxu1 }
 0x104   : > { %1029 = vst [vmem:[%s1571_s17 + $0x8] sm:$0xff] %v997_v5  ;;  %v847_v11 = vadd.f32 %v846_v9, %v541_v7  ;;  %v1309_v12 = vpop.f32.mrb[6].mxu0  ;;  %v544_v13 = vpop.f32.mrb[7].mxu1 }
 0x105   : > { %v970_v14 = vadd.f32 %v1564_v50, %v855_v8  ;;  %v858_v15 = vadd.f32 %v1309_v12, %v1261_v10  ;;  %v849_v16 = vpop.f32.mrb[7].mxu0 }
 0x106   : > { %v968_v17 = vadd.f32 %v1564_v50, %v847_v11  ;;  %v850_v18 = vadd.f32 %v849_v16, %v544_v13 }
 0x107   : > { %v1002_v19 = vmax.f32 %v970_v14, 0.0  ;;  %v971_v20 = vadd.f32 %v1564_v50, %v858_v15 }
 0x108   : > { %v1000_v21 = vmax.f32 %v968_v17, 0.0  ;;  %v969_v22 = vadd.f32 %v1564_v50, %v850_v18 }
 0x109   : > { %1034 = vst [vmem:[%s1571_s17 + $0x30] sm:$0xff] %v1002_v19  ;;  %v1003_v23 = vmax.f32 %v971_v20, 0.0  ;;  %v1264_v24 = vpop.f32.mrb[8].mxu1 }
 0x10a   : > { %1032 = vst [vmem:[%s1571_s17 + $0x20] sm:$0xff] %v1000_v21  ;;  %v1001_v25 = vmax.f32 %v969_v22, 0.0  ;;  %v1312_v26 = vpop.f32.mrb[8].mxu0  ;;  %v557_v27 = vpop.f32.mrb[9].mxu1 }
 0x10b   : > { %1035 = vst [vmem:[%s1571_s17 + $0x38] sm:$0xff] %v1003_v23  ;;  %v871_v28 = vadd.f32 %v1312_v26, %v1264_v24  ;;  %v862_v29 = vpop.f32.mrb[9].mxu0  ;;  %v1265_v30 = vpop.f32.mrb[10].mxu1 }
 0x10c   : > { %1033 = vst [vmem:[%s1571_s17 + $0x28] sm:$0xff] %v1001_v25  ;;  %v863_v31 = vadd.f32 %v862_v29, %v557_v27  ;;  %v1313_v32 = vpop.f32.mrb[10].mxu0  ;;  %v560_v33 = vpop.f32.mrb[11].mxu1 }
 0x10d   : > { %v974_v34 = vadd.f32 %v1564_v50, %v871_v28  ;;  %v874_v35 = vadd.f32 %v1313_v32, %v1265_v30  ;;  %v865_v36 = vpop.f32.mrb[11].mxu0 }
 0x10e   : > { %v972_v37 = vadd.f32 %v1564_v50, %v863_v31  ;;  %v866_v38 = vadd.f32 %v865_v36, %v560_v33 }
 0x10f   : > { %v1006_v39 = vmax.f32 %v974_v34, 0.0  ;;  %v975_v40 = vadd.f32 %v1564_v50, %v874_v35 }
 0x110   : > { %v1004_v41 = vmax.f32 %v972_v37, 0.0  ;;  %v973_v42 = vadd.f32 %v1564_v50, %v866_v38 }
 0x111   : > { %1038 = vst [vmem:[%s1571_s17 + $0x50] sm:$0xff] %v1006_v39  ;;  %v1007_v43 = vmax.f32 %v975_v40, 0.0  ;;  %v1268_v44 = vpop.f32.mrb[12].mxu1 }
 0x112   : > { %1036 = vst [vmem:[%s1571_s17 + $0x40] sm:$0xff] %v1004_v41  ;;  %v1005_v45 = vmax.f32 %v973_v42, 0.0  ;;  %v1316_v46 = vpop.f32.mrb[12].mxu0  ;;  %v573_v47 = vpop.f32.mrb[13].mxu1 }
 0x113   : > { %1039 = vst [vmem:[%s1571_s17 + $0x58] sm:$0xff] %v1007_v43  ;;  %v887_v48 = vadd.f32 %v1316_v46, %v1268_v44  ;;  %v878_v49 = vpop.f32.mrb[13].mxu0  ;;  %v1269_v51 = vpop.f32.mrb[14].mxu1 }
 0x114   : > { %1037 = vst [vmem:[%s1571_s17 + $0x48] sm:$0xff] %v1005_v45  ;;  %v879_v52 = vadd.f32 %v878_v49, %v573_v47  ;;  %v1317_v53 = vpop.f32.mrb[14].mxu0  ;;  %v576_v54 = vpop.f32.mrb[15].mxu1 }
 0x115   : > { %v978_v55 = vadd.f32 %v1564_v50, %v887_v48  ;;  %v890_v56 = vadd.f32 %v1317_v53, %v1269_v51  ;;  %v881_v57 = vpop.f32.mrb[15].mxu0 }
 0x116   : > { %v976_v58 = vadd.f32 %v1564_v50, %v879_v52  ;;  %v882_v59 = vadd.f32 %v881_v57, %v576_v54 }
 0x117   : > { %v1010_v60 = vmax.f32 %v978_v55, 0.0  ;;  %v979_v61 = vadd.f32 %v1564_v50, %v890_v56 }
 0x118   : > { %v1008_v62 = vmax.f32 %v976_v58, 0.0  ;;  %v977_v63 = vadd.f32 %v1564_v50, %v882_v59 }
 0x119   : > { %1042 = vst [vmem:[%s1571_s17 + $0x70] sm:$0xff] %v1010_v60  ;;  %v1011_v0 = vmax.f32 %v979_v61, 0.0  ;;  %v1272_v1 = vpop.f32.mrb[16].mxu1 }
 0x11a   : > { %1040 = vst [vmem:[%s1571_s17 + $0x60] sm:$0xff] %v1008_v62  ;;  %v1009_v2 = vmax.f32 %v977_v63, 0.0  ;;  %v1320_v3 = vpop.f32.mrb[16].mxu0  ;;  %v589_v4 = vpop.f32.mrb[17].mxu1 }
 0x11b   : > { %1043 = vst [vmem:[%s1571_s17 + $0x78] sm:$0xff] %v1011_v0  ;;  %v903_v5 = vadd.f32 %v1320_v3, %v1272_v1  ;;  %v894_v6 = vpop.f32.mrb[17].mxu0  ;;  %v1273_v7 = vpop.f32.mrb[18].mxu1 }
 0x11c   : > { %1041 = vst [vmem:[%s1571_s17 + $0x68] sm:$0xff] %v1009_v2  ;;  %v895_v8 = vadd.f32 %v894_v6, %v589_v4  ;;  %v1321_v9 = vpop.f32.mrb[18].mxu0  ;;  %v592_v10 = vpop.f32.mrb[19].mxu1 }
 0x11d   : > { %v982_v11 = vadd.f32 %v1564_v50, %v903_v5  ;;  %v906_v12 = vadd.f32 %v1321_v9, %v1273_v7  ;;  %v897_v13 = vpop.f32.mrb[19].mxu0 }
 0x11e   : > { %v980_v14 = vadd.f32 %v1564_v50, %v895_v8  ;;  %v898_v15 = vadd.f32 %v897_v13, %v592_v10 }
 0x11f   : > { %v1014_v16 = vmax.f32 %v982_v11, 0.0  ;;  %v983_v17 = vadd.f32 %v1564_v50, %v906_v12 }
 0x120   : > { %v1012_v18 = vmax.f32 %v980_v14, 0.0  ;;  %v981_v19 = vadd.f32 %v1564_v50, %v898_v15 }
 0x121   : > { %1046 = vst [vmem:[%s1571_s17 + $0x90] sm:$0xff] %v1014_v16  ;;  %v1015_v20 = vmax.f32 %v983_v17, 0.0  ;;  %v1276_v21 = vpop.f32.mrb[20].mxu1 }
 0x122   : > { %1044 = vst [vmem:[%s1571_s17 + $0x80] sm:$0xff] %v1012_v18  ;;  %v1013_v22 = vmax.f32 %v981_v19, 0.0  ;;  %v1324_v23 = vpop.f32.mrb[20].mxu0  ;;  %v605_v24 = vpop.f32.mrb[21].mxu1 }
 0x123   : > { %1047 = vst [vmem:[%s1571_s17 + $0x98] sm:$0xff] %v1015_v20  ;;  %v919_v25 = vadd.f32 %v1324_v23, %v1276_v21  ;;  %v910_v26 = vpop.f32.mrb[21].mxu0  ;;  %v1277_v27 = vpop.f32.mrb[22].mxu1 }
 0x124   : > { %1045 = vst [vmem:[%s1571_s17 + $0x88] sm:$0xff] %v1013_v22  ;;  %v911_v28 = vadd.f32 %v910_v26, %v605_v24  ;;  %v1325_v29 = vpop.f32.mrb[22].mxu0  ;;  %v608_v30 = vpop.f32.mrb[23].mxu1 }
 0x125   : > { %v986_v31 = vadd.f32 %v1564_v50, %v919_v25  ;;  %v922_v32 = vadd.f32 %v1325_v29, %v1277_v27  ;;  %v913_v33 = vpop.f32.mrb[23].mxu0 }
 0x126   : > { %v984_v34 = vadd.f32 %v1564_v50, %v911_v28  ;;  %v914_v35 = vadd.f32 %v913_v33, %v608_v30 }
 0x127   : > { %v1018_v36 = vmax.f32 %v986_v31, 0.0  ;;  %v987_v37 = vadd.f32 %v1564_v50, %v922_v32 }
 0x128   : > { %v1016_v38 = vmax.f32 %v984_v34, 0.0  ;;  %v985_v39 = vadd.f32 %v1564_v50, %v914_v35 }
 0x129   : > { %1050 = vst [vmem:[%s1571_s17 + $0xb0] sm:$0xff] %v1018_v36  ;;  %v1019_v40 = vmax.f32 %v987_v37, 0.0  ;;  %v1280_v41 = vpop.f32.mrb[24].mxu1 }
 0x12a   : > { %1048 = vst [vmem:[%s1571_s17 + $0xa0] sm:$0xff] %v1016_v38  ;;  %v1017_v42 = vmax.f32 %v985_v39, 0.0  ;;  %v1328_v43 = vpop.f32.mrb[24].mxu0  ;;  %v621_v44 = vpop.f32.mrb[25].mxu1 }
 0x12b   : > { %1051 = vst [vmem:[%s1571_s17 + $0xb8] sm:$0xff] %v1019_v40  ;;  %v935_v45 = vadd.f32 %v1328_v43, %v1280_v41  ;;  %v926_v46 = vpop.f32.mrb[25].mxu0  ;;  %v1281_v47 = vpop.f32.mrb[26].mxu1 }
 0x12c   : > { %1049 = vst [vmem:[%s1571_s17 + $0xa8] sm:$0xff] %v1017_v42  ;;  %v927_v48 = vadd.f32 %v926_v46, %v621_v44  ;;  %v1329_v49 = vpop.f32.mrb[26].mxu0  ;;  %v624_v51 = vpop.f32.mrb[27].mxu1 }
 0x12d   : > { %v990_v52 = vadd.f32 %v1564_v50, %v935_v45  ;;  %v938_v53 = vadd.f32 %v1329_v49, %v1281_v47  ;;  %v929_v54 = vpop.f32.mrb[27].mxu0 }
 0x12e   : > { %v988_v55 = vadd.f32 %v1564_v50, %v927_v48  ;;  %v930_v56 = vadd.f32 %v929_v54, %v624_v51 }
 0x12f   : > { %v1022_v57 = vmax.f32 %v990_v52, 0.0  ;;  %v991_v58 = vadd.f32 %v1564_v50, %v938_v53 }
 0x130   : > { %v1020_v59 = vmax.f32 %v988_v55, 0.0  ;;  %v989_v60 = vadd.f32 %v1564_v50, %v930_v56 }
 0x131   : > { %1054 = vst [vmem:[%s1571_s17 + $0xd0] sm:$0xff] %v1022_v57  ;;  %v1023_v61 = vmax.f32 %v991_v58, 0.0  ;;  %v1284_v62 = vpop.f32.mrb[28].mxu1 }
 0x132   : > { %1052 = vst [vmem:[%s1571_s17 + $0xc0] sm:$0xff] %v1020_v59  ;;  %v1021_v63 = vmax.f32 %v989_v60, 0.0  ;;  %v1332_v0 = vpop.f32.mrb[28].mxu0  ;;  %v637_v1 = vpop.f32.mrb[29].mxu1 }
 0x133   : > { %1055 = vst [vmem:[%s1571_s17 + $0xd8] sm:$0xff] %v1023_v61  ;;  %v951_v2 = vadd.f32 %v1332_v0, %v1284_v62  ;;  %v942_v3 = vpop.f32.mrb[29].mxu0  ;;  %v1285_v4 = vpop.f32.mrb[30].mxu1 }
 0x134   : > { %1053 = vst [vmem:[%s1571_s17 + $0xc8] sm:$0xff] %v1021_v63  ;;  %v943_v5 = vadd.f32 %v942_v3, %v637_v1  ;;  %v1333_v6 = vpop.f32.mrb[30].mxu0  ;;  %v640_v7 = vpop.f32.mrb[31].mxu1 }
 0x135   : > { %v994_v8 = vadd.f32 %v1564_v50, %v951_v2  ;;  %v954_v9 = vadd.f32 %v1333_v6, %v1285_v4  ;;  %v945_v10 = vpop.f32.mrb[31].mxu0 }
 0x136   : > { %v992_v11 = vadd.f32 %v1564_v50, %v943_v5  ;;  %v946_v12 = vadd.f32 %v945_v10, %v640_v7 }
 0x137   : > { %v1026_v13 = vmax.f32 %v994_v8, 0.0  ;;  %v995_v14 = vadd.f32 %v1564_v50, %v954_v9 }
 0x138   : > { %v1024_v15 = vmax.f32 %v992_v11, 0.0  ;;  %v993_v16 = vadd.f32 %v1564_v50, %v946_v12 }
 0x139   : > { %1058 = vst [vmem:[%s1571_s17 + $0xf0] sm:$0xff] %v1026_v13  ;;  %v1027_v17 = vmax.f32 %v995_v14, 0.0 }
 0x13a   : > { %1056 = vst [vmem:[%s1571_s17 + $0xe0] sm:$0xff] %v1024_v15  ;;  %v1025_v18 = vmax.f32 %v993_v16, 0.0 }
 0x13b   : > { %1059 = vst [vmem:[%s1571_s17 + $0xf8] sm:$0xff] %v1027_v17 }
 0x13c   : > { %1057 = vst [vmem:[%s1571_s17 + $0xe8] sm:$0xff] %v1025_v18 }
 0x13d PF: > { %s15_s18 = sadd.s32 1, %s1428_s18  }
 0x13e   : > { %p12_p4 = scmp.ge.s32.totalorder %s15_s18, 4  }
 0x140   :  { %14 = sbr.rel (!%p12_p4) target bundleno = 1 (0x1), region = 73 }

// kernel: bottleneck_forward.4
= control target key start
LH: loop header
LB: loop body
LE: loop exit
PB: predicated region body
PF: predicated region fallthrough
CT: control target
= control target key end

     0   :  { %s3963_s12 = smov 0   ;;  %s3965_s13 = smov 0   ;;  %s4752_s0 = inlined_call_operand.vmem [shape: bf16[2,1,1,18,18,128], index: 0, kind: input, shape index: {}]   ;;  %s4753_s1 = inlined_call_operand.vmem [shape: bf16[1152,128], index: 1, kind: input, shape index: {}]   ;;  %s4754_s2 = inlined_call_operand.vmem [shape: f32[1,128], index: 2, kind: input, shape index: {}]   ;;  %s4755_s3 = inlined_call_operand.vmem [shape: bf16[2,256,128], index: 3, kind: output, shape index: {}]  }
   0x1   :  { %s3967_s14 = smov 0   ;;  %s3969_s15 = smov 0  }
   0x2   :  { %s3971_s16 = smov 0  }
   0x3 LB: > { %s28_s17 = sadd.s32 1, %s3933_s14  ;;  %s32_s18 = sadd.s32 1, %s3937_s15  ;;  %s3941_s16 = sphi %s3971_s16, %s13_s16   ;;  %s3937_s15 = sphi %s3969_s15, %s4763_s15   ;;  %s3933_s14 = sphi %s3967_s14, %s4762_s14   ;;  %s3929_s13 = sphi %s3965_s13, %s4761_s13   ;;  %s3925_s12 = sphi %s3963_s12, %s4760_s12  }
   0x4   : > { %p30_p0 = scmp.ge.s32.totalorder %s28_s17, 2  ;;  %p3055_p1 = scmp.ge.s32.totalorder %s3941_s16, 1 }
   0x5   : > { %p177_p2 = scmp.lt.s32.totalorder %s3941_s16, 5 }
   0x6   : > { %s4765_s17 = smov (%p30_p0, %s28_s17), 0  ;;  %s4767_s18 = smov (!%p30_p0, %s32_s18), %s3937_s15 }
   0x7   : > { %p178_p3 = pnand %p3055_p1, %p177_p2  ;;  %p34_p4 = scmp.ge.s32.totalorder %s4767_s18, 2 }
   0x8   : > { %v3807_v0 = vld [vmem:[%s4753_s1 + $0x40] sm:$0xff] (!%p178_p3)   ;;  %v3811_v4 = vld [vmem:[%s4753_s1 + $0x48] sm:$0xff] (!%p178_p3)   ;;  %v3815_v8 = vld [vmem:[%s4753_s1 + $0x50] sm:$0xff] (!%p178_p3)   ;;  %p215_p5 = scmp.lt.s32.totalorder (!%p178_p3), %s3929_s13, 1  ;;  %s3382_s5 = smul.u32 (!%p178_p3), 96, %s3925_s12  ;;  %vm628_vm0 = vcmask (!%p178_p3), 1042432  }
   0x9   : > { %s4769_s18 = smov (%p34_p4, %s4767_s18), 0  ;;  %181 = sbr.rel (%p178_p3) target bundleno = 408 (0x198), region = 32 }
   0xa   : > { %v3808_v1 = vld [vmem:[%s4753_s1 + $0xc0] sm:$0xff] (!%p178_p3)   ;;  %3446 = vmatprep.subr.bf16.mxu0 (!%p178_p3), %v3807_v0  ;;  %v3812_v5 = vld [vmem:[%s4753_s1 + $0xc8] sm:$0xff] (!%p178_p3)   ;;  %v3816_v9 = vld [vmem:[%s4753_s1 + $0xd0] sm:$0xff] (!%p178_p3)   ;;  %vm629_vm1 = vcmask (!%p178_p3), 1046532   ;;  %vm345_vm2 = vsmask.f32 (!%p178_p3), 3328 }
   0xb   : > { %v3809_v2 = vld [vmem:[%s4753_s1] sm:$0xff] (!%p178_p3)   ;;  %3510 = vmatprep.subr.bf16.mxu1 (!%p178_p3), %v3808_v1  ;;  %v3813_v6 = vld [vmem:[%s4753_s1 + $0x8] sm:$0xff] (!%p178_p3)   ;;  %v3817_v10 = vld [vmem:[%s4753_s1 + $0x10] sm:$0xff] (!%p178_p3)   ;;  %vm346_vm3 = vsmask.f32 (!%p178_p3), 7440  ;;  %s3057_s7 = sshll.u32 (!%p178_p3), %s3925_s12, 4 }
   0xc   : > { %v3810_v3 = vld [vmem:[%s4753_s1 + $0x80] sm:$0xff] (!%p178_p3)   ;;  %3447 = vmatpush3.bf16.msra.mxu0 (!%p178_p3), %v3809_v2  ;;  %v3814_v7 = vld [vmem:[%s4753_s1 + $0x88] sm:$0xff] (!%p178_p3)   ;;  %v3818_v11 = vld [vmem:[%s4753_s1 + $0x90] sm:$0xff] (!%p178_p3)   ;;  %p230_p6 = scmp.lt.s32.totalorder (!%p178_p3), %s3057_s7, 31 }
   0xd   : > { %3511 = vmatpush3.bf16.msra.mxu1 (!%p178_p3), %v3810_v3  ;;  %3448 = vmatprep.subr.bf16.mxu0 (!%p178_p3), %v3811_v4  ;;  %v3819_v12 = vld [vmem:[%s4753_s1 + $0x58] sm:$0xff] (!%p178_p3)   ;;  %v3823_v16 = vld [vmem:[%s4753_s1 + $0x60] sm:$0xff] (!%p178_p3)   ;;  %v3827_v20 = vld [vmem:[%s4753_s1 + $0x68] sm:$0xff] (!%p178_p3)  }
   0xe   : > { %3512 = vmatprep.subr.bf16.mxu1 (!%p178_p3), %v3812_v5  ;;  %v3820_v13 = vld [vmem:[%s4753_s1 + $0xd8] sm:$0xff] (!%p178_p3)   ;;  %v3824_v17 = vld [vmem:[%s4753_s1 + $0xe0] sm:$0xff] (!%p178_p3)   ;;  %v3828_v21 = vld [vmem:[%s4753_s1 + $0xe8] sm:$0xff] (!%p178_p3)  }
   0xf   : > { %v3821_v14 = vld [vmem:[%s4753_s1 + $0x18] sm:$0xff] (!%p178_p3)   ;;  %v3825_v18 = vld [vmem:[%s4753_s1 + $0x20] sm:$0xff] (!%p178_p3)   ;;  %v3829_v22 = vld [vmem:[%s4753_s1 + $0x28] sm:$0xff] (!%p178_p3)  }
  0x10   : > { %3449 = vmatpush3.bf16.msra.mxu0 %v3813_v6  ;;  %v3822_v15 = vld [vmem:[%s4753_s1 + $0x98] sm:$0xff]   ;;  %s4771_s13 = smov (!%p215_p5, %s3929_s13), 1  ;;  %v3826_v19 = vld [vmem:[%s4753_s1 + $0xa0] sm:$0xff]   ;;  %v3830_v23 = vld [vmem:[%s4753_s1 + $0xa8] sm:$0xff]   ;;  %s4773_s7 = smov (!%p230_p6, %s3057_s7), 31 }
  0x11   : > { %3513 = vmatpush3.bf16.msra.mxu1 %v3814_v7  ;;  %3450 = vmatprep.subr.bf16.mxu0 %v3815_v8  ;;  %s3766_s25 = smul.u32 216, %s4771_s13  ;;  %v3831_v24 = vld [vmem:[%s4753_s1 + $0x70] sm:$0xff]   ;;  %v3835_v28 = vld [vmem:[%s4753_s1 + $0x78] sm:$0xff]   ;;  %vm4110_vm4 = vmor %vm628_vm0, %vm629_vm1  ;;  %s3058_s8 = sshll.u32 %s4771_s13, 5 }
  0x12   : > { %3514 = vmatprep.subr.bf16.mxu1 %v3816_v9  ;;  %v3832_v25 = vld [vmem:[%s4753_s1 + $0xf0] sm:$0xff]   ;;  %v3836_v29 = vld [vmem:[%s4753_s1 + $0xf8] sm:$0xff]   ;;  %vm4119_vm5 = vmor %vm345_vm2, %vm346_vm3  ;;  %s236_s12 = sadd.s32 %s3058_s8, %s4773_s7 }
  0x13   : > { %v3833_v26 = vld [vmem:[%s4753_s1 + $0x30] sm:$0xff]   ;;  %s219_s10 = scalar_lea.vmem %s4752_s0, %s3766_s25  ;;  %v3837_v30 = vld [vmem:[%s4753_s1 + $0x38] sm:$0xff]   ;;  %v3841_v56 = vld [vmem:[%s4753_s1 + $0x140] sm:$0xff]   ;;  %s3059_s9 = sshll.u32 %s236_s12, 2 }
  0x14   : > { %3451 = vmatpush3.bf16.msra.mxu0 %v3817_v10  ;;  %v3834_v27 = vld [vmem:[%s4753_s1 + $0xb0] sm:$0xff]   ;;  %s4096_s24 = scalar_lea.vmem %s219_s10, %s3382_s5  ;;  %v3838_v31 = vld [vmem:[%s4753_s1 + $0xb8] sm:$0xff]   ;;  %v3842_v58 = vld [vmem:[%s4753_s1 + $0x1c0] sm:$0xff]   ;;  %s4721_s11 = scalar_lea.vmem %s4755_s3, %s3059_s9 }
  0x15   : > { %3515 = vmatpush3.bf16.msra.mxu1 %v3818_v11  ;;  %3452 = vmatprep.subr.bf16.mxu0 %v3819_v12  ;;  %v321_v32 = vld [vmem:[%s4096_s24] sm:$0xf]  ;;  %v322_v33 = vld [vmem:[%s4096_s24 + $0x4] sm:$0xf]  ;;  %v323_v34 = vld [vmem:[%s4096_s24 + $0x8] sm:$0x1] }
  0x16   : > { %3516 = vmatprep.subr.bf16.mxu1 %v3820_v13  ;;  %v349_v35 = vshrl.u32 %v321_v32, 16  ;;  %v352_v36 = vshll.u32 %v321_v32, 16  ;;  %v358_v37 = vshll.u32 %v322_v33, 16  ;;  %v362_v38 = vshrl.u32 %v322_v33, 16  ;;  %v3839_v40 = vld [vmem:[%s4096_s24 + $0xc] sm:$0xff]   ;;  %v3840_v60 = vld [vmem:[%s4096_s24] sm:$0xff]  }
  0x17   : > { %v368_v39 = vshll.u32 %v323_v34, 16  ;;  %2463 = vmatprep.mubr.bf16.mxu1 %v3839_v40  ;;  %v580_v48 = vld [vmem:[%s4096_s24] sm:$0xe]  ;;  %v581_v49 = vld [vmem:[%s4096_s24 + $0x4] sm:$0xf]  ;;  %v3846_v32 = vld [vmem:[%s4096_s24 + $0xc] sm:$0xff]  }
  0x18   : > { %3453 = vmatpush3.bf16.msra.mxu0 %v3821_v14  ;;  %v351_v41 = vrot.slane %v349_v35, 4  ;;  %v354_v42 = vrot.slane %v352_v36, 5  ;;  %v360_v43 = vrot.slane %v358_v37, 5  ;;  %v364_v44 = vrot.slane %v362_v38, 4  ;;  %v582_v50 = vld [vmem:[%s4096_s24 + $0x8] sm:$0x1] }
  0x19   : > { %3517 = vmatpush3.bf16.msra.mxu1 %v3822_v15  ;;  %3454 = vmatprep.subr.bf16.mxu0 %v3823_v16  ;;  %v370_v45 = vrot.slane %v368_v39, 5  ;;  %v3079_v53 = vrot.slane %v580_v48, 9  ;;  %v633_v54 = vrot.slane %v581_v49, 5  ;;  %v636_v55 = vrot.slane %v582_v50, 5  ;;  %v3843_v0 = vld [vmem:[%s4753_s1 + $0x100] sm:$0xff]   ;;  %v3845_v14 = vld [vmem:[%s4096_s24 + $0x18] sm:$0xff]  }
  0x1a   : > { %3518 = vmatprep.subr.bf16.mxu1 %v3824_v17  ;;  %v355_v47 = vor.u32 %v354_v42, %v351_v41  ;;  %v365_v52 = vor.u32 %v364_v44, %v360_v43  ;;  %v3844_v3 = vld [vmem:[%s4753_s1 + $0x180] sm:$0xff]   ;;  %v324_v4 = vld [vmem:[%s4096_s24 + $0xc] sm:$0xf]  ;;  %v325_v7 = vld [vmem:[%s4096_s24 + $0x10] sm:$0xf] }
  0x1b   : > { %v634_v61 = vsel %vm4110_vm4, %v3079_v53, %v633_v54  ;;  %v635_v62 = vrot.slane %v633_v54, 4  ;;  %v326_v8 = vld [vmem:[%s4096_s24 + $0x14] sm:$0x1]  ;;  %v373_v9 = vshrl.u32 %v324_v4, 16  ;;  %v376_v10 = vshll.u32 %v324_v4, 16  ;;  %v3849_v36 = vld [vmem:[%s4753_s1 + $0x108] sm:$0xff]  }
  0x1c   : > { %3455 = vmatpush3.bf16.msra.mxu0 %v3825_v18  ;;  %v356_v57 = vrot.slane %v355_v47, 4  ;;  %v366_v59 = vrot.slane %v365_v52, 4  ;;  %v382_v11 = vshll.u32 %v325_v7, 16  ;;  %v386_v12 = vshrl.u32 %v325_v7, 16  ;;  %v3850_v39 = vld [vmem:[%s4753_s1 + $0x188] sm:$0xff]   ;;  %v3854_v4 = vld [vmem:[%s4753_s1 + $0x1d0] sm:$0xff]  }
  0x1d   : > { %3519 = vmatpush3.bf16.msra.mxu1 %v3826_v19  ;;  %3456 = vmatprep.subr.bf16.mxu0 %v3827_v20  ;;  %v637_v2 = vsel %vm4110_vm4, %v635_v62, %v636_v55  ;;  %v392_v13 = vshll.u32 %v326_v8, 16  ;;  %v375_v15 = vrot.slane %v373_v9, 4  ;;  %v378_v16 = vrot.slane %v376_v10, 5  ;;  %v327_v40 = vld [vmem:[%s4096_s24 + $0x18] sm:$0xf]  ;;  %v3851_v52 = vld [vmem:[%s4096_s24 + $0x24] sm:$0xff]  }
  0x1e   : > { %3520 = vmatprep.subr.bf16.mxu1 %v3828_v21  ;;  %v361_v63 = vsel %vm4119_vm5, %v356_v57, %v360_v43  ;;  %v371_v1 = vsel %vm4119_vm5, %v366_v59, %v370_v45  ;;  %v3087_v6 = vcombine.low %v634_v61, %v637_v2  ;;  %v384_v17 = vrot.slane %v382_v11, 5  ;;  %v583_v21 = vld [vmem:[%s4096_s24 + $0xc] sm:$0xe]  ;;  %v328_v43 = vld [vmem:[%s4096_s24 + $0x1c] sm:$0xf]  ;;  %v3853_v2 = vld [vmem:[%s4753_s1 + $0x150] sm:$0xff]  }
  0x1f   : > { %v3071_v5 = vcombine.low %v361_v63, %v371_v1  ;;  %v388_v18 = vrot.slane %v386_v12, 4  ;;  %v394_v19 = vrot.slane %v392_v13, 5  ;;  %v379_v20 = vor.u32 %v378_v16, %v375_v15  ;;  %v329_v44 = vld [vmem:[%s4096_s24 + $0x20] sm:$0x1]  ;;  %v586_v59 = vld [vmem:[%s4096_s24 + $0x18] sm:$0xe] }
  0x20   : > { %3457 = vmatpush3.bf16.msra.mxu0 %v3829_v22  ;;  %v584_v22 = vld [vmem:[%s4096_s24 + $0x10] sm:$0xf]  ;;  %v397_v45 = vshrl.u32 %v327_v40, 16  ;;  %v400_v47 = vshll.u32 %v327_v40, 16  ;;  %v406_v48 = vshll.u32 %v328_v43, 16  ;;  %v410_v49 = vshrl.u32 %v328_v43, 16 }
  0x21   : > { %3521 = vmatpush3.bf16.msra.mxu1 %v3830_v23  ;;  %3458 = vmatprep.subr.bf16.mxu0 %v3831_v24  ;;  %v585_v23 = vld [vmem:[%s4096_s24 + $0x14] sm:$0x1]  ;;  %v389_v24 = vor.u32 %v388_v18, %v384_v17  ;;  %v416_v50 = vshll.u32 %v329_v44, 16  ;;  %v588_v61 = vld [vmem:[%s4096_s24 + $0x20] sm:$0x1]  ;;  %v3081_v63 = vrot.slane %v586_v59, 9 }
  0x22   : > { %3522 = vmatprep.subr.bf16.mxu1 %v3832_v25  ;;  %2366 = vmatprep.mubr.bf16.mxu0 %v3071_v5  ;;  %v3080_v25 = vrot.slane %v583_v21, 9  ;;  %v399_v53 = vrot.slane %v397_v45, 4  ;;  %v402_v54 = vrot.slane %v400_v47, 5  ;;  %v408_v55 = vrot.slane %v406_v48, 5  ;;  %v3855_v10 = vld [vmem:[%s4753_s1 + $0x110] sm:$0xff]   ;;  %v3860_v40 = vld [vmem:[%s4753_s1 + $0x1d8] sm:$0xff]  }
  0x23   : > { %v418_v57 = vrot.slane %v416_v50, 5  ;;  %v650_v1 = vrot.slane %v588_v61, 5  ;;  %v3856_v13 = vld [vmem:[%s4753_s1 + $0x190] sm:$0xff]   ;;  %v332_v18 = vld [vmem:[%s4096_s24 + $0x2c] sm:$0x1]  ;;  %v3861_v47 = vld [vmem:[%s4753_s1 + $0x118] sm:$0xff]  }
  0x24   : > { %3459 = vmatpush3.bf16.msra.mxu0 %v3833_v26  ;;  %v640_v26 = vrot.slane %v584_v22, 5  ;;  %v3862_v50 = vld [vmem:[%s4753_s1 + $0x198] sm:$0xff]   ;;  %v3271_v51 = vld [vmem:[%s4096_s24 + $0x68] sm:$0x1] }
  0x25   : > { %3523 = vmatpush3.bf16.msra.mxu1 %v3834_v27  ;;  %3460 = vmatprep.subr.bf16.mxu0 %v3835_v28  ;;  %v643_v27 = vrot.slane %v585_v23, 5  ;;  %v3847_v28 = vld [vmem:[%s4753_s1 + $0x148] sm:$0xff]   ;;  %v440_v23 = vshll.u32 %v332_v18, 16 }
  0x26   : > { %3524 = vmatprep.subr.bf16.mxu1 %v3836_v29  ;;  %v380_v29 = vrot.slane %v379_v20, 4  ;;  %v641_v33 = vsel %vm4110_vm4, %v3080_v25, %v640_v26  ;;  %v642_v34 = vrot.slane %v640_v26, 4 }
  0x28   : > { %3461 = vmatpush3.bf16.msra.mxu0 %v3837_v30  ;;  %v3848_v30 = vld [vmem:[%s4753_s1 + $0x1c8] sm:$0xff]   ;;  %v385_v35 = vsel %vm4119_vm5, %v380_v29, %v384_v17  ;;  %v644_v38 = vsel %vm4110_vm4, %v642_v34, %v643_v27  ;;  %v442_v29 = vrot.slane %v440_v23, 5  ;;  %v3868_v23 = vld [vmem:[%s4753_s1 + $0x1a0] sm:$0xff]  }
  0x29   : > { %3525 = vmatpush3.bf16.msra.mxu1 %v3838_v31  ;;  %3574 = vmatprep.subr.bf16.mxu0 %v3841_v56  ;;  %v390_v31 = vrot.slane %v389_v24, 4  ;;  %v3088_v42 = vcombine.low %v641_v33, %v644_v38  ;;  %v412_v56 = vrot.slane %v410_v49, 4  ;;  %v331_v17 = vld [vmem:[%s4096_s24 + $0x28] sm:$0xf]  ;;  %v3857_v24 = vld [vmem:[%s4096_s24 + $0x30] sm:$0xff]   ;;  %v3859_v38 = vld [vmem:[%s4753_s1 + $0x158] sm:$0xff]  }
  0x2a   : > { %3638 = vmatprep.subr.bf16.mxu1 %v3842_v58  ;;  %v403_v58 = vor.u32 %v402_v54, %v399_v53  ;;  %v430_v21 = vshll.u32 %v331_v17, 16  ;;  %v434_v22 = vshrl.u32 %v331_v17, 16  ;;  %v591_v33 = vld [vmem:[%s4096_s24 + $0x2c] sm:$0x1] }
  0x2b   : > { %2367 = vmatmul.mubr.bf16.vlgmr.msra.gmra.mrb[0].mxu0 %v3840_v60  ;;  %v395_v37 = vsel %vm4119_vm5, %v390_v31, %v394_v19  ;;  %v587_v60 = vld [vmem:[%s4096_s24 + $0x1c] sm:$0xf]  ;;  %v413_v62 = vor.u32 %v412_v56, %v408_v55  ;;  %v589_v31 = vld [vmem:[%s4096_s24 + $0x24] sm:$0xe]  ;;  %v335_v56 = vld [vmem:[%s4096_s24 + $0x38] sm:$0x1] }
  0x2c   : > { %2464 = vmatmul.mubr.bf16.vlgmr.msra.gmra.mrb[0].mxu1 %v3087_v6  ;;  %3575 = vmatpush3.bf16.msra.mxu0 %v3843_v0  ;;  %v3072_v41 = vcombine.low %v385_v35, %v395_v37  ;;  %v647_v0 = vrot.slane %v587_v60, 5  ;;  %v3852_v6 = vld [vmem:[%s4096_s24 + $0x18] sm:$0xff]   ;;  %v432_v27 = vrot.slane %v430_v21, 5  ;;  %v3082_v35 = vrot.slane %v589_v31, 9 }
  0x2d   : > { %3639 = vmatpush3.bf16.msra.mxu1 %v3844_v3  ;;  %2471 = vmatprep.mubr.bf16.mxu1 %v3845_v14  ;;  %v404_v3 = vrot.slane %v403_v58, 4  ;;  %v414_v5 = vrot.slane %v413_v62, 4  ;;  %v330_v14 = vld [vmem:[%s4096_s24 + $0x24] sm:$0xf]  ;;  %v657_v37 = vrot.slane %v591_v33, 5  ;;  %v464_v61 = vshll.u32 %v335_v56, 16 }
  0x2e   : > { %3576 = vmatprep.subr.bf16.mxu0 %v3847_v28  ;;  %3640 = vmatprep.subr.bf16.mxu1 %v3848_v30  ;;  %v648_v7 = vsel %vm4110_vm4, %v3081_v63, %v647_v0  ;;  %v649_v8 = vrot.slane %v647_v0, 4  ;;  %v421_v19 = vshrl.u32 %v330_v14, 16  ;;  %v424_v20 = vshll.u32 %v330_v14, 16  ;;  %v3863_v62 = vld [vmem:[%s4096_s24 + $0x3c] sm:$0xff]  }
  0x2f   : > { %2374 = vmatprep.mubr.bf16.mxu0 %v3072_v41  ;;  %v409_v9 = vsel %vm4119_vm5, %v404_v3, %v408_v55  ;;  %v419_v11 = vsel %vm4119_vm5, %v414_v5, %v418_v57  ;;  %v436_v28 = vrot.slane %v434_v22, 4  ;;  %v334_v55 = vld [vmem:[%s4096_s24 + $0x34] sm:$0xf]  ;;  %v466_v3 = vrot.slane %v464_v61, 5  ;;  %v592_v5 = vld [vmem:[%s4096_s24 + $0x30] sm:$0xe] }
  0x30   : > { %3577 = vmatpush3.bf16.msra.mxu0 %v3849_v36  ;;  %v651_v12 = vsel %vm4110_vm4, %v649_v8, %v650_v1  ;;  %v3073_v15 = vcombine.low %v409_v9, %v419_v11  ;;  %v423_v25 = vrot.slane %v421_v19, 4  ;;  %v426_v26 = vrot.slane %v424_v20, 5  ;;  %v3866_v14 = vld [vmem:[%s4753_s1 + $0x1e0] sm:$0xff]   ;;  %v3874_v61 = vld [vmem:[%s4753_s1 + $0x1a8] sm:$0xff]  }
  0x31   : > { %3641 = vmatpush3.bf16.msra.mxu1 %v3850_v39  ;;  %3578 = vmatprep.subr.bf16.mxu0 %v3853_v2  ;;  %v3089_v16 = vcombine.low %v648_v7, %v651_v12  ;;  %v437_v34 = vor.u32 %v436_v28, %v432_v27  ;;  %v454_v59 = vshll.u32 %v334_v55, 16  ;;  %v458_v60 = vshrl.u32 %v334_v55, 16  ;;  %v594_v7 = vld [vmem:[%s4096_s24 + $0x38] sm:$0x1]  ;;  %v3865_v12 = vld [vmem:[%s4753_s1 + $0x160] sm:$0xff]  }
  0x32   : > { %3642 = vmatprep.subr.bf16.mxu1 %v3854_v4  ;;  %v427_v30 = vor.u32 %v426_v26, %v423_v25  ;;  %v3083_v9 = vrot.slane %v592_v5, 9  ;;  %v664_v11 = vrot.slane %v594_v7, 5  ;;  %v3867_v20 = vld [vmem:[%s4753_s1 + $0x120] sm:$0xff]  }
  0x33   : > { %2375 = vmatmul.mubr.bf16.gmra.mrb[4].mxu0 %v3846_v32  ;;  %v590_v32 = vld [vmem:[%s4096_s24 + $0x28] sm:$0xf]  ;;  %v438_v41 = vrot.slane %v437_v34, 4  ;;  %v456_v1 = vrot.slane %v454_v59, 5  ;;  %v460_v2 = vrot.slane %v458_v60, 4 }
  0x34   : > { %2472 = vmatmul.mubr.bf16.gmra.mrb[4].mxu1 %v3088_v42  ;;  %3579 = vmatpush3.bf16.msra.mxu0 %v3855_v10  ;;  %v654_v36 = vrot.slane %v590_v32, 5  ;;  %v428_v39 = vrot.slane %v427_v30, 4  ;;  %v3858_v42 = vld [vmem:[%s4096_s24 + $0x24] sm:$0xff]  }
  0x35   : > { %2479 = vmatprep.mubr.bf16.mxu1 %v3851_v52  ;;  %3643 = vmatpush3.bf16.msra.mxu1 %v3856_v13  ;;  %v443_v48 = vsel %vm4119_vm5, %v438_v41, %v442_v29  ;;  %v333_v52 = vld [vmem:[%s4096_s24 + $0x30] sm:$0xf]  ;;  %v461_v8 = vor.u32 %v460_v2, %v456_v1  ;;  %v338_v28 = vld [vmem:[%s4096_s24 + $0x44] sm:$0x1]  ;;  %v3869_v34 = vld [vmem:[%s4096_s24 + $0x48] sm:$0xff]  }
  0x36   : > { %2382 = vmatprep.mubr.bf16.mxu0 %v3073_v15  ;;  %v655_v43 = vsel %vm4110_vm4, %v3082_v35, %v654_v36  ;;  %v656_v44 = vrot.slane %v654_v36, 4  ;;  %3580 = vmatprep.subr.bf16.mxu0 %v3859_v38  ;;  %v433_v45 = vsel %vm4119_vm5, %v428_v39, %v432_v27  ;;  %v445_v57 = vshrl.u32 %v333_v52, 16  ;;  %v337_v27 = vld [vmem:[%s4096_s24 + $0x40] sm:$0xf]  ;;  %v595_v41 = vld [vmem:[%s4096_s24 + $0x3c] sm:$0xe] }
  0x37   : > { %3644 = vmatprep.subr.bf16.mxu1 %v3860_v40  ;;  %v3074_v53 = vcombine.low %v433_v45, %v443_v48  ;;  %v448_v58 = vshll.u32 %v333_v52, 16  ;;  %v462_v15 = vrot.slane %v461_v8, 4  ;;  %v478_v31 = vshll.u32 %v337_v27, 16  ;;  %v3872_v52 = vld [vmem:[%s4753_s1 + $0x1e8] sm:$0xff]   ;;  %v341_v2 = vld [vmem:[%s4096_s24 + $0x50] sm:$0x1] }
  0x38   : > { %v658_v49 = vsel %vm4110_vm4, %v656_v44, %v657_v37  ;;  %3581 = vmatpush3.bf16.msra.mxu0 %v3861_v47  ;;  %v447_v63 = vrot.slane %v445_v57, 4  ;;  %v482_v32 = vshrl.u32 %v337_v27, 16  ;;  %v488_v33 = vshll.u32 %v338_v28, 16  ;;  %v3875_v8 = vld [vmem:[%s4096_s24 + $0x54] sm:$0xff]  }
  0x39   : > { %v3090_v54 = vcombine.low %v655_v43, %v658_v49  ;;  %3645 = vmatpush3.bf16.msra.mxu1 %v3862_v50  ;;  %v450_v0 = vrot.slane %v448_v58, 5  ;;  %3582 = vmatprep.subr.bf16.mxu0 %v3865_v12  ;;  %v467_v21 = vsel %vm4119_vm5, %v462_v15, %v466_v3  ;;  %v480_v37 = vrot.slane %v478_v31, 5  ;;  %v597_v43 = vld [vmem:[%s4096_s24 + $0x44] sm:$0x1]  ;;  %v3871_v49 = vld [vmem:[%s4753_s1 + $0x168] sm:$0xff]  }
  0x3a   : > { %3646 = vmatprep.subr.bf16.mxu1 %v3866_v14  ;;  %v484_v38 = vrot.slane %v482_v32, 4  ;;  %v490_v39 = vrot.slane %v488_v33, 5  ;;  %v3084_v45 = vrot.slane %v595_v41, 9  ;;  %v671_v48 = vrot.slane %v597_v43, 5  ;;  %v3873_v58 = vld [vmem:[%s4753_s1 + $0x128] sm:$0xff]   ;;  %v3880_v33 = vld [vmem:[%s4753_s1 + $0x1b0] sm:$0xff]  }
  0x3b   : > { %2383 = vmatmul.mubr.bf16.gmra.mrb[8].mxu0 %v3852_v6  ;;  %v451_v4 = vor.u32 %v450_v0, %v447_v63  ;;  %v593_v6 = vld [vmem:[%s4096_s24 + $0x34] sm:$0xf]  ;;  %v512_v7 = vshll.u32 %v341_v2, 16  ;;  %v598_v15 = vld [vmem:[%s4096_s24 + $0x48] sm:$0xe] }
  0x3c   : > { %2480 = vmatmul.mubr.bf16.gmra.mrb[8].mxu1 %v3089_v16  ;;  %2390 = vmatprep.mubr.bf16.mxu0 %v3074_v53  ;;  %v661_v10 = vrot.slane %v593_v6, 5  ;;  %v3864_v16 = vld [vmem:[%s4096_s24 + $0x30] sm:$0xff]   ;;  %v485_v44 = vor.u32 %v484_v38, %v480_v37  ;;  %v344_v38 = vld [vmem:[%s4096_s24 + $0x5c] sm:$0x1] }
  0x3d   : > { %2487 = vmatprep.mubr.bf16.mxu1 %v3857_v24  ;;  %v452_v13 = vrot.slane %v451_v4, 4  ;;  %v336_v24 = vld [vmem:[%s4096_s24 + $0x3c] sm:$0xf]  ;;  %3583 = vmatpush3.bf16.msra.mxu0 %v3867_v20  ;;  %v536_v43 = vshll.u32 %v344_v38, 16 }
  0x3e   : > { %v662_v17 = vsel %vm4110_vm4, %v3083_v9, %v661_v10  ;;  %v663_v18 = vrot.slane %v661_v10, 4  ;;  %v469_v29 = vshrl.u32 %v336_v24, 16  ;;  %v472_v30 = vshll.u32 %v336_v24, 16  ;;  %3647 = vmatpush3.bf16.msra.mxu1 %v3868_v23  ;;  %3584 = vmatprep.subr.bf16.mxu0 %v3871_v49  ;;  %v3878_v24 = vld [vmem:[%s4753_s1 + $0x1f0] sm:$0xff]  }
  0x3f   : > { %v457_v19 = vsel %vm4119_vm5, %v452_v13, %v456_v1  ;;  %v486_v53 = vrot.slane %v485_v44, 4  ;;  %3648 = vmatprep.subr.bf16.mxu1 %v3872_v52  ;;  %v340_v1 = vld [vmem:[%s4096_s24 + $0x4c] sm:$0xf]  ;;  %v514_v13 = vrot.slane %v512_v7, 5  ;;  %v3881_v44 = vld [vmem:[%s4096_s24 + $0x60] sm:$0xff]   ;;  %v3886_v7 = vld [vmem:[%s4753_s1 + $0x1b8] sm:$0xff]  }
  0x40   : > { %v665_v22 = vsel %vm4110_vm4, %v663_v18, %v664_v11  ;;  %v3075_v25 = vcombine.low %v457_v19, %v467_v21  ;;  %v471_v35 = vrot.slane %v469_v29, 4  ;;  %v474_v36 = vrot.slane %v472_v30, 5  ;;  %v3879_v30 = vld [vmem:[%s4753_s1 + $0x130] sm:$0xff]  }
  0x41   : > { %v3091_v26 = vcombine.low %v662_v17, %v665_v22  ;;  %v491_v59 = vsel %vm4119_vm5, %v486_v53, %v490_v39  ;;  %3585 = vmatpush3.bf16.msra.mxu0 %v3873_v58  ;;  %v502_v5 = vshll.u32 %v340_v1, 16  ;;  %v506_v6 = vshrl.u32 %v340_v1, 16  ;;  %v600_v17 = vld [vmem:[%s4096_s24 + $0x50] sm:$0x1]  ;;  %v601_v53 = vld [vmem:[%s4096_s24 + $0x54] sm:$0xe] }
  0x42   : > { %v475_v40 = vor.u32 %v474_v36, %v471_v35  ;;  %3649 = vmatpush3.bf16.msra.mxu1 %v3874_v61  ;;  %v3085_v19 = vrot.slane %v598_v15, 9  ;;  %v678_v21 = vrot.slane %v600_v17, 5  ;;  %v3877_v22 = vld [vmem:[%s4753_s1 + $0x170] sm:$0xff]   ;;  %v3220_v17 = vld [vmem:[%s4096_s24 + $0x1c] sm:$0xf] }
  0x43   : > { %2391 = vmatmul.mubr.bf16.gmra.mrb[12].mxu0 %v3858_v42  ;;  %v596_v42 = vld [vmem:[%s4096_s24 + $0x40] sm:$0xf]  ;;  %v504_v11 = vrot.slane %v502_v5, 5  ;;  %v508_v12 = vrot.slane %v506_v6, 4  ;;  %3586 = vmatprep.subr.bf16.mxu0 %v3877_v22  ;;  %v1317_v22 = vshrl.u32 %v3220_v17, 16 }
  0x44   : > { %2488 = vmatmul.mubr.bf16.gmra.mrb[12].mxu1 %v3090_v54  ;;  %2398 = vmatprep.mubr.bf16.mxu0 %v3075_v25  ;;  %v668_v47 = vrot.slane %v596_v42, 5  ;;  %v476_v50 = vrot.slane %v475_v40, 4  ;;  %v3870_v54 = vld [vmem:[%s4096_s24 + $0x3c] sm:$0xff]  }
  0x45   : > { %2495 = vmatprep.mubr.bf16.mxu1 %v3863_v62  ;;  %v339_v62 = vld [vmem:[%s4096_s24 + $0x48] sm:$0xf]  ;;  %v509_v18 = vor.u32 %v508_v12, %v504_v11  ;;  %3650 = vmatprep.subr.bf16.mxu1 %v3878_v24  ;;  %v3155_v12 = vld [vmem:[%s4096_s24 + $0x14] sm:$0x1] }
  0x46   : > { %v669_v55 = vsel %vm4110_vm4, %v3084_v45, %v668_v47  ;;  %v670_v56 = vrot.slane %v668_v47, 4  ;;  %v481_v57 = vsel %vm4119_vm5, %v476_v50, %v480_v37  ;;  %v493_v3 = vshrl.u32 %v339_v62, 16  ;;  %3587 = vmatpush3.bf16.msra.mxu0 %v3879_v30  ;;  %v343_v37 = vld [vmem:[%s4096_s24 + $0x58] sm:$0xf]  ;;  %3651 = vmatpush3.bf16.msra.mxu1 %v3880_v33 }
  0x47   : > { %v3076_v63 = vcombine.low %v481_v57, %v491_v59  ;;  %v496_v4 = vshll.u32 %v339_v62, 16  ;;  %v510_v25 = vrot.slane %v509_v18, 4  ;;  %v526_v41 = vshll.u32 %v343_v37, 16  ;;  %v3884_v62 = vld [vmem:[%s4753_s1 + $0x1f8] sm:$0xff]   ;;  %v3221_v18 = vld [vmem:[%s4096_s24 + $0x20] sm:$0x1] }
  0x48   : > { %v672_v60 = vsel %vm4110_vm4, %v670_v56, %v671_v48  ;;  %v495_v9 = vrot.slane %v493_v3, 4  ;;  %v530_v42 = vshrl.u32 %v343_v37, 16  ;;  %v538_v50 = vrot.slane %v536_v43, 5  ;;  %3652 = vmatprep.subr.bf16.mxu1 %v3884_v62  ;;  %v4356_v37 = vld [vmem:[%s4753_s1 + $0x200] sm:$0xff]  }
  0x49   : > { %v3092_v0 = vcombine.low %v669_v55, %v672_v60  ;;  %v498_v10 = vrot.slane %v496_v4, 5  ;;  %v515_v31 = vsel %vm4119_vm5, %v510_v25, %v514_v13  ;;  %v528_v48 = vrot.slane %v526_v41, 5  ;;  %v603_v55 = vld [vmem:[%s4096_s24 + $0x5c] sm:$0x1]  ;;  %v3222_v62 = vld [vmem:[%s4096_s24 + $0x24] sm:$0xf] }
  0x4a   : > { %v532_v49 = vrot.slane %v530_v42, 4  ;;  %v3086_v57 = vrot.slane %v601_v53, 9  ;;  %v685_v59 = vrot.slane %v603_v55, 5  ;;  %v3883_v60 = vld [vmem:[%s4753_s1 + $0x178] sm:$0xff]   ;;  %3653 = vmatpush3.bf16.msra.mxu1 %v3886_v7  ;;  %v1112_v15 = vrot.slane %v3155_v12, 5 }
  0x4b   : > { %2399 = vmatmul.mubr.bf16.gmra.mrb[16].mxu0 %v3864_v16  ;;  %v499_v14 = vor.u32 %v498_v10, %v495_v9  ;;  %v599_v16 = vld [vmem:[%s4096_s24 + $0x4c] sm:$0xf]  ;;  %3588 = vmatprep.subr.bf16.mxu0 %v3883_v60  ;;  %v3885_v4 = vld [vmem:[%s4753_s1 + $0x138] sm:$0xff]   ;;  %v1323_v25 = vshll.u32 %v3221_v18, 16 }
  0x4c   : > { %2496 = vmatmul.mubr.bf16.gmra.mrb[16].mxu1 %v3091_v26  ;;  %2406 = vmatprep.mubr.bf16.mxu0 %v3076_v63  ;;  %v675_v20 = vrot.slane %v599_v16, 5  ;;  %v3876_v26 = vld [vmem:[%s4096_s24 + $0x48] sm:$0xff]   ;;  %v533_v56 = vor.u32 %v532_v49, %v528_v48  ;;  %v3219_v16 = vld [vmem:[%s4096_s24 + $0x18] sm:$0xf] }
  0x4d   : > { %2503 = vmatprep.mubr.bf16.mxu1 %v3869_v34  ;;  %v500_v23 = vrot.slane %v499_v14, 4  ;;  %v342_v34 = vld [vmem:[%s4096_s24 + $0x54] sm:$0xf]  ;;  %3589 = vmatpush3.bf16.msra.mxu0 %v3885_v4  ;;  %v3224_v4 = vld [vmem:[%s4096_s24 + $0x2c] sm:$0x1] }
  0x4e   : > { %v676_v27 = vsel %vm4110_vm4, %v3085_v19, %v675_v20  ;;  %v677_v28 = vrot.slane %v675_v20, 4  ;;  %v517_v39 = vshrl.u32 %v342_v34, 16  ;;  %v520_v40 = vshll.u32 %v342_v34, 16  ;;  %3718 = vmatprep.subr.bf16.mxu0 %v4356_v37  ;;  %3750 = vmatprep.subr.bf16.mxu1 %v4356_v37 }
  0x4f   : > { %v505_v29 = vsel %vm4119_vm5, %v500_v23, %v504_v11  ;;  %v534_v63 = vrot.slane %v533_v56, 4  ;;  %v3154_v11 = vld [vmem:[%s4096_s24 + $0x10] sm:$0xf]  ;;  %v1304_v19 = vshrl.u32 %v3219_v16, 16  ;;  %v1307_v20 = vshll.u32 %v3219_v16, 16 }
  0x50   : > { %v679_v32 = vsel %vm4110_vm4, %v677_v28, %v678_v21  ;;  %v3077_v35 = vcombine.low %v505_v29, %v515_v31  ;;  %v519_v45 = vrot.slane %v517_v39, 4  ;;  %v522_v47 = vrot.slane %v520_v40, 5  ;;  %v3157_v56 = vld [vmem:[%s4096_s24 + $0x1c] sm:$0xf]  ;;  %v3126_v16 = vld [vmem:[%s4096_s24 + $0x20] sm:$0x1] }
  0x51   : > { %v3093_v36 = vcombine.low %v676_v27, %v679_v32  ;;  %v539_v5 = vsel %vm4119_vm5, %v534_v63, %v538_v50  ;;  %v1109_v14 = vrot.slane %v3154_v11, 5  ;;  %v1313_v21 = vshll.u32 %v3220_v17, 16  ;;  %v3122_v27 = vld [vmem:[%s4096_s24 + $0x10] sm:$0xf]  ;;  %v3123_v32 = vld [vmem:[%s4096_s24 + $0x14] sm:$0x1] }
  0x52   : > { %v523_v52 = vor.u32 %v522_v47, %v519_v45  ;;  %v1306_v28 = vrot.slane %v1304_v19, 4  ;;  %v1309_v29 = vrot.slane %v1307_v20, 5  ;;  %v1319_v31 = vrot.slane %v1317_v22, 4  ;;  %v3887_v50 = vld [vmem:[%s4096_s24 + $0x18] sm:$0xff]   ;;  %v3223_v63 = vld [vmem:[%s4096_s24 + $0x28] sm:$0xf] }
  0x53   : > { %2407 = vmatmul.mubr.bf16.gmra.mrb[20].mxu0 %v3870_v54  ;;  %v602_v54 = vld [vmem:[%s4096_s24 + $0x58] sm:$0xf]  ;;  %v1111_v24 = vrot.slane %v1109_v14, 4  ;;  %v1315_v30 = vrot.slane %v1313_v21, 5  ;;  %v1325_v34 = vrot.slane %v1323_v25, 5  ;;  %v837_v41 = vshll.u32 %v3122_v27, 16 }
  0x54   : > { %2504 = vmatmul.mubr.bf16.gmra.mrb[20].mxu1 %v3092_v0  ;;  %2414 = vmatprep.mubr.bf16.mxu0 %v3077_v35  ;;  %v682_v58 = vrot.slane %v602_v54, 5  ;;  %v524_v61 = vrot.slane %v523_v52, 4  ;;  %v3882_v0 = vld [vmem:[%s4096_s24 + $0x54] sm:$0xff]   ;;  %v1310_v39 = vor.u32 %v1309_v29, %v1306_v28  ;;  %v847_v45 = vshll.u32 %v3123_v32, 16  ;;  %v4378_v11 = vld [vmem:[%s4753_s1 + $0x208] sm:$0xff]  }
  0x55   : > { %2511 = vmatprep.mubr.bf16.mxu1 %v3875_v8  ;;  %v3153_v8 = vld [vmem:[%s4096_s24 + $0xc] sm:$0xe]  ;;  %v1113_v33 = vsel %vm4110_vm4, %v1111_v24, %v1112_v15  ;;  %v1320_v40 = vor.u32 %v1319_v31, %v1315_v30  ;;  %v839_v49 = vrot.slane %v837_v41, 5  ;;  %v3156_v52 = vld [vmem:[%s4096_s24 + $0x18] sm:$0xe]  ;;  %v1341_v15 = vshrl.u32 %v3223_v63, 16 }
  0x56   : > { %v683_v1 = vsel %vm4110_vm4, %v3086_v57, %v682_v58  ;;  %v684_v2 = vrot.slane %v682_v58, 4  ;;  %v529_v3 = vsel %vm4119_vm5, %v524_v61, %v528_v48  ;;  %v3177_v13 = vrot.slane %v3153_v8, 9  ;;  %v3158_v57 = vld [vmem:[%s4096_s24 + $0x20] sm:$0x1]  ;;  %v3159_v29 = vld [vmem:[%s4096_s24 + $0x24] sm:$0xe] }
  0x57   : > { %v3078_v9 = vcombine.low %v529_v3, %v539_v5  ;;  %v1311_v47 = vrot.slane %v1310_v39, 4  ;;  %v1321_v48 = vrot.slane %v1320_v40, 4  ;;  %v849_v55 = vrot.slane %v847_v45, 5  ;;  %v3124_v5 = vld [vmem:[%s4096_s24 + $0x18] sm:$0xf] }
  0x58   : > { %v686_v6 = vsel %vm4110_vm4, %v684_v2, %v685_v59  ;;  %v1110_v23 = vsel %vm4110_vm4, %v3177_v13, %v1109_v14  ;;  %v3178_v60 = vrot.slane %v3156_v52, 9  ;;  %v1116_v61 = vrot.slane %v3157_v56, 5  ;;  %v3161_v40 = vld [vmem:[%s4096_s24 + $0x2c] sm:$0x1]  ;;  %v3226_v52 = vld [vmem:[%s4096_s24 + $0x34] sm:$0xf] }
  0x59   : > { %v3094_v10 = vcombine.low %v683_v1, %v686_v6  ;;  %v3185_v38 = vcombine.low %v1110_v23, %v1113_v33  ;;  %v1316_v58 = vsel %vm4119_vm5, %v1311_v47, %v1315_v30  ;;  %v1326_v59 = vsel %vm4119_vm5, %v1321_v48, %v1325_v34  ;;  %v3160_v34 = vld [vmem:[%s4096_s24 + $0x28] sm:$0xf]  ;;  %v3225_v47 = vld [vmem:[%s4096_s24 + $0x30] sm:$0xf] }
  0x5a   : > { %v1119_v3 = vrot.slane %v3158_v57, 5  ;;  %v1117_v6 = vsel %vm4110_vm4, %v3178_v60, %v1116_v61  ;;  %v1118_v7 = vrot.slane %v1116_v61, 4  ;;  %v1328_v8 = vshrl.u32 %v3222_v62, 16  ;;  %v3889_v56 = vld [vmem:[%s4096_s24 + $0x24] sm:$0xff]   ;;  %v3227_v57 = vld [vmem:[%s4096_s24 + $0x38] sm:$0x1] }
  0x5b   : > { %2415 = vmatmul.mubr.bf16.gmra.mrb[24].mxu0 %v3876_v26  ;;  %v3121_v26 = vld [vmem:[%s4096_s24 + $0xc] sm:$0xf]  ;;  %v1337_v14 = vshll.u32 %v3223_v63, 16  ;;  %v1347_v20 = vshll.u32 %v3224_v4, 16  ;;  %v1343_v24 = vrot.slane %v1341_v15, 4  ;;  %v852_v28 = vshrl.u32 %v3124_v5, 16 }
  0x5c   : > { %2512 = vmatmul.mubr.bf16.gmra.mrb[24].mxu1 %v3093_v36  ;;  %2422 = vmatprep.mubr.bf16.mxu0 %v3078_v9  ;;  %v828_v35 = vshrl.u32 %v3121_v26, 16  ;;  %v831_v36 = vshll.u32 %v3121_v26, 16  ;;  %v1331_v9 = vshll.u32 %v3222_v62, 16  ;;  %v1120_v17 = vsel %vm4110_vm4, %v1118_v7, %v1119_v3  ;;  %v4430_v15 = vld [vmem:[%s4753_s1 + $0x220] sm:$0xff]  }
  0x5d   : > { %2519 = vmatprep.mubr.bf16.mxu1 %v3881_v44  ;;  %v841_v44 = vshrl.u32 %v3122_v27, 16  ;;  %v1330_v18 = vrot.slane %v1328_v8, 4  ;;  %v3186_v22 = vcombine.low %v1117_v6, %v1120_v17  ;;  %v1339_v23 = vrot.slane %v1337_v14, 5  ;;  %v3129_v6 = vld [vmem:[%s4096_s24 + $0x2c] sm:$0x1] }
  0x5e   : > { %v830_v42 = vrot.slane %v828_v35, 4  ;;  %v833_v43 = vrot.slane %v831_v36, 5  ;;  %v1333_v19 = vrot.slane %v1331_v9, 5  ;;  %v1349_v27 = vrot.slane %v1347_v20, 5  ;;  %v4394_v35 = vld [vmem:[%s4753_s1 + $0x210] sm:$0xff]  }
  0x5f   : > { %v843_v54 = vrot.slane %v841_v44, 4  ;;  %v1344_v30 = vor.u32 %v1343_v24, %v1339_v23  ;;  %v855_v31 = vshll.u32 %v3124_v5, 16  ;;  %v871_v39 = vshll.u32 %v3126_v16, 16  ;;  %v3162_v20 = vld [vmem:[%s4096_s24 + $0x30] sm:$0xe] }
  0x60   : > { %v834_v53 = vor.u32 %v833_v43, %v830_v42  ;;  %v1334_v26 = vor.u32 %v1333_v19, %v1330_v18  ;;  %v3179_v41 = vrot.slane %v3159_v29, 9  ;;  %v1355_v63 = vshll.u32 %v3225_v47, 16 }
  0x61   : > { %v844_v2 = vor.u32 %v843_v54, %v839_v49  ;;  %v1345_v42 = vrot.slane %v1344_v30, 4  ;;  %v857_v43 = vrot.slane %v855_v31, 5  ;;  %v1361_v5 = vshll.u32 %v3226_v52, 16  ;;  %v3228_v31 = vld [vmem:[%s4096_s24 + $0x3c] sm:$0xf] }
  0x62   : > { %v835_v1 = vrot.slane %v834_v53, 4  ;;  %v1335_v36 = vrot.slane %v1334_v26, 4  ;;  %v1357_v8 = vrot.slane %v1355_v63, 5  ;;  %v1365_v9 = vshrl.u32 %v3226_v52, 16  ;;  %v3164_v26 = vld [vmem:[%s4096_s24 + $0x38] sm:$0x1] }
  0x63   : > { %2423 = vmatmul.mubr.bf16.gmra.mrb[28].mxu0 %v3882_v0  ;;  %v3243_v0 = vcombine.low %v1316_v58, %v1326_v59  ;;  %v845_v13 = vrot.slane %v844_v2, 4  ;;  %v1350_v53 = vsel %vm4119_vm5, %v1345_v42, %v1349_v27  ;;  %v1352_v58 = vshrl.u32 %v3225_v47, 16  ;;  %v4412_v59 = vld [vmem:[%s4753_s1 + $0x218] sm:$0xff]   ;;  %v3898_v42 = vld [vmem:[%s4753_s1 + $0x228] sm:$0xff]   ;;  %v3229_v47 = vld [vmem:[%s4096_s24 + $0x40] sm:$0xf] }
  0x64   : > { %2520 = vmatmul.mubr.bf16.gmra.mrb[28].mxu1 %v3094_v10  ;;  %2560 = vmatprep.mubr.bf16.mxu0 %v3185_v38  ;;  %v3125_v10 = vld [vmem:[%s4096_s24 + $0x1c] sm:$0xf]  ;;  %v840_v12 = vsel %vm4119_vm5, %v835_v1, %v839_v49  ;;  %v854_v38 = vrot.slane %v852_v28, 4  ;;  %v1340_v48 = vsel %vm4119_vm5, %v1335_v36, %v1339_v23  ;;  %v873_v49 = vrot.slane %v871_v39, 5  ;;  %v3128_v1 = vld [vmem:[%s4096_s24 + $0x28] sm:$0xf] }
  0x65   : > { %2657 = vmatprep.mubr.bf16.mxu1 %v3243_v0  ;;  %v850_v21 = vsel %vm4119_vm5, %v845_v13, %v849_v55  ;;  %v861_v32 = vshll.u32 %v3125_v10, 16  ;;  %v865_v33 = vshrl.u32 %v3125_v10, 16  ;;  %v3244_v60 = vcombine.low %v1340_v48, %v1350_v53  ;;  %v3127_v0 = vld [vmem:[%s4096_s24 + $0x24] sm:$0xf] }
  0x66   : > { %v3145_v25 = vcombine.low %v840_v12, %v850_v21  ;;  %v858_v54 = vor.u32 %v857_v43, %v854_v38  ;;  %v1354_v4 = vrot.slane %v1352_v58, 4  ;;  %v1371_v10 = vshll.u32 %v3227_v57, 16  ;;  %v3163_v21 = vld [vmem:[%s4096_s24 + $0x34] sm:$0xf]  ;;  %v3230_v48 = vld [vmem:[%s4096_s24 + $0x44] sm:$0x1] }
  0x67   : > { %v863_v44 = vrot.slane %v861_v32, 5  ;;  %v867_v45 = vrot.slane %v865_v33, 4  ;;  %v1363_v14 = vrot.slane %v1361_v5, 5  ;;  %v1367_v18 = vrot.slane %v1365_v9, 4  ;;  %v3900_v5 = vld [vmem:[%s4753_s1 + $0x230] sm:$0xff]  }
  0x68   : > { %v859_v2 = vrot.slane %v858_v54, 4  ;;  %v1358_v17 = vor.u32 %v1357_v8, %v1354_v4  ;;  %v1373_v19 = vrot.slane %v1371_v10, 5  ;;  %v879_v23 = vshll.u32 %v3127_v0, 16  ;;  %v3130_v54 = vld [vmem:[%s4096_s24 + $0x30] sm:$0xf] }
  0x69   : > { %v868_v55 = vor.u32 %v867_v45, %v863_v44  ;;  %v885_v24 = vshll.u32 %v3128_v1, 16  ;;  %v1368_v28 = vor.u32 %v1367_v18, %v1363_v14  ;;  %v895_v29 = vshll.u32 %v3129_v6, 16  ;;  %v3132_v4 = vld [vmem:[%s4096_s24 + $0x38] sm:$0x1]  ;;  %v3165_v10 = vld [vmem:[%s4096_s24 + $0x3c] sm:$0xe] }
  0x6a   : > { %v864_v12 = vsel %vm4119_vm5, %v859_v2, %v863_v44  ;;  %v1359_v27 = vrot.slane %v1358_v17, 4  ;;  %v3180_v30 = vrot.slane %v3162_v20, 9  ;;  %v881_v33 = vrot.slane %v879_v23, 5  ;;  %v3167_v17 = vld [vmem:[%s4096_s24 + $0x44] sm:$0x1] }
  0x6b   : > { %2561 = vmatmul.mubr.bf16.vlgmr.msra.gmra.mrb[32].mxu0 %v3145_v25  ;;  %v869_v3 = vrot.slane %v868_v55, 4  ;;  %v889_v25 = vshrl.u32 %v3128_v1, 16  ;;  %v1369_v38 = vrot.slane %v1368_v28, 4  ;;  %v897_v39 = vrot.slane %v895_v29, 5  ;;  %v3131_v55 = vld [vmem:[%s4096_s24 + $0x34] sm:$0xf] }
  0x6c   : > { %2658 = vmatmul.mubr.bf16.vlgmr.msra.gmra.mrb[32].mxu1 %v3887_v50  ;;  %3719 = vmatpush3.bf16.msra.mxu0 %v4356_v37  ;;  %v1123_v50 = vrot.slane %v3160_v34, 5  ;;  %v887_v34 = vrot.slane %v885_v24, 5  ;;  %v1133_v45 = vrot.slane %v3164_v26, 5  ;;  %v1379_v53 = vshll.u32 %v3228_v31, 16 }
  0x6d   : > { %3758 = vmatpush3.bf16.msra.mxu1 %v4356_v37  ;;  %2568 = vmatprep.mubr.bf16.mxu0 %v3186_v22  ;;  %v1126_v37 = vrot.slane %v3161_v40, 5  ;;  %v876_v22 = vshrl.u32 %v3127_v0, 16  ;;  %v891_v36 = vrot.slane %v889_v25, 4  ;;  %v3891_v40 = vld [vmem:[%s4096_s24 + $0x30] sm:$0xff]   ;;  %v1389_v63 = vshrl.u32 %v3229_v47, 16 }
  0x6e   : > { %3751 = vmatprep.subr.bf16.mxu1 %v4378_v11  ;;  %3720 = vmatprep.subr.bf16.mxu0 %v4378_v11  ;;  %v1124_v61 = vsel %vm4110_vm4, %v3179_v41, %v1123_v50  ;;  %v1125_v62 = vrot.slane %v1123_v50, 4  ;;  %v1130_v41 = vrot.slane %v3163_v21, 5  ;;  %v1374_v50 = vsel %vm4119_vm5, %v1369_v38, %v1373_v19  ;;  %v3231_v21 = vld [vmem:[%s4096_s24 + $0x48] sm:$0xf] }
  0x6f   : > { %2665 = vmatprep.mubr.bf16.mxu1 %v3244_v60  ;;  %v878_v32 = vrot.slane %v876_v22, 4  ;;  %v892_v44 = vor.u32 %v891_v36, %v887_v34  ;;  %v1391_v9 = vrot.slane %v1389_v63, 4  ;;  %v913_v19 = vshrl.u32 %v3131_v55, 16  ;;  %v3902_v22 = vld [vmem:[%s4753_s1 + $0x238] sm:$0xff]   ;;  %v3168_v63 = vld [vmem:[%s4096_s24 + $0x48] sm:$0xe] }
  0x70   : > { %3721 = vmatpush3.bf16.msra.mxu0 %v4378_v11  ;;  %v1127_v7 = vsel %vm4110_vm4, %v1125_v62, %v1126_v37  ;;  %v1131_v37 = vsel %vm4110_vm4, %v3180_v30, %v1130_v41  ;;  %v1132_v52 = vrot.slane %v1130_v41, 4  ;;  %v1385_v62 = vshll.u32 %v3229_v47, 16 }
  0x71   : > { %3759 = vmatpush3.bf16.msra.mxu1 %v4378_v11  ;;  %3722 = vmatprep.subr.bf16.mxu0 %v4394_v35  ;;  %v874_v11 = vsel %vm4119_vm5, %v869_v3, %v873_v49  ;;  %v3187_v13 = vcombine.low %v1124_v61, %v1127_v7  ;;  %v882_v43 = vor.u32 %v881_v33, %v878_v32  ;;  %v1376_v49 = vshrl.u32 %v3228_v31, 16  ;;  %v3893_v33 = vld [vmem:[%s4096_s24 + $0x3c] sm:$0xff]  }
  0x72   : > { %3752 = vmatprep.subr.bf16.mxu1 %v4394_v35  ;;  %v3146_v16 = vcombine.low %v864_v12, %v874_v11  ;;  %v893_v58 = vrot.slane %v892_v44, 4  ;;  %v1381_v61 = vrot.slane %v1379_v53, 5  ;;  %v1395_v3 = vshll.u32 %v3230_v48, 16  ;;  %v3166_v12 = vld [vmem:[%s4096_s24 + $0x40] sm:$0xf] }
  0x73   : > { %v883_v57 = vrot.slane %v882_v43, 4  ;;  %v1378_v60 = vrot.slane %v1376_v49, 4  ;;  %v1387_v8 = vrot.slane %v1385_v62, 5  ;;  %v919_v20 = vshll.u32 %v3132_v4, 16  ;;  %v3133_v43 = vld [vmem:[%s4096_s24 + $0x3c] sm:$0xf] }
  0x74   : > { %2666 = vmatmul.mubr.bf16.gmra.mrb[36].mxu1 %v3889_v56  ;;  %3723 = vmatpush3.bf16.msra.mxu0 %v4394_v35  ;;  %v898_v1 = vsel %vm4119_vm5, %v893_v58, %v897_v39  ;;  %v1397_v11 = vrot.slane %v1395_v3, 5  ;;  %v3181_v26 = vrot.slane %v3165_v10, 9  ;;  %v915_v30 = vrot.slane %v913_v19, 4  ;;  %v3169_v4 = vld [vmem:[%s4096_s24 + $0x4c] sm:$0xf] }
  0x75   : > { %3760 = vmatpush3.bf16.msra.mxu1 %v4394_v35  ;;  %2569 = vmatmul.mubr.bf16.gmra.mrb[36].mxu0 %v3146_v16  ;;  %v1364_v35 = vsel %vm4119_vm5, %v1359_v27, %v1363_v14  ;;  %v888_v0 = vsel %vm4119_vm5, %v883_v57, %v887_v34  ;;  %v1382_v7 = vor.u32 %v1381_v61, %v1378_v60  ;;  %v903_v14 = vshll.u32 %v3130_v54, 16  ;;  %v3232_v27 = vld [vmem:[%s4096_s24 + $0x4c] sm:$0xf]  ;;  %v3134_v57 = vld [vmem:[%s4096_s24 + $0x40] sm:$0xf] }
  0x76   : > { %3753 = vmatprep.subr.bf16.mxu1 %v4412_v59  ;;  %3724 = vmatprep.subr.bf16.mxu0 %v4412_v59  ;;  %v3245_v56 = vcombine.low %v1364_v35, %v1374_v50  ;;  %v3147_v6 = vcombine.low %v888_v0, %v898_v1  ;;  %v909_v16 = vshll.u32 %v3131_v55, 16  ;;  %v1392_v18 = vor.u32 %v1391_v9, %v1387_v8  ;;  %v3233_v35 = vld [vmem:[%s4096_s24 + $0x50] sm:$0x1]  ;;  %v3135_v61 = vld [vmem:[%s4096_s24 + $0x44] sm:$0x1] }
  0x77   : > { %2576 = vmatprep.mubr.bf16.mxu0 %v3187_v13  ;;  %v900_v13 = vshrl.u32 %v3130_v54, 16  ;;  %v905_v24 = vrot.slane %v903_v14, 5  ;;  %v921_v31 = vrot.slane %v919_v20, 5  ;;  %v1137_v34 = vrot.slane %v3166_v12, 5  ;;  %v3170_v9 = vld [vmem:[%s4096_s24 + $0x50] sm:$0x1] }
  0x78   : > { %3725 = vmatpush3.bf16.msra.mxu0 %v4412_v59  ;;  %2673 = vmatprep.mubr.bf16.mxu1 %v3245_v56  ;;  %v911_v25 = vrot.slane %v909_v16, 5  ;;  %v1393_v29 = vrot.slane %v1392_v18, 4  ;;  %v1140_v36 = vrot.slane %v3167_v17, 5  ;;  %v1400_v38 = vshrl.u32 %v3231_v21, 16  ;;  %v3234_v14 = vld [vmem:[%s4096_s24 + $0x54] sm:$0xf] }
  0x79   : > { %3761 = vmatpush3.bf16.msra.mxu1 %v4412_v59  ;;  %3726 = vmatprep.subr.bf16.mxu0 %v4430_v15  ;;  %v1134_v59 = vsel %vm4110_vm4, %v1132_v52, %v1133_v45  ;;  %v902_v23 = vrot.slane %v900_v13, 4  ;;  %v1403_v41 = vshll.u32 %v3231_v21, 16  ;;  %v1138_v47 = vsel %vm4110_vm4, %v3181_v26, %v1137_v34  ;;  %v3235_v19 = vld [vmem:[%s4096_s24 + $0x58] sm:$0xf] }
  0x7a   : > { %3754 = vmatprep.subr.bf16.mxu1 %v4430_v15  ;;  %v3188_v2 = vcombine.low %v1131_v37, %v1134_v59  ;;  %v1398_v39 = vsel %vm4119_vm5, %v1393_v29, %v1397_v11  ;;  %v1139_v48 = vrot.slane %v1137_v34, 4  ;;  %v1402_v50 = vrot.slane %v1400_v38, 4 }
  0x7b   : > { %v906_v32 = vor.u32 %v905_v24, %v902_v23  ;;  %v1405_v37 = vrot.slane %v1403_v41, 5  ;;  %v1413_v55 = vshrl.u32 %v3232_v27, 16  ;;  %v1419_v56 = vshll.u32 %v3233_v35, 16  ;;  %v3236_v24 = vld [vmem:[%s4096_s24 + $0x5c] sm:$0x1] }
  0x7c   : > { %3727 = vmatpush3.bf16.msra.mxu0 %v4430_v15  ;;  %2674 = vmatmul.mubr.bf16.gmra.mrb[40].mxu1 %v3891_v40  ;;  %v916_v40 = vor.u32 %v915_v30, %v911_v25  ;;  %v1141_v54 = vsel %vm4110_vm4, %v1139_v48, %v1140_v36  ;;  %v924_v62 = vshrl.u32 %v3133_v43, 16  ;;  %v927_v3 = vshll.u32 %v3133_v43, 16 }
  0x7d   : > { %3762 = vmatpush3.bf16.msra.mxu1 %v4430_v15  ;;  %3728 = vmatprep.subr.bf16.mxu0 %v3898_v42  ;;  %v1383_v15 = vrot.slane %v1382_v7, 4  ;;  %v907_v45 = vrot.slane %v906_v32, 4  ;;  %v3189_v60 = vcombine.low %v1138_v47, %v1141_v54  ;;  %v1406_v59 = vor.u32 %v1405_v37, %v1402_v50  ;;  %v3895_v32 = vld [vmem:[%s4096_s24 + $0x48] sm:$0xff]  }
  0x7e   : > { %3755 = vmatprep.subr.bf16.mxu1 %v3898_v42  ;;  %2577 = vmatmul.mubr.bf16.gmra.mrb[40].mxu0 %v3147_v6  ;;  %v917_v49 = vrot.slane %v916_v40, 4  ;;  %v1415_v1 = vrot.slane %v1413_v55, 4  ;;  %v926_v6 = vrot.slane %v924_v62, 4  ;;  %v933_v7 = vshll.u32 %v3134_v57, 16  ;;  %v3137_v40 = vld [vmem:[%s4096_s24 + $0x4c] sm:$0xf] }
  0x7f   : > { %2584 = vmatprep.mubr.bf16.mxu0 %v3188_v2  ;;  %v1388_v28 = vsel %vm4119_vm5, %v1383_v15, %v1387_v8  ;;  %v912_v53 = vsel %vm4119_vm5, %v907_v45, %v911_v25  ;;  %v1421_v2 = vrot.slane %v1419_v56, 5  ;;  %v937_v8 = vshrl.u32 %v3134_v57, 16  ;;  %v3136_v25 = vld [vmem:[%s4096_s24 + $0x48] sm:$0xf]  ;;  %v3171_v55 = vld [vmem:[%s4096_s24 + $0x54] sm:$0xe] }
  0x80   : > { %3729 = vmatpush3.bf16.msra.mxu0 %v3898_v42  ;;  %v3246_v44 = vcombine.low %v1388_v28, %v1398_v39  ;;  %v922_v58 = vsel %vm4119_vm5, %v917_v49, %v921_v31  ;;  %v929_v12 = vrot.slane %v927_v3, 5  ;;  %v943_v11 = vshll.u32 %v3135_v61, 16  ;;  %v3138_v49 = vld [vmem:[%s4096_s24 + $0x50] sm:$0x1]  ;;  %v3172_v56 = vld [vmem:[%s4096_s24 + $0x58] sm:$0xf] }
  0x81   : > { %3763 = vmatpush3.bf16.msra.mxu1 %v3898_v42  ;;  %3730 = vmatprep.subr.bf16.mxu0 %v3900_v5  ;;  %v1409_v42 = vshll.u32 %v3232_v27, 16  ;;  %v3148_v0 = vcombine.low %v912_v53, %v922_v58  ;;  %v3182_v13 = vrot.slane %v3168_v63, 9  ;;  %v935_v17 = vrot.slane %v933_v7, 5  ;;  %v3173_v61 = vld [vmem:[%s4096_s24 + $0x5c] sm:$0x1] }
  0x82   : > { %3756 = vmatprep.subr.bf16.mxu1 %v3900_v5  ;;  %2681 = vmatprep.mubr.bf16.mxu1 %v3246_v44  ;;  %v939_v15 = vrot.slane %v937_v8, 4  ;;  %v1144_v18 = vrot.slane %v3169_v4, 5  ;;  %v930_v21 = vor.u32 %v929_v12, %v926_v6  ;;  %v1147_v23 = vrot.slane %v3170_v9, 5  ;;  %v3238_v7 = vld [vmem:[%s4096_s24 + $0x64] sm:$0xf] }
  0x83   : > { %v1411_v52 = vrot.slane %v1409_v42, 5  ;;  %v1424_v29 = vshrl.u32 %v3234_v14, 16  ;;  %v1433_v34 = vshll.u32 %v3235_v19, 16  ;;  %v1437_v47 = vshrl.u32 %v3235_v19, 16 }
  0x84   : > { %3731 = vmatpush3.bf16.msra.mxu0 %v3900_v5  ;;  %2682 = vmatmul.mubr.bf16.gmra.mrb[44].mxu1 %v3893_v33  ;;  %v940_v26 = vor.u32 %v939_v15, %v935_v17  ;;  %v1145_v27 = vsel %vm4110_vm4, %v3182_v13, %v1144_v18  ;;  %v1146_v28 = vrot.slane %v1144_v18, 4  ;;  %v931_v31 = vrot.slane %v930_v21, 4  ;;  %v3897_v15 = vld [vmem:[%s4096_s24 + $0x54] sm:$0xff]  }
  0x85   : > { %3764 = vmatpush3.bf16.msra.mxu1 %v3900_v5  ;;  %3732 = vmatprep.subr.bf16.mxu0 %v3902_v22  ;;  %v1407_v5 = vrot.slane %v1406_v59, 4  ;;  %v1416_v10 = vor.u32 %v1415_v1, %v1411_v52  ;;  %v1427_v33 = vshll.u32 %v3234_v14, 16  ;;  %v1426_v39 = vrot.slane %v1424_v29, 4 }
  0x86   : > { %3757 = vmatprep.subr.bf16.mxu1 %v3902_v22  ;;  %2585 = vmatmul.mubr.bf16.gmra.mrb[44].mxu0 %v3148_v0  ;;  %v941_v35 = vrot.slane %v940_v26, 4  ;;  %v1148_v38 = vsel %vm4110_vm4, %v1146_v28, %v1147_v23  ;;  %v936_v41 = vsel %vm4119_vm5, %v931_v31, %v935_v17  ;;  %v1435_v44 = vrot.slane %v1433_v34, 5  ;;  %v3139_v26 = vld [vmem:[%s4096_s24 + $0x54] sm:$0xf]  ;;  %v3140_v31 = vld [vmem:[%s4096_s24 + $0x58] sm:$0xf] }
  0x87   : > { %2592 = vmatprep.mubr.bf16.mxu0 %v3189_v60  ;;  %v1412_v16 = vsel %vm4119_vm5, %v1407_v5, %v1411_v52  ;;  %v1417_v20 = vrot.slane %v1416_v10, 4  ;;  %v3190_v42 = vcombine.low %v1145_v27, %v1148_v38  ;;  %v1429_v43 = vrot.slane %v1427_v33, 5 }
  0x88   : > { %3733 = vmatpush3.bf16.msra.mxu0 %v3902_v22  ;;  %v1443_v48 = vshll.u32 %v3236_v24, 16  ;;  %v948_v50 = vshrl.u32 %v3136_v25, 16  ;;  %v951_v53 = vshll.u32 %v3136_v25, 16  ;;  %v957_v54 = vshll.u32 %v3137_v40, 16  ;;  %v3239_v24 = vld [vmem:[%s4096_s24 + $0x68] sm:$0x1] }
  0x89   : > { %3765 = vmatpush3.bf16.msra.mxu1 %v3902_v22  ;;  %v945_v22 = vrot.slane %v943_v11, 5  ;;  %v1422_v30 = vsel %vm4119_vm5, %v1417_v20, %v1421_v2  ;;  %v1430_v52 = vor.u32 %v1429_v43, %v1426_v39  ;;  %v1439_v57 = vrot.slane %v1437_v47, 4  ;;  %v3237_v2 = vld [vmem:[%s4096_s24 + $0x60] sm:$0xf] }
  0x8a   : > { %v3247_v36 = vcombine.low %v1412_v16, %v1422_v30  ;;  %v1445_v58 = vrot.slane %v1443_v48, 5  ;;  %v950_v60 = vrot.slane %v948_v50, 4  ;;  %v961_v59 = vshrl.u32 %v3137_v40, 16  ;;  %v3175_v48 = vld [vmem:[%s4096_s24 + $0x64] sm:$0xf] }
  0x8b   : > { %v946_v45 = vsel %vm4119_vm5, %v941_v35, %v945_v22  ;;  %v1431_v62 = vrot.slane %v1430_v52, 4  ;;  %v953_v63 = vrot.slane %v951_v53, 5  ;;  %v959_v0 = vrot.slane %v957_v54, 5  ;;  %v3141_v35 = vld [vmem:[%s4096_s24 + $0x5c] sm:$0x1] }
  0x8c   : > { %2689 = vmatprep.mubr.bf16.mxu1 %v3247_v36  ;;  %v3149_v37 = vcombine.low %v936_v41, %v946_v45  ;;  %v967_v1 = vshll.u32 %v3138_v49, 16  ;;  %v1440_v3 = vor.u32 %v1439_v57, %v1435_v44  ;;  %v963_v4 = vrot.slane %v961_v59, 4  ;;  %v3176_v49 = vld [vmem:[%s4096_s24 + $0x68] sm:$0x1]  ;;  %v3240_v54 = vld [vmem:[%s4096_s24 + $0x6c] sm:$0xf] }
  0x8d   : > { %2690 = vmatmul.mubr.bf16.gmra.mrb[48].mxu1 %v3895_v32  ;;  %v3183_v5 = vrot.slane %v3171_v55, 9  ;;  %v1151_v6 = vrot.slane %v3172_v56, 5  ;;  %v1436_v8 = vsel %vm4119_vm5, %v1431_v62, %v1435_v44  ;;  %v954_v9 = vor.u32 %v953_v63, %v950_v60  ;;  %v3241_v55 = vld [vmem:[%s4096_s24 + $0x70] sm:$0xf] }
  0x8e   : > { %2593 = vmatmul.mubr.bf16.gmra.mrb[48].mxu0 %v3149_v37  ;;  %v969_v10 = vrot.slane %v967_v1, 5  ;;  %v1154_v12 = vrot.slane %v3173_v61, 5  ;;  %v1441_v11 = vrot.slane %v1440_v3, 4  ;;  %v964_v13 = vor.u32 %v963_v4, %v959_v0  ;;  %v3899_v3 = vld [vmem:[%s4096_s24 + $0x60] sm:$0xff]  }
  0x8f   : > { %2600 = vmatprep.mubr.bf16.mxu0 %v3190_v42  ;;  %v1152_v14 = vsel %vm4110_vm4, %v3183_v5, %v1151_v6  ;;  %v1153_v16 = vrot.slane %v1151_v6, 4  ;;  %v955_v17 = vrot.slane %v954_v9, 4  ;;  %v1448_v18 = vshrl.u32 %v3237_v2, 16  ;;  %v3174_v42 = vld [vmem:[%s4096_s24 + $0x60] sm:$0xe] }
  0x90   : > { %v1451_v19 = vshll.u32 %v3237_v2, 16  ;;  %v1457_v20 = vshll.u32 %v3238_v7, 16  ;;  %v1446_v21 = vsel %vm4119_vm5, %v1441_v11, %v1445_v58  ;;  %v965_v22 = vrot.slane %v964_v13, 4  ;;  %v3242_v5 = vld [vmem:[%s4096_s24 + $0x74] sm:$0x1] }
  0x91   : > { %v1155_v23 = vsel %vm4110_vm4, %v1153_v16, %v1154_v12  ;;  %v1461_v25 = vshrl.u32 %v3238_v7, 16  ;;  %v3248_v27 = vcombine.low %v1436_v8, %v1446_v21  ;;  %v960_v28 = vsel %vm4119_vm5, %v955_v17, %v959_v0 }
  0x92   : > { %v3191_v29 = vcombine.low %v1152_v14, %v1155_v23  ;;  %v1450_v30 = vrot.slane %v1448_v18, 4  ;;  %v970_v32 = vsel %vm4119_vm5, %v965_v22, %v969_v10  ;;  %v1453_v33 = vrot.slane %v1451_v19, 5  ;;  %v3142_v18 = vld [vmem:[%s4096_s24 + $0x60] sm:$0xf]  ;;  %v3143_v19 = vld [vmem:[%s4096_s24 + $0x64] sm:$0xf] }
  0x93   : > { %v1459_v34 = vrot.slane %v1457_v20, 5  ;;  %v1463_v36 = vrot.slane %v1461_v25, 4  ;;  %2697 = vmatprep.mubr.bf16.mxu1 %v3248_v27  ;;  %v3150_v38 = vcombine.low %v960_v28, %v970_v32  ;;  %v1467_v39 = vshll.u32 %v3239_v24, 16  ;;  %v3144_v24 = vld [vmem:[%s4096_s24 + $0x68] sm:$0x1] }
  0x94   : > { %v972_v40 = vshrl.u32 %v3139_v26, 16  ;;  %v975_v41 = vshll.u32 %v3139_v26, 16  ;;  %v1454_v43 = vor.u32 %v1453_v33, %v1450_v30  ;;  %v981_v45 = vshll.u32 %v3140_v31, 16  ;;  %v3251_v25 = vld [vmem:[%s4096_s24 + $0x18] sm:$0xe] }
  0x95   : > { %2698 = vmatmul.mubr.bf16.gmra.mrb[52].mxu1 %v3897_v15  ;;  %v1464_v44 = vor.u32 %v1463_v36, %v1459_v34  ;;  %v985_v47 = vshrl.u32 %v3140_v31, 16  ;;  %v1469_v50 = vrot.slane %v1467_v39, 5  ;;  %v991_v53 = vshll.u32 %v3141_v35, 16  ;;  %v3252_v30 = vld [vmem:[%s4096_s24 + $0x1c] sm:$0xf] }
  0x96   : > { %2601 = vmatmul.mubr.bf16.gmra.mrb[52].mxu0 %v3150_v38  ;;  %v974_v37 = vrot.slane %v972_v40, 4  ;;  %v977_v52 = vrot.slane %v975_v41, 5  ;;  %v1455_v56 = vrot.slane %v1454_v43, 4  ;;  %v983_v58 = vrot.slane %v981_v45, 5  ;;  %v3253_v36 = vld [vmem:[%s4096_s24 + $0x20] sm:$0x1] }
  0x97   : > { %2608 = vmatprep.mubr.bf16.mxu0 %v3191_v29  ;;  %v1465_v57 = vrot.slane %v1464_v44, 4  ;;  %v987_v60 = vrot.slane %v985_v47, 4  ;;  %v993_v61 = vrot.slane %v991_v53, 5  ;;  %v3184_v62 = vrot.slane %v3174_v42, 9  ;;  %v3263_v41 = vld [vmem:[%s4096_s24 + $0x48] sm:$0xe] }
  0x98   : > { %v978_v59 = vor.u32 %v977_v52, %v974_v37  ;;  %v1158_v63 = vrot.slane %v3175_v48, 5  ;;  %v1460_v0 = vsel %vm4119_vm5, %v1455_v56, %v1459_v34  ;;  %v1161_v4 = vrot.slane %v3176_v49, 5  ;;  %v3264_v47 = vld [vmem:[%s4096_s24 + $0x4c] sm:$0xf]  ;;  %v3265_v52 = vld [vmem:[%s4096_s24 + $0x50] sm:$0x1] }
  0x99   : > { %v1470_v1 = vsel %vm4119_vm5, %v1465_v57, %v1469_v50  ;;  %v988_v2 = vor.u32 %v987_v60, %v983_v58  ;;  %v1472_v12 = vshrl.u32 %v3240_v54, 16  ;;  %v1475_v11 = vshll.u32 %v3240_v54, 16  ;;  %v3254_v57 = vld [vmem:[%s4096_s24 + $0x24] sm:$0xe] }
  0x9a   : > { %v3249_v6 = vcombine.low %v1460_v0, %v1470_v1  ;;  %v979_v7 = vrot.slane %v978_v59, 4  ;;  %v1159_v8 = vsel %vm4110_vm4, %v3184_v62, %v1158_v63  ;;  %v1160_v9 = vrot.slane %v1158_v63, 4  ;;  %v3256_v0 = vld [vmem:[%s4096_s24 + $0x2c] sm:$0x1]  ;;  %v3266_v1 = vld [vmem:[%s4096_s24 + $0x54] sm:$0xe] }
  0x9b   : > { %v989_v10 = vrot.slane %v988_v2, 4  ;;  %v1481_v13 = vshll.u32 %v3241_v55, 16  ;;  %v1485_v17 = vshrl.u32 %v3241_v55, 16  ;;  %v1491_v15 = vshll.u32 %v3242_v5, 16 }
  0x9c   : > { %2705 = vmatprep.mubr.bf16.mxu1 %v3249_v6  ;;  %v984_v14 = vsel %vm4119_vm5, %v979_v7, %v983_v58  ;;  %v1162_v16 = vsel %vm4110_vm4, %v1160_v9, %v1161_v4  ;;  %v1474_v22 = vrot.slane %v1472_v12, 4  ;;  %v1477_v23 = vrot.slane %v1475_v11, 5  ;;  %v3255_v58 = vld [vmem:[%s4096_s24 + $0x28] sm:$0xf]  ;;  %v3267_v6 = vld [vmem:[%s4096_s24 + $0x58] sm:$0xf] }
  0x9d   : > { %v994_v20 = vsel %vm4119_vm5, %v989_v10, %v993_v61  ;;  %2706 = vmatmul.mubr.bf16.gmra.mrb[56].mxu1 %v3899_v3  ;;  %v3192_v21 = vcombine.low %v1159_v8, %v1162_v16  ;;  %v1483_v27 = vrot.slane %v1481_v13, 5  ;;  %v1487_v28 = vrot.slane %v1485_v17, 4  ;;  %v3901_v61 = vld [vmem:[%s4096_s24 + $0x6c] sm:$0xff]   ;;  %v3268_v12 = vld [vmem:[%s4096_s24 + $0x5c] sm:$0x1] }
  0x9e   : > { %v3151_v26 = vcombine.low %v984_v14, %v994_v20  ;;  %v1493_v29 = vrot.slane %v1491_v15, 5  ;;  %v1478_v31 = vor.u32 %v1477_v23, %v1474_v22  ;;  %v996_v32 = vshrl.u32 %v3142_v18, 16  ;;  %v3257_v17 = vld [vmem:[%s4096_s24 + $0x30] sm:$0xe]  ;;  %v3258_v15 = vld [vmem:[%s4096_s24 + $0x34] sm:$0xf] }
  0x9f   : > { %v999_v33 = vshll.u32 %v3142_v18, 16  ;;  %v1005_v34 = vshll.u32 %v3143_v19, 16  ;;  %v1488_v35 = vor.u32 %v1487_v28, %v1483_v27  ;;  %v1009_v38 = vshrl.u32 %v3143_v19, 16  ;;  %v3259_v22 = vld [vmem:[%s4096_s24 + $0x38] sm:$0x1] }
  0xa0   : > { %2609 = vmatmul.mubr.bf16.gmra.mrb[56].mxu0 %v3151_v26  ;;  %v1015_v39 = vshll.u32 %v3144_v24, 16  ;;  %v3275_v40 = vrot.slane %v3251_v25, 9  ;;  %v1479_v42 = vrot.slane %v1478_v31, 4  ;;  %v998_v43 = vrot.slane %v996_v32, 4  ;;  %v3269_v23 = vld [vmem:[%s4096_s24 + $0x60] sm:$0xe] }
  0xa1   : > { %2616 = vmatprep.mubr.bf16.mxu0 %v3192_v21  ;;  %v1001_v44 = vrot.slane %v999_v33, 5  ;;  %v1007_v45 = vrot.slane %v1005_v34, 5  ;;  %v1489_v48 = vrot.slane %v1488_v35, 4  ;;  %v1011_v49 = vrot.slane %v1009_v38, 4  ;;  %v3270_v28 = vld [vmem:[%s4096_s24 + $0x64] sm:$0xf] }
  0xa2   : > { %v1017_v50 = vrot.slane %v1015_v39, 5  ;;  %v1585_v37 = vrot.slane %v3252_v30, 5  ;;  %v1484_v53 = vsel %vm4119_vm5, %v1479_v42, %v1483_v27  ;;  %v1588_v55 = vrot.slane %v3253_v36, 5  ;;  %v3260_v33 = vld [vmem:[%s4096_s24 + $0x3c] sm:$0xe] }
  0xa3   : > { %v1002_v54 = vor.u32 %v1001_v44, %v998_v43  ;;  %v3279_v56 = vrot.slane %v3263_v41, 9  ;;  %v1494_v60 = vsel %vm4119_vm5, %v1489_v48, %v1493_v29  ;;  %v1012_v59 = vor.u32 %v1011_v49, %v1007_v45  ;;  %v3261_v38 = vld [vmem:[%s4096_s24 + $0x40] sm:$0xf]  ;;  %v3272_v39 = vld [vmem:[%s4096_s24 + $0x6c] sm:$0xe] }
  0xa4   : > { %v1586_v62 = vsel %vm4110_vm4, %v3275_v40, %v1585_v37  ;;  %v1587_v63 = vrot.slane %v1585_v37, 4  ;;  %v3250_v2 = vcombine.low %v1484_v53, %v1494_v60  ;;  %v1613_v4 = vrot.slane %v3264_v47, 5  ;;  %v3273_v44 = vld [vmem:[%s4096_s24 + $0x70] sm:$0xf] }
  0xa5   : > { %v1003_v3 = vrot.slane %v1002_v54, 4  ;;  %v1616_v5 = vrot.slane %v3265_v52, 5  ;;  %v1013_v7 = vrot.slane %v1012_v59, 4  ;;  %v3276_v9 = vrot.slane %v3254_v57, 9 }
  0xa6   : > { %v1589_v8 = vsel %vm4110_vm4, %v1587_v63, %v1588_v55  ;;  %v1592_v10 = vrot.slane %v3255_v58, 5  ;;  %2713 = vmatprep.mubr.bf16.mxu1 %v3250_v2  ;;  %v1614_v14 = vsel %vm4110_vm4, %v3279_v56, %v1613_v4  ;;  %v1615_v16 = vrot.slane %v1613_v4, 4  ;;  %v3274_v55 = vld [vmem:[%s4096_s24 + $0x74] sm:$0x1] }
  0xa7   : > { %v1008_v11 = vsel %vm4119_vm5, %v1003_v3, %v1007_v45  ;;  %v3283_v13 = vcombine.low %v1586_v62, %v1589_v8  ;;  %v1018_v18 = vsel %vm4119_vm5, %v1013_v7, %v1017_v50  ;;  %2714 = vmatmul.mubr.bf16.gmra.mrb[60].mxu1 %v3901_v61  ;;  %v1595_v21 = vrot.slane %v3256_v0, 5  ;;  %v3262_v50 = vld [vmem:[%s4096_s24 + $0x44] sm:$0x1] }
  0xa8   : > { %v1593_v19 = vsel %vm4110_vm4, %v3276_v9, %v1592_v10  ;;  %v1594_v20 = vrot.slane %v1592_v10, 4  ;;  %v3152_v24 = vcombine.low %v1008_v11, %v1018_v18  ;;  %v1617_v25 = vsel %vm4110_vm4, %v1615_v16, %v1616_v5  ;;  %v4629_v11 = vld [vmem:[%s4754_s2] ss:$0 sm:$0xff] }
  0xa9   : > { %v3280_v26 = vrot.slane %v3266_v1, 9  ;;  %v1620_v27 = vrot.slane %v3267_v6, 5  ;;  %v3287_v29 = vcombine.low %v1614_v14, %v1617_v25  ;;  %v1623_v31 = vrot.slane %v3268_v12, 5 }
  0xaa   : > { %v1596_v30 = vsel %vm4110_vm4, %v1594_v20, %v1595_v21  ;;  %v3277_v32 = vrot.slane %v3257_v17, 9  ;;  %2617 = vmatmul.mubr.bf16.gmra.mrb[60].mxu0 %v3152_v24  ;;  %v1599_v35 = vrot.slane %v3258_v15, 5  ;;  %v1602_v40 = vrot.slane %v3259_v22, 5 }
  0xab   : > { %v1621_v34 = vsel %vm4110_vm4, %v3280_v26, %v1620_v27  ;;  %v1622_v36 = vrot.slane %v1620_v27, 4  ;;  %3734 = vmatprep.mubr.bf16.mxu0 %v3283_v13  ;;  %3742 = vmatprep.mubr.bf16.mxu1 %v3287_v29  ;;  %v3281_v41 = vrot.slane %v3269_v23, 9  ;;  %v1627_v42 = vrot.slane %v3270_v28, 5 }
  0xac   : > { %v1630_v43 = vrot.slane %v3271_v51, 5  ;;  %v3284_v45 = vcombine.low %v1593_v19, %v1596_v30  ;;  %v1600_v48 = vsel %vm4110_vm4, %v3277_v32, %v1599_v35  ;;  %v1601_v49 = vrot.slane %v1599_v35, 4 }
  0xad   : > { %v1624_v47 = vsel %vm4110_vm4, %v1622_v36, %v1623_v31  ;;  %v1628_v52 = vsel %vm4110_vm4, %v3281_v41, %v1627_v42  ;;  %v1629_v53 = vrot.slane %v1627_v42, 4  ;;  %v1606_v54 = vrot.slane %v3261_v38, 5 }
  0xae   : > { %v3288_v37 = vcombine.low %v1621_v34, %v1624_v47  ;;  %v1603_v56 = vsel %vm4110_vm4, %v1601_v49, %v1602_v40  ;;  %v3278_v57 = vrot.slane %v3260_v33, 9  ;;  %v3282_v58 = vrot.slane %v3272_v39, 9 }
  0xaf   : > { %v1634_v60 = vrot.slane %v3273_v44, 5  ;;  %v3285_v59 = vcombine.low %v1600_v48, %v1603_v56  ;;  %v1631_v61 = vsel %vm4110_vm4, %v1629_v53, %v1630_v43  ;;  %v1608_v62 = vrot.slane %v1606_v54, 4 }
  0xb0   : > { %3743 = vmatmul.mubr.bf16.vlgmr.msra.gmra.mrb[64].mxu1 %v3288_v37  ;;  %v1609_v63 = vrot.slane %v3262_v50, 5  ;;  %v3289_v0 = vcombine.low %v1628_v52, %v1631_v61  ;;  %v1637_v3 = vrot.slane %v3274_v55, 5  ;;  %v1607_v5 = vsel %vm4110_vm4, %v3278_v57, %v1606_v54 }
  0xb1   : > { %v1635_v1 = vsel %vm4110_vm4, %v3282_v58, %v1634_v60  ;;  %v1636_v2 = vrot.slane %v1634_v60, 4 }
  0xb2   : > { %3735 = vmatmul.mubr.bf16.vlgmr.msra.gmra.mrb[64].mxu0 %v3284_v45  ;;  %3746 = vmatprep.mubr.bf16.mxu1 %v3289_v0  ;;  %v1610_v6 = vsel %vm4110_vm4, %v1608_v62, %v1609_v63 }
  0xb3   : > { %v1638_v4 = vsel %vm4110_vm4, %v1636_v2, %v1637_v3  ;;  %3738 = vmatprep.mubr.bf16.mxu0 %v3285_v59  ;;  %v3286_v8 = vcombine.low %v1607_v5, %v1610_v6 }
  0xb4   : > { %v3290_v7 = vcombine.low %v1635_v1, %v1638_v4 }
  0xb8   : > { %3747 = vmatmul.mubr.bf16.gmra.mrb[68].mxu1 %v3290_v7 }
  0xba   : > { %3739 = vmatmul.mubr.bf16.gmra.mrb[68].mxu0 %v3286_v8 }
  0xfe   : > { %v3462_v10 = vpop.f32.mrb[0].mxu0 }
  0xff   : > { %v3526_v9 = vpop.f32.mrb[0].mxu1  ;;  %v3463_v13 = vpop.f32.mrb[1].mxu0 }
 0x100   : > { %v3527_v12 = vpop.f32.mrb[1].mxu1  ;;  %v3464_v17 = vadd.f32 %v3463_v13, %v3462_v10  ;;  %v3465_v15 = vpop.f32.mrb[2].mxu0 }
 0x101   : > { %v3528_v14 = vadd.f32 %v3527_v12, %v3526_v9  ;;  %v3529_v16 = vpop.f32.mrb[2].mxu1  ;;  %v3466_v46 = vpop.f32.mrb[3].mxu0 }
 0x102   : > { %v3530_v18 = vpop.f32.mrb[3].mxu1  ;;  %v2369_v20 = vadd.f32 %v3464_v17, %v4629_v11  ;;  %v3467_v21 = vadd.f32 %v3466_v46, %v3465_v15 }
 0x103   : > { %v3531_v19 = vadd.f32 %v3530_v18, %v3529_v16 }
 0x104   : > { %v4632_v22 = vadd.f32 %v3528_v14, %v2369_v20  ;;  %v2372_v23 = vadd.f32 %v3467_v21, %v4629_v11 }
 0x106   : > { %v4635_v24 = vadd.f32 %v3531_v19, %v2372_v23  ;;  %v3468_v26 = vpop.f32.mrb[4].mxu0 }
 0x107   : > { %v3532_v25 = vpop.f32.mrb[4].mxu1  ;;  %v3469_v28 = vpop.f32.mrb[5].mxu0 }
 0x108   : > { %v3533_v27 = vpop.f32.mrb[5].mxu1  ;;  %v3470_v30 = vadd.f32 %v3469_v28, %v3468_v26  ;;  %v3471_v31 = vpop.f32.mrb[6].mxu0 }
 0x109   : > { %v3534_v51 = vadd.f32 %v3533_v27, %v3532_v25  ;;  %v3535_v29 = vpop.f32.mrb[6].mxu1  ;;  %v3472_v33 = vpop.f32.mrb[7].mxu0 }
 0x10a   : > { %v3536_v32 = vpop.f32.mrb[7].mxu1  ;;  %v2377_v36 = vadd.f32 %v3470_v30, %v4629_v11  ;;  %v3473_v35 = vadd.f32 %v3472_v33, %v3471_v31 }
 0x10b   : > { %v3537_v34 = vadd.f32 %v3536_v32, %v3535_v29 }
 0x10c   : > { %v4638_v38 = vadd.f32 %v3534_v51, %v2377_v36  ;;  %v2380_v39 = vadd.f32 %v3473_v35, %v4629_v11 }
 0x10e   : > { %v4641_v40 = vadd.f32 %v3537_v34, %v2380_v39  ;;  %v3474_v42 = vpop.f32.mrb[8].mxu0 }
 0x10f   : > { %v3538_v41 = vpop.f32.mrb[8].mxu1  ;;  %v3475_v44 = vpop.f32.mrb[9].mxu0 }
 0x110   : > { %v3539_v43 = vpop.f32.mrb[9].mxu1  ;;  %v3476_v48 = vadd.f32 %v3475_v44, %v3474_v42  ;;  %v3477_v49 = vpop.f32.mrb[10].mxu0 }
 0x111   : > { %v3540_v45 = vadd.f32 %v3539_v43, %v3538_v41  ;;  %v3541_v47 = vpop.f32.mrb[10].mxu1  ;;  %v3478_v37 = vpop.f32.mrb[11].mxu0 }
 0x112   : > { %v3542_v50 = vpop.f32.mrb[11].mxu1  ;;  %v2385_v53 = vadd.f32 %v3476_v48, %v4629_v11  ;;  %v3479_v54 = vadd.f32 %v3478_v37, %v3477_v49 }
 0x113   : > { %v3543_v52 = vadd.f32 %v3542_v50, %v3541_v47 }
 0x114   : > { %v4644_v55 = vadd.f32 %v3540_v45, %v2385_v53  ;;  %v2388_v56 = vadd.f32 %v3479_v54, %v4629_v11 }
 0x116   : > { %v4647_v57 = vadd.f32 %v3543_v52, %v2388_v56  ;;  %v3480_v60 = vpop.f32.mrb[12].mxu0 }
 0x117   : > { %v3544_v58 = vpop.f32.mrb[12].mxu1  ;;  %v3481_v61 = vpop.f32.mrb[13].mxu0 }
 0x118   : > { %v3545_v59 = vpop.f32.mrb[13].mxu1  ;;  %v3482_v0 = vadd.f32 %v3481_v61, %v3480_v60  ;;  %v3483_v1 = vpop.f32.mrb[14].mxu0 }
 0x119   : > { %v3546_v62 = vadd.f32 %v3545_v59, %v3544_v58  ;;  %v3547_v63 = vpop.f32.mrb[14].mxu1  ;;  %v3484_v3 = vpop.f32.mrb[15].mxu0 }
 0x11a   : > { %v3548_v2 = vpop.f32.mrb[15].mxu1  ;;  %v2393_v5 = vadd.f32 %v3482_v0, %v4629_v11  ;;  %v3485_v6 = vadd.f32 %v3484_v3, %v3483_v1 }
 0x11b   : > { %v3549_v4 = vadd.f32 %v3548_v2, %v3547_v63 }
 0x11c   : > { %v4650_v7 = vadd.f32 %v3546_v62, %v2393_v5  ;;  %v2396_v8 = vadd.f32 %v3485_v6, %v4629_v11 }
 0x11e   : > { %v4653_v9 = vadd.f32 %v3549_v4, %v2396_v8  ;;  %v3486_v12 = vpop.f32.mrb[16].mxu0 }
 0x11f   : > { %v3550_v10 = vpop.f32.mrb[16].mxu1  ;;  %v3487_v14 = vpop.f32.mrb[17].mxu0 }
 0x120   : > { %v3551_v13 = vpop.f32.mrb[17].mxu1  ;;  %v3488_v15 = vadd.f32 %v3487_v14, %v3486_v12  ;;  %v3489_v18 = vpop.f32.mrb[18].mxu0 }
 0x121   : > { %v3552_v16 = vadd.f32 %v3551_v13, %v3550_v10  ;;  %v3553_v17 = vpop.f32.mrb[18].mxu1  ;;  %v3490_v19 = vpop.f32.mrb[19].mxu0 }
 0x122   : > { %v3554_v46 = vpop.f32.mrb[19].mxu1  ;;  %v2401_v21 = vadd.f32 %v3488_v15, %v4629_v11  ;;  %v3491_v23 = vadd.f32 %v3490_v19, %v3489_v18 }
 0x123   : > { %v3555_v20 = vadd.f32 %v3554_v46, %v3553_v17 }
 0x124   : > { %v4656_v25 = vadd.f32 %v3552_v16, %v2401_v21  ;;  %v2404_v26 = vadd.f32 %v3491_v23, %v4629_v11 }
 0x126   : > { %v4659_v27 = vadd.f32 %v3555_v20, %v2404_v26  ;;  %v3492_v51 = vpop.f32.mrb[20].mxu0 }
 0x127   : > { %v3556_v28 = vpop.f32.mrb[20].mxu1  ;;  %v3493_v30 = vpop.f32.mrb[21].mxu0 }
 0x128   : > { %v3557_v29 = vpop.f32.mrb[21].mxu1  ;;  %v3494_v33 = vadd.f32 %v3493_v30, %v3492_v51  ;;  %v3495_v34 = vpop.f32.mrb[22].mxu0 }
 0x129   : > { %v3558_v31 = vadd.f32 %v3557_v29, %v3556_v28  ;;  %v3559_v32 = vpop.f32.mrb[22].mxu1  ;;  %v3496_v35 = vpop.f32.mrb[23].mxu0 }
 0x12a   : > { %v3560_v36 = vpop.f32.mrb[23].mxu1  ;;  %v2409_v41 = vadd.f32 %v3494_v33, %v4629_v11  ;;  %v3497_v42 = vadd.f32 %v3496_v35, %v3495_v34 }
 0x12b   : > { %v3561_v39 = vadd.f32 %v3560_v36, %v3559_v32 }
 0x12c   : > { %v4662_v43 = vadd.f32 %v3558_v31, %v2409_v41  ;;  %v2412_v44 = vadd.f32 %v3497_v42, %v4629_v11 }
 0x12e   : > { %v4665_v45 = vadd.f32 %v3561_v39, %v2412_v44  ;;  %v3498_v48 = vpop.f32.mrb[24].mxu0 }
 0x12f   : > { %v3562_v47 = vpop.f32.mrb[24].mxu1  ;;  %v3499_v50 = vpop.f32.mrb[25].mxu0 }
 0x130   : > { %v3563_v49 = vpop.f32.mrb[25].mxu1  ;;  %v3500_v53 = vadd.f32 %v3499_v50, %v3498_v48  ;;  %v3501_v54 = vpop.f32.mrb[26].mxu0 }
 0x131   : > { %v3564_v37 = vadd.f32 %v3563_v49, %v3562_v47  ;;  %v3565_v52 = vpop.f32.mrb[26].mxu1  ;;  %v3502_v58 = vpop.f32.mrb[27].mxu0 }
 0x132   : > { %v3566_v56 = vpop.f32.mrb[27].mxu1  ;;  %v2417_v59 = vadd.f32 %v3500_v53, %v4629_v11  ;;  %v3503_v61 = vadd.f32 %v3502_v58, %v3501_v54 }
 0x133   : > { %v3567_v60 = vadd.f32 %v3566_v56, %v3565_v52 }
 0x134   : > { %v4668_v62 = vadd.f32 %v3564_v37, %v2417_v59  ;;  %v2420_v63 = vadd.f32 %v3503_v61, %v4629_v11 }
 0x136   : > { %v4671_v0 = vadd.f32 %v3567_v60, %v2420_v63  ;;  %v3504_v2 = vpop.f32.mrb[28].mxu0 }
 0x137   : > { %v3568_v1 = vpop.f32.mrb[28].mxu1  ;;  %v3505_v4 = vpop.f32.mrb[29].mxu0 }
 0x138   : > { %v3569_v3 = vpop.f32.mrb[29].mxu1  ;;  %v3506_v8 = vadd.f32 %v3505_v4, %v3504_v2  ;;  %v3507_v10 = vpop.f32.mrb[30].mxu0 }
 0x139   : > { %v3570_v5 = vadd.f32 %v3569_v3, %v3568_v1  ;;  %v3571_v6 = vpop.f32.mrb[30].mxu1  ;;  %v3508_v13 = vpop.f32.mrb[31].mxu0 }
 0x13a   : > { %v3572_v12 = vpop.f32.mrb[31].mxu1  ;;  %v2425_v16 = vadd.f32 %v3506_v8, %v4629_v11  ;;  %v3509_v17 = vadd.f32 %v3508_v13, %v3507_v10 }
 0x13b   : > { %v3573_v14 = vadd.f32 %v3572_v12, %v3571_v6 }
 0x13c   : > { %v4674_v15 = vadd.f32 %v3570_v5, %v2425_v16  ;;  %v2428_v18 = vadd.f32 %v3509_v17, %v4629_v11 }
 0x13e   : > { %v4677_v46 = vadd.f32 %v3573_v14, %v2428_v18  ;;  %v3590_v28 = vpop.f32.mrb[32].mxu0 }
 0x13f   : > { %v3654_v19 = vpop.f32.mrb[32].mxu1  ;;  %v3591_v29 = vpop.f32.mrb[33].mxu0 }
 0x140   : > { %v3655_v20 = vpop.f32.mrb[33].mxu1  ;;  %v3592_v30 = vadd.f32 %v3591_v29, %v3590_v28  ;;  %v3593_v31 = vpop.f32.mrb[34].mxu0 }
 0x141   : > { %v3656_v21 = vadd.f32 %v3655_v20, %v3654_v19  ;;  %v3657_v23 = vpop.f32.mrb[34].mxu1  ;;  %v3594_v32 = vpop.f32.mrb[35].mxu0 }
 0x142   : > { %v3658_v26 = vpop.f32.mrb[35].mxu1  ;;  %v2563_v33 = vadd.f32 %v3592_v30, %v4632_v22  ;;  %v3595_v34 = vadd.f32 %v3594_v32, %v3593_v31 }
 0x143   : > { %v3659_v51 = vadd.f32 %v3658_v26, %v3657_v23 }
 0x144   : > { %v2566_v36 = vadd.f32 %v3595_v34, %v4635_v24  ;;  %v4681_v35 = vadd.f32 %v3656_v21, %v2563_v33 }
 0x146   : > { %v4683_v41 = vadd.f32 %v3659_v51, %v2566_v36 }
 0x147   : > { %v3660_v11 = vpop.f32.mrb[36].mxu1 }
 0x148   : > { %v3661_v39 = vpop.f32.mrb[37].mxu1  ;;  %v3596_v47 = vpop.f32.mrb[36].mxu0 }
 0x149   : > { %v3662_v42 = vadd.f32 %v3661_v39, %v3660_v11  ;;  %v3663_v44 = vpop.f32.mrb[38].mxu1  ;;  %v3597_v49 = vpop.f32.mrb[37].mxu0 }
 0x14a   : > { %v3664_v48 = vpop.f32.mrb[39].mxu1  ;;  %v3598_v37 = vadd.f32 %v3597_v49, %v3596_v47  ;;  %v3599_v52 = vpop.f32.mrb[38].mxu0 }
 0x14b   : > { %v3665_v50 = vadd.f32 %v3664_v48, %v3663_v44  ;;  %v3600_v53 = vpop.f32.mrb[39].mxu0 }
 0x14c   : > { %v2571_v22 = vadd.f32 %v3598_v37, %v4638_v38  ;;  %v3601_v54 = vadd.f32 %v3600_v53, %v3599_v52 }
 0x14e   : > { %v2574_v24 = vadd.f32 %v3601_v54, %v4641_v40  ;;  %v4687_v56 = vadd.f32 %v3662_v42, %v2571_v22 }
 0x14f   : > { %v3666_v58 = vpop.f32.mrb[40].mxu1 }
 0x150   : > { %v4689_v60 = vadd.f32 %v3665_v50, %v2574_v24  ;;  %v3667_v59 = vpop.f32.mrb[41].mxu1 }
 0x151   : > { %v3602_v61 = vpop.f32.mrb[40].mxu0  ;;  %v3668_v63 = vadd.f32 %v3667_v59, %v3666_v58  ;;  %v3669_v1 = vpop.f32.mrb[42].mxu1 }
 0x152   : > { %v3603_v2 = vpop.f32.mrb[41].mxu0  ;;  %v3670_v3 = vpop.f32.mrb[43].mxu1 }
 0x153   : > { %v3604_v4 = vadd.f32 %v3603_v2, %v3602_v61  ;;  %v3605_v5 = vpop.f32.mrb[42].mxu0  ;;  %v3671_v6 = vadd.f32 %v3670_v3, %v3669_v1 }
 0x154   : > { %v3606_v8 = vpop.f32.mrb[43].mxu0 }
 0x155   : > { %v2579_v38 = vadd.f32 %v3604_v4, %v4644_v55  ;;  %v3607_v10 = vadd.f32 %v3606_v8, %v3605_v5 }
 0x157   : > { %v2582_v40 = vadd.f32 %v3607_v10, %v4647_v57  ;;  %v4693_v12 = vadd.f32 %v3668_v63, %v2579_v38  ;;  %v3672_v13 = vpop.f32.mrb[44].mxu1 }
 0x158   : > { %v3673_v16 = vpop.f32.mrb[45].mxu1 }
 0x159   : > { %v4695_v14 = vadd.f32 %v3671_v6, %v2582_v40  ;;  %v3674_v17 = vadd.f32 %v3673_v16, %v3672_v13  ;;  %v3675_v18 = vpop.f32.mrb[46].mxu1  ;;  %v3608_v19 = vpop.f32.mrb[44].mxu0 }
 0x15a   : > { %v3676_v20 = vpop.f32.mrb[47].mxu1  ;;  %v3609_v21 = vpop.f32.mrb[45].mxu0 }
 0x15b   : > { %v3677_v23 = vadd.f32 %v3676_v20, %v3675_v18  ;;  %v3610_v26 = vadd.f32 %v3609_v21, %v3608_v19  ;;  %v3611_v28 = vpop.f32.mrb[46].mxu0 }
 0x15c   : > { %v3612_v51 = vpop.f32.mrb[47].mxu0 }
 0x15d   : > { %v2587_v55 = vadd.f32 %v3610_v26, %v4650_v7  ;;  %v3613_v29 = vadd.f32 %v3612_v51, %v3611_v28 }
 0x15f   : > { %v2590_v57 = vadd.f32 %v3613_v29, %v4653_v9  ;;  %v4699_v30 = vadd.f32 %v3674_v17, %v2587_v55 }
 0x160   : > { %v3678_v31 = vpop.f32.mrb[48].mxu1 }
 0x161   : > { %v4701_v32 = vadd.f32 %v3677_v23, %v2590_v57  ;;  %v3679_v33 = vpop.f32.mrb[49].mxu1  ;;  %v3614_v34 = vpop.f32.mrb[48].mxu0 }
 0x162   : > { %v3680_v36 = vadd.f32 %v3679_v33, %v3678_v31  ;;  %v3681_v11 = vpop.f32.mrb[50].mxu1  ;;  %v3615_v39 = vpop.f32.mrb[49].mxu0 }
 0x163   : > { %v3682_v42 = vpop.f32.mrb[51].mxu1  ;;  %v3616_v44 = vadd.f32 %v3615_v39, %v3614_v34  ;;  %v3617_v47 = vpop.f32.mrb[50].mxu0 }
 0x164   : > { %v3683_v48 = vadd.f32 %v3682_v42, %v3681_v11  ;;  %v3618_v49 = vpop.f32.mrb[51].mxu0 }
 0x165   : > { %v2595_v7 = vadd.f32 %v3616_v44, %v4656_v25  ;;  %v3619_v50 = vadd.f32 %v3618_v49, %v3617_v47 }
 0x167   : > { %v2598_v9 = vadd.f32 %v3619_v50, %v4659_v27  ;;  %v2692_v37 = vadd.f32 %v3680_v36, %v2595_v7 }
 0x168   : > { %v3684_v53 = vpop.f32.mrb[52].mxu1 }
 0x169   : > { %v4705_v52 = vadd.f32 %v3683_v48, %v2598_v9  ;;  %v3620_v22 = vpop.f32.mrb[52].mxu0  ;;  %v3685_v54 = vpop.f32.mrb[53].mxu1 }
 0x16a   : > { %v3621_v24 = vpop.f32.mrb[53].mxu0  ;;  %v3686_v58 = vadd.f32 %v3685_v54, %v3684_v53  ;;  %v3687_v59 = vpop.f32.mrb[54].mxu1 }
 0x16b   : > { %v3622_v61 = vadd.f32 %v3621_v24, %v3620_v22  ;;  %v3623_v63 = vpop.f32.mrb[54].mxu0  ;;  %v3688_v1 = vpop.f32.mrb[55].mxu1 }
 0x16c   : > { %v3624_v2 = vpop.f32.mrb[55].mxu0  ;;  %v3689_v3 = vadd.f32 %v3688_v1, %v3687_v59 }
 0x16d   : > { %v2603_v4 = vadd.f32 %v3622_v61, %v4662_v43  ;;  %v3625_v25 = vadd.f32 %v3624_v2, %v3623_v63 }
 0x16f   : > { %v2606_v5 = vadd.f32 %v3625_v25, %v4665_v45  ;;  %v2700_v27 = vadd.f32 %v3686_v58, %v2603_v4 }
 0x170   : > { %v3690_v6 = vpop.f32.mrb[56].mxu1 }
 0x171   : > { %v3691_v8 = vpop.f32.mrb[57].mxu1  ;;  %v2703_v38 = vadd.f32 %v3689_v3, %v2606_v5 }
 0x172   : > { %v3692_v10 = vadd.f32 %v3691_v8, %v3690_v6  ;;  %v3693_v40 = vpop.f32.mrb[58].mxu1 }
 0x173   : > { %v3626_v13 = vpop.f32.mrb[56].mxu0  ;;  %v3694_v16 = vpop.f32.mrb[59].mxu1 }
 0x174   : > { %v3627_v17 = vpop.f32.mrb[57].mxu0  ;;  %v3695_v18 = vadd.f32 %v3694_v16, %v3693_v40 }
 0x175   : > { %v3628_v19 = vadd.f32 %v3627_v17, %v3626_v13  ;;  %v3629_v20 = vpop.f32.mrb[58].mxu0 }
 0x176   : > { %v3630_v21 = vpop.f32.mrb[59].mxu0 }
 0x177   : > { %v2611_v23 = vadd.f32 %v3628_v19, %v4668_v62  ;;  %v3631_v43 = vadd.f32 %v3630_v21, %v3629_v20 }
 0x179   : > { %v2614_v45 = vadd.f32 %v3631_v43, %v4671_v0  ;;  %v2708_v26 = vadd.f32 %v3692_v10, %v2611_v23 }
 0x17a   : > { %v3696_v28 = vpop.f32.mrb[60].mxu1 }
 0x17b   : > { %v2711_v51 = vadd.f32 %v3695_v18, %v2614_v45  ;;  %v3697_v55 = vpop.f32.mrb[61].mxu1 }
 0x17c   : > { %v3698_v29 = vadd.f32 %v3697_v55, %v3696_v28  ;;  %v3699_v57 = vpop.f32.mrb[62].mxu1 }
 0x17d   : > { %v3632_v31 = vpop.f32.mrb[60].mxu0  ;;  %v3700_v33 = vpop.f32.mrb[63].mxu1 }
 0x17e   : > { %v3633_v34 = vpop.f32.mrb[61].mxu0  ;;  %v3701_v36 = vadd.f32 %v3700_v33, %v3699_v57 }
 0x17f   : > { %v3634_v11 = vadd.f32 %v3633_v34, %v3632_v31  ;;  %v3635_v39 = vpop.f32.mrb[62].mxu0 }
 0x180   : > { %v3636_v62 = vpop.f32.mrb[63].mxu0 }
 0x181   : > { %v2619_v42 = vadd.f32 %v3634_v11, %v4674_v15  ;;  %v3637_v44 = vadd.f32 %v3636_v62, %v3635_v39 }
 0x183   : > { %v3744_v0 = vpop.f32.mrb[64].mxu1  ;;  %v2622_v47 = vadd.f32 %v3637_v44, %v4677_v46  ;;  %v2716_v7 = vadd.f32 %v3698_v29, %v2619_v42 }
 0x184   : > { %v2797_v48 = vadd.f32 %v3744_v0, %v2700_v27  ;;  %v2788_v49 = vpop.f32.mrb[65].mxu1 }
 0x185   : > { %v2789_v50 = vadd.f32 %v2788_v49, %v2692_v37  ;;  %v3745_v9 = vpop.f32.mrb[66].mxu1  ;;  %v3736_v53 = vpop.f32.mrb[64].mxu0  ;;  %v2719_v24 = vadd.f32 %v3701_v36, %v2622_v47 }
 0x186   : > { %v2800_v22 = vadd.f32 %v3745_v9, %v2703_v38  ;;  %v2791_v54 = vpop.f32.mrb[67].mxu1  ;;  %v2765_v58 = vadd.f32 %v3736_v53, %v4687_v56  ;;  %v2756_v59 = vpop.f32.mrb[65].mxu0  ;;  %v2829_v61 = vmax.f32 %v2797_v48, 0.0 }
 0x187   : > { %v2792_v15 = vadd.f32 %v2791_v54, %v4705_v52  ;;  %v2757_v63 = vadd.f32 %v2756_v59, %v4681_v35  ;;  %v3737_v1 = vpop.f32.mrb[66].mxu0  ;;  %v2827_v2 = vmax.f32 %v2789_v50, 0.0 }
 0x188   : > { %v2830_v46 = vmax.f32 %v2800_v22, 0.0  ;;  %v2768_v37 = vadd.f32 %v3737_v1, %v4689_v60  ;;  %v2759_v3 = vpop.f32.mrb[67].mxu0  ;;  %v2821_v25 = vmax.f32 %v2765_v58, 0.0 }
 0x189   : > { %v2828_v56 = vmax.f32 %v2792_v15, 0.0  ;;  %v2760_v52 = vadd.f32 %v2759_v3, %v4683_v41  ;;  %v2819_v6 = vmax.f32 %v2757_v63, 0.0 }
 0x18a   : > { %v3427_v4 = vpack.c.bf16 %v2830_v46, %v2829_v61  ;;  %v2822_v5 = vmax.f32 %v2768_v37, 0.0 }
 0x18b   : > { %v3422_v35 = vpack.c.bf16 %v2828_v56, %v2827_v2  ;;  %v3748_v27 = vpop.f32.mrb[68].mxu1  ;;  %v2820_v8 = vmax.f32 %v2760_v52, 0.0 }
 0x18c   : > { %3443 = vst [vmem:[%s4721_s11 + $0x28] sm:$0xff] %v3427_v4   ;;  %v2813_v38 = vadd.f32 %v3748_v27, %v2716_v7  ;;  %v2804_v10 = vpop.f32.mrb[69].mxu1  ;;  %v3407_v40 = vpack.c.bf16 %v2822_v5, %v2821_v25 }
 0x18d   : > { %3442 = vst [vmem:[%s4721_s11 + $0x20] sm:$0xff] %v3422_v35   ;;  %v2805_v13 = vadd.f32 %v2804_v10, %v2708_v26  ;;  %v3749_v60 = vpop.f32.mrb[70].mxu1  ;;  %v3402_v16 = vpack.c.bf16 %v2820_v8, %v2819_v6  ;;  %v3740_v17 = vpop.f32.mrb[68].mxu0 }
 0x18e   : > { %v2816_v18 = vadd.f32 %v3749_v60, %v2719_v24  ;;  %v2807_v19 = vpop.f32.mrb[71].mxu1  ;;  %3439 = vst [vmem:[%s4721_s11 + $0x8] sm:$0xff] %v3407_v40   ;;  %v2781_v41 = vadd.f32 %v3740_v17, %v4699_v30  ;;  %v2772_v20 = vpop.f32.mrb[69].mxu0  ;;  %v2833_v23 = vmax.f32 %v2813_v38, 0.0 }
 0x18f   : > { %v2808_v21 = vadd.f32 %v2807_v19, %v2711_v51  ;;  %3403 = vst [vmem:[%s4721_s11] sm:$0xff] %v3402_v16   ;;  %v2773_v43 = vadd.f32 %v2772_v20, %v4693_v12  ;;  %v3741_v45 = vpop.f32.mrb[70].mxu0  ;;  %v2831_v26 = vmax.f32 %v2805_v13, 0.0 }
 0x190   : > { %v2834_v28 = vmax.f32 %v2816_v18, 0.0  ;;  %v2784_v55 = vadd.f32 %v3741_v45, %v4701_v32  ;;  %v2775_v29 = vpop.f32.mrb[71].mxu0  ;;  %v2825_v33 = vmax.f32 %v2781_v41, 0.0 }
 0x191   : > { %v2832_v57 = vmax.f32 %v2808_v21, 0.0  ;;  %v2776_v30 = vadd.f32 %v2775_v29, %v4695_v14  ;;  %v2823_v36 = vmax.f32 %v2773_v43, 0.0 }
 0x192   : > { %v3437_v31 = vpack.c.bf16 %v2834_v28, %v2833_v23  ;;  %v2826_v51 = vmax.f32 %v2784_v55, 0.0 }
 0x193   : > { %v3432_v34 = vpack.c.bf16 %v2832_v57, %v2831_v26  ;;  %v2824_v11 = vmax.f32 %v2776_v30, 0.0 }
 0x194   : > { %3445 = vst [vmem:[%s4721_s11 + $0x38] sm:$0xff] %v3437_v31   ;;  %v3417_v12 = vpack.c.bf16 %v2826_v51, %v2825_v33 }
 0x195   : > { %3444 = vst [vmem:[%s4721_s11 + $0x30] sm:$0xff] %v3432_v34   ;;  %v3412_v39 = vpack.c.bf16 %v2824_v11, %v2823_v36 }
 0x196   : > { %3441 = vst [vmem:[%s4721_s11 + $0x18] sm:$0xff] %v3417_v12  }
 0x197   : > { %3440 = vst [vmem:[%s4721_s11 + $0x10] sm:$0xff] %v3412_v39  }
 0x198 PF: > { %s13_s16 = sadd.s32 1, %s3941_s16   ;;  %s4760_s12 = smov %s3933_s14 }
 0x199   : > { %p10_p7 = scmp.ge.s32.totalorder %s13_s16, 6   ;;  %s4761_s13 = smov %s3937_s15 }
 0x19a   : > { %s4762_s14 = smov %s4765_s17  ;;  %s4763_s15 = smov %s4769_s18 }
 0x19b   :  { %12 = sbr.rel (!%p10_p7) target bundleno = 3 (0x3), region = 75 }

</bundles_post_ra>
